<compile_context>
chip_gen: v5e
topology: v5e:2x2
jax: 0.10.0
libtpu: 0.0.40
codegen_flags: <defaults>
</compile_context>

<pallas_src>
import functools

import numpy as np
import jax
import jax.numpy as jnp
from jax.experimental import pallas as pl
from jax.experimental.pallas import tpu as pltpu


# ----------------------------------------------------------------------------
# Fused kernel: encoder + coarse FC head + folding decoder (one batch element)
# ----------------------------------------------------------------------------
def _pcn_fused_kernel(
    x_ref,                                                # (N, 3)
    w1_ref, b1_ref, w2_ref, b2_ref,                        # enc stage 1 (lane padded)
    w3g_ref, w3p_ref, b3_ref, w4_ref, b4_ref,              # enc stage 2 (concat split)
    wf1_ref, bf1_ref, wf2_ref, bf2_ref,                    # coarse fc head
    wf3x_ref, wf3y_ref, wf3z_ref, bf3x_ref, bf3y_ref, bf3z_ref,
    wc1f_ref, wc1g_ref, wc1c_ref, bc1_ref,                 # folding stage
    wc2_ref, bc2_ref, wc3_ref, bc3_ref,
    coarse_ref,                                            # (NC, 3)   out
    fine_ref,                                              # (NC, 3*S) out
    *,
    seed_vals,                                             # static ((sx, sy),)*S
):
    f32 = jnp.float32
    pts = x_ref[...]                                       # (N, 3)

    # --- encoder stage 1: shared MLP 3 -> C1 -> C2 (K=3 done on the VPU) ----
    w1 = w1_ref[...]
    f1 = jnp.maximum(
        pts[:, 0:1] * w1[0:1, :] + pts[:, 1:2] * w1[1:2, :]
        + pts[:, 2:3] * w1[2:3, :] + b1_ref[...],
        0.0)                                               # (N, C1p)
    f2 = jnp.dot(f1, w2_ref[...], preferred_element_type=f32) + b2_ref[...]   # (N, C2)
    g = jnp.max(f2, axis=0, keepdims=True)                 # (1, C2) global feature

    # --- encoder stage 2: concat(global, point) folded into split matmuls ---
    f3 = jnp.maximum(
        jnp.dot(f2, w3p_ref[...], preferred_element_type=f32)
        + jnp.dot(g, w3g_ref[...], preferred_element_type=f32)
        + b3_ref[...],
        0.0)                                               # (N, C3)
    f4 = jnp.dot(f3, w4_ref[...], preferred_element_type=f32) + b4_ref[...]   # (N, F)
    feat = jnp.max(f4, axis=0, keepdims=True)              # (1, F) global code

    # --- coarse fully-connected head (per-coordinate output columns) --------
    h1 = jnp.maximum(
        jnp.dot(feat, wf1_ref[...], preferred_element_type=f32) + bf1_ref[...], 0.0)
    h2 = jnp.maximum(
        jnp.dot(h1, wf2_ref[...], preferred_element_type=f32) + bf2_ref[...], 0.0)
    cx = jnp.dot(h2, wf3x_ref[...], preferred_element_type=f32) + bf3x_ref[...]  # (1, NC)
    cy = jnp.dot(h2, wf3y_ref[...], preferred_element_type=f32) + bf3y_ref[...]
    cz = jnp.dot(h2, wf3z_ref[...], preferred_element_type=f32) + bf3z_ref[...]

    # lane-row -> sublane-column relayout via iota mask (tiny: NC x NC)
    nc = wf3x_ref.shape[1]
    ii = jax.lax.broadcasted_iota(jnp.int32, (nc, nc), 0)
    jj = jax.lax.broadcasted_iota(jnp.int32, (nc, nc), 1)
    diag = ii == jj

    def row_to_col(row):                                   # (1, NC) -> (NC, 1)
        return jnp.sum(jnp.where(diag, row, 0.0), axis=1, keepdims=True)

    cx_col = row_to_col(cx)
    cy_col = row_to_col(cy)
    cz_col = row_to_col(cz)

    # coarse (NC, 3) = [cx | cy | cz] via one-hot lane rows (no concat needed)
    lane3 = jax.lax.broadcasted_iota(jnp.int32, (1, 3), 1)
    ex = (lane3 == 0).astype(f32)
    ey = (lane3 == 1).astype(f32)
    ez = (lane3 == 2).astype(f32)
    coarse = cx_col * ex + cy_col * ey + cz_col * ez        # (NC, 3)
    coarse_ref[...] = coarse

    # --- folding decoder: center/seed/feat contributions built in VMEM ------
    wc1c = wc1c_ref[...]                                    # (3, Cf)
    wc1g = wc1g_ref[...]                                    # (2, Cf)
    t_center = (cx_col * wc1c[0:1, :] + cy_col * wc1c[1:2, :]
                + cz_col * wc1c[2:3, :])                    # (NC, Cf)  (VPU, K=3)
    t_const = (jnp.dot(feat, wc1f_ref[...], preferred_element_type=f32)
               + bc1_ref[...])                              # (1, Cf)

    for s, (sx, sy) in enumerate(seed_vals):                # S static -> unrolled
        t_seed = sx * wc1g[0:1, :] + sy * wc1g[1:2, :]      # (1, Cf)  (VPU, K=2)
        h1f = jnp.maximum(t_center + t_const + t_seed, 0.0)                   # (NC, Cf)
        h2f = jnp.maximum(
            jnp.dot(h1f, wc2_ref[...], preferred_element_type=f32) + bc2_ref[...], 0.0)
        delta = jnp.dot(h2f, wc3_ref[...], preferred_element_type=f32) + bc3_ref[...]
        fine_ref[:, 3 * s:3 * (s + 1)] = delta + coarse     # fine[c*S+s] layout


# ----------------------------------------------------------------------------
# Parameter init (deterministic, torch-Linear-style uniform(+-1/sqrt(fan_in)))
# ----------------------------------------------------------------------------
def init_pcn_params(key, *, feature_size, num_coarse,
                    c1=64, c2=128, c3=128, dec_hidden=256, fold_hidden=128):
    def lin(k, fan_in, fan_out):
        k1, k2 = jax.random.split(k)
        s = 1.0 / jnp.sqrt(jnp.float32(fan_in))
        w = jax.random.uniform(k1, (fan_in, fan_out), jnp.float32, -s, s)
        b = jax.random.uniform(k2, (1, fan_out), jnp.float32, -s, s)
        return w, b

    keys = jax.random.split(key, 10)
    p = {}
    p['w1'], p['b1'] = lin(keys[0], 3, c1)
    p['w2'], p['b2'] = lin(keys[1], c1, c2)
    w3, p['b3'] = lin(keys[2], 2 * c2, c3)
    p['w3g'], p['w3p'] = w3[:c2], w3[c2:]               # split of concat weight
    p['w4'], p['b4'] = lin(keys[3], c3, feature_size)
    p['wf1'], p['bf1'] = lin(keys[4], feature_size, dec_hidden)
    p['wf2'], p['bf2'] = lin(keys[5], dec_hidden, dec_hidden)
    p['wf3'], p['bf3'] = lin(keys[6], dec_hidden, num_coarse * 3)
    wc1, p['bc1'] = lin(keys[7], feature_size + 2 + 3, fold_hidden)
    p['wc1f'] = wc1[:feature_size]
    p['wc1g'] = wc1[feature_size:feature_size + 2]
    p['wc1c'] = wc1[feature_size + 2:]
    p['wc2'], p['bc2'] = lin(keys[8], fold_hidden, fold_hidden)
    p['wc3'], p['bc3'] = lin(keys[9], fold_hidden, 3)
    return p


# ----------------------------------------------------------------------------
# Forward wrapper: weight plumbing (lane padding, per-coordinate head split),
# static folding-seed constants, single fused pallas_call.
# ----------------------------------------------------------------------------
def pcn_forward(params, x, *, feature_size, num_coarse, grid_size, grid_scale):
    B, N, _ = x.shape
    S = grid_size * grid_size
    num_fine = num_coarse * S
    p = params

    # lane-pad the narrow first hidden layer (e.g. 64 -> 128): exact zeros, so
    # numerically identical.
    c1 = p['w1'].shape[1]
    c1p = max(128, ((c1 + 127) // 128) * 128)
    w1p = jnp.pad(p['w1'], ((0, 0), (0, c1p - c1)))
    b1p = jnp.pad(p['b1'], ((0, 0), (0, c1p - c1)))
    w2p = jnp.pad(p['w2'], ((0, c1p - c1), (0, 0)))

    # split the coarse head's last layer into x/y/z column blocks
    wf3x, wf3y, wf3z = (p['wf3'][:, d::3] for d in range(3))
    bf3x, bf3y, bf3z = (p['bf3'][:, d::3] for d in range(3))

    # folding seed as static python scalars (baked into the kernel)
    g = np.linspace(-grid_scale, grid_scale, grid_size, dtype=np.float32)
    seed_vals = tuple((float(g[j]), float(g[i]))
                      for i in range(grid_size) for j in range(grid_size))

    weights = [w1p, b1p, w2p, p['b2'],
               p['w3g'], p['w3p'], p['b3'], p['w4'], p['b4'],
               p['wf1'], p['bf1'], p['wf2'], p['bf2'],
               wf3x, wf3y, wf3z, bf3x, bf3y, bf3z,
               p['wc1f'], p['wc1g'], p['wc1c'], p['bc1'],
               p['wc2'], p['bc2'], p['wc3'], p['bc3']]

    def full(arr):
        nd = arr.ndim
        return pl.BlockSpec(arr.shape, lambda b, _nd=nd: (0,) * _nd)

    kernel = functools.partial(_pcn_fused_kernel, seed_vals=seed_vals)

    coarse, fine_buf = pl.pallas_call(
        kernel,
        grid=(B,),
        in_specs=[pl.BlockSpec((None, N, 3), lambda b: (b, 0, 0))]
                 + [full(w) for w in weights],
        out_specs=[pl.BlockSpec((None, num_coarse, 3), lambda b: (b, 0, 0)),
                   pl.BlockSpec((None, num_coarse, 3 * S), lambda b: (b, 0, 0))],
        out_shape=[jax.ShapeDtypeStruct((B, num_coarse, 3), jnp.float32),
                   jax.ShapeDtypeStruct((B, num_coarse, 3 * S), jnp.float32)],
        compiler_params=pltpu.CompilerParams(dimension_semantics=("parallel",)),
    )(x, *weights)

    # (B, NC, S*3) row-major == (B, NC*S, 3) with fine index f = c*S + s
    fine = fine_buf.reshape(B, num_fine, 3)
    return coarse, fine


# ----------------------------------------------------------------------------
# Pure-JAX reference (for correctness check)
# ----------------------------------------------------------------------------
def pcn_reference(params, x, *, feature_size, num_coarse, grid_size, grid_scale):
    p = params
    with jax.default_matmul_precision('float32'):
        f1 = jax.nn.relu(x @ p['w1'] + p['b1'])
        f2 = f1 @ p['w2'] + p['b2']
        g = jnp.max(f2, axis=1, keepdims=True)
        f3 = jax.nn.relu(f2 @ p['w3p'] + g @ p['w3g'] + p['b3'])
        f4 = f3 @ p['w4'] + p['b4']
        feat = jnp.max(f4, axis=1)                                   # (B, F)
        h1 = jax.nn.relu(feat @ p['wf1'] + p['bf1'])
        h2 = jax.nn.relu(h1 @ p['wf2'] + p['bf2'])
        coarse = (h2 @ p['wf3'] + p['bf3']).reshape(x.shape[0], num_coarse, 3)

        S = grid_size * grid_size
        gl = jnp.linspace(-grid_scale, grid_scale, grid_size, dtype=jnp.float32)
        gy, gx = jnp.meshgrid(gl, gl, indexing='ij')
        seed = jnp.tile(jnp.stack([gx.ravel(), gy.ravel()], -1), (num_coarse, 1))
        center = jnp.repeat(coarse, S, axis=1)

        t = (seed[None] @ p['wc1g'] + center @ p['wc1c']
             + (feat @ p['wc1f'])[:, None, :] + p['bc1'])
        h1f = jax.nn.relu(t)
        h2f = jax.nn.relu(h1f @ p['wc2'] + p['bc2'])
        fine = h2f @ p['wc3'] + p['bc3'] + center
    return coarse, fine


if __name__ == "__main__":
    # small, TPU-friendly shapes consistent with the module's interface
    B, N = 2, 128
    feature_size = 256
    num_coarse = 64
    grid_size = 2
    grid_scale = 0.05

    key = jax.random.PRNGKey(0)
    k_param, k_x = jax.random.split(key)
    params = init_pcn_params(k_param, feature_size=feature_size, num_coarse=num_coarse)
    x = jax.random.normal(k_x, (B, N, 3), dtype=jnp.float32) * 0.5   # partial point cloud

    fwd = jax.jit(functools.partial(
        pcn_forward, feature_size=feature_size, num_coarse=num_coarse,
        grid_size=grid_size, grid_scale=grid_scale))

    coarse, fine = fwd(params, x)
    jax.block_until_ready((coarse, fine))

    coarse_ref, fine_ref = pcn_reference(
        params, x, feature_size=feature_size, num_coarse=num_coarse,
        grid_size=grid_size, grid_scale=grid_scale)

    assert coarse.shape == (B, num_coarse, 3)
    assert fine.shape == (B, num_coarse * grid_size * grid_size, 3)
    assert jnp.allclose(coarse, coarse_ref, atol=1e-3, rtol=1e-3)
    assert jnp.allclose(fine, fine_ref, atol=1e-3, rtol=1e-3)

    print("KERNEL_OK")
</pallas_src>

<mosaic_0001>
module attributes {stable_mosaic.version = 11 : i64} {
  func.func @_pcn_fused_kernel(%arg0: i32, %arg1: memref<1x128x3xf32, #tpu.memory_space<vmem>>, %arg2: memref<3x128xf32, #tpu.memory_space<vmem>>, %arg3: memref<1x128xf32, #tpu.memory_space<vmem>>, %arg4: memref<128x128xf32, #tpu.memory_space<vmem>>, %arg5: memref<1x128xf32, #tpu.memory_space<vmem>>, %arg6: memref<128x128xf32, #tpu.memory_space<vmem>>, %arg7: memref<128x128xf32, #tpu.memory_space<vmem>>, %arg8: memref<1x128xf32, #tpu.memory_space<vmem>>, %arg9: memref<128x256xf32, #tpu.memory_space<vmem>>, %arg10: memref<1x256xf32, #tpu.memory_space<vmem>>, %arg11: memref<256x256xf32, #tpu.memory_space<vmem>>, %arg12: memref<1x256xf32, #tpu.memory_space<vmem>>, %arg13: memref<256x256xf32, #tpu.memory_space<vmem>>, %arg14: memref<1x256xf32, #tpu.memory_space<vmem>>, %arg15: memref<256x64xf32, #tpu.memory_space<vmem>>, %arg16: memref<256x64xf32, #tpu.memory_space<vmem>>, %arg17: memref<256x64xf32, #tpu.memory_space<vmem>>, %arg18: memref<1x64xf32, #tpu.memory_space<vmem>>, %arg19: memref<1x64xf32, #tpu.memory_space<vmem>>, %arg20: memref<1x64xf32, #tpu.memory_space<vmem>>, %arg21: memref<256x128xf32, #tpu.memory_space<vmem>>, %arg22: memref<2x128xf32, #tpu.memory_space<vmem>>, %arg23: memref<3x128xf32, #tpu.memory_space<vmem>>, %arg24: memref<1x128xf32, #tpu.memory_space<vmem>>, %arg25: memref<128x128xf32, #tpu.memory_space<vmem>>, %arg26: memref<1x128xf32, #tpu.memory_space<vmem>>, %arg27: memref<128x3xf32, #tpu.memory_space<vmem>>, %arg28: memref<1x3xf32, #tpu.memory_space<vmem>>, %arg29: memref<1x64x3xf32, #tpu.memory_space<vmem>>, %arg30: memref<1x64x12xf32, #tpu.memory_space<vmem>>) attributes {dimension_semantics = [#tpu.dimension_semantics<parallel>], iteration_bounds = array<i64: 2>, scalar_prefetch = 0 : i64, scratch_operands = 0 : i64, tpu.core_type = #tpu.core_type<tc>, window_params = [{transform_indices = @transform_0, window_bounds = array<i64: 1, 128, 3>}, {pipeline_mode = #tpu.pipeline_mode<synchronous>, transform_indices = @transform_1, window_bounds = array<i64: 3, 128>}, {pipeline_mode = #tpu.pipeline_mode<synchronous>, transform_indices = @transform_2, window_bounds = array<i64: 1, 128>}, {pipeline_mode = #tpu.pipeline_mode<synchronous>, transform_indices = @transform_3, window_bounds = array<i64: 128, 128>}, {pipeline_mode = #tpu.pipeline_mode<synchronous>, transform_indices = @transform_4, window_bounds = array<i64: 1, 128>}, {pipeline_mode = #tpu.pipeline_mode<synchronous>, transform_indices = @transform_5, window_bounds = array<i64: 128, 128>}, {pipeline_mode = #tpu.pipeline_mode<synchronous>, transform_indices = @transform_6, window_bounds = array<i64: 128, 128>}, {pipeline_mode = #tpu.pipeline_mode<synchronous>, transform_indices = @transform_7, window_bounds = array<i64: 1, 128>}, {pipeline_mode = #tpu.pipeline_mode<synchronous>, transform_indices = @transform_8, window_bounds = array<i64: 128, 256>}, {pipeline_mode = #tpu.pipeline_mode<synchronous>, transform_indices = @transform_9, window_bounds = array<i64: 1, 256>}, {pipeline_mode = #tpu.pipeline_mode<synchronous>, transform_indices = @transform_10, window_bounds = array<i64: 256, 256>}, {pipeline_mode = #tpu.pipeline_mode<synchronous>, transform_indices = @transform_11, window_bounds = array<i64: 1, 256>}, {pipeline_mode = #tpu.pipeline_mode<synchronous>, transform_indices = @transform_12, window_bounds = array<i64: 256, 256>}, {pipeline_mode = #tpu.pipeline_mode<synchronous>, transform_indices = @transform_13, window_bounds = array<i64: 1, 256>}, {pipeline_mode = #tpu.pipeline_mode<synchronous>, transform_indices = @transform_14, window_bounds = array<i64: 256, 64>}, {pipeline_mode = #tpu.pipeline_mode<synchronous>, transform_indices = @transform_15, window_bounds = array<i64: 256, 64>}, {pipeline_mode = #tpu.pipeline_mode<synchronous>, transform_indices = @transform_16, window_bounds = array<i64: 256, 64>}, {pipeline_mode = #tpu.pipeline_mode<synchronous>, transform_indices = @transform_17, window_bounds = array<i64: 1, 64>}, {pipeline_mode = #tpu.pipeline_mode<synchronous>, transform_indices = @transform_18, window_bounds = array<i64: 1, 64>}, {pipeline_mode = #tpu.pipeline_mode<synchronous>, transform_indices = @transform_19, window_bounds = array<i64: 1, 64>}, {pipeline_mode = #tpu.pipeline_mode<synchronous>, transform_indices = @transform_20, window_bounds = array<i64: 256, 128>}, {pipeline_mode = #tpu.pipeline_mode<synchronous>, transform_indices = @transform_21, window_bounds = array<i64: 2, 128>}, {pipeline_mode = #tpu.pipeline_mode<synchronous>, transform_indices = @transform_22, window_bounds = array<i64: 3, 128>}, {pipeline_mode = #tpu.pipeline_mode<synchronous>, transform_indices = @transform_23, window_bounds = array<i64: 1, 128>}, {pipeline_mode = #tpu.pipeline_mode<synchronous>, transform_indices = @transform_24, window_bounds = array<i64: 128, 128>}, {pipeline_mode = #tpu.pipeline_mode<synchronous>, transform_indices = @transform_25, window_bounds = array<i64: 1, 128>}, {pipeline_mode = #tpu.pipeline_mode<synchronous>, transform_indices = @transform_26, window_bounds = array<i64: 128, 3>}, {pipeline_mode = #tpu.pipeline_mode<synchronous>, transform_indices = @transform_27, window_bounds = array<i64: 1, 3>}, {transform_indices = @transform_28, window_bounds = array<i64: 1, 64, 3>}, {transform_indices = @transform_29, window_bounds = array<i64: 1, 64, 12>}]} {
    %c0 = arith.constant 0 : index
    %c0_0 = arith.constant 0 : index
    %c0_1 = arith.constant 0 : index
    %0 = vector.load %arg1[%c0, %c0_0, %c0_1] : memref<1x128x3xf32, #tpu.memory_space<vmem>>, vector<1x128x3xf32>
    %1 = vector.shape_cast %0 : vector<1x128x3xf32> to vector<128x3xf32>
    %c0_2 = arith.constant 0 : index
    %c0_3 = arith.constant 0 : index
    %2 = vector.load %arg2[%c0_2, %c0_3] : memref<3x128xf32, #tpu.memory_space<vmem>>, vector<3x128xf32>
    %3 = vector.extract_strided_slice %1 {offsets = [0, 0], sizes = [128, 1], strides = [1, 1]} : vector<128x3xf32> to vector<128x1xf32>
    %4 = vector.extract_strided_slice %2 {offsets = [0, 0], sizes = [1, 128], strides = [1, 1]} : vector<3x128xf32> to vector<1x128xf32>
    %5 = vector.broadcast %3 : vector<128x1xf32> to vector<128x128xf32>
    %6 = vector.broadcast %4 : vector<1x128xf32> to vector<128x128xf32>
    %7 = arith.mulf %5, %6 : vector<128x128xf32>
    %8 = vector.extract_strided_slice %1 {offsets = [0, 1], sizes = [128, 1], strides = [1, 1]} : vector<128x3xf32> to vector<128x1xf32>
    %9 = vector.extract_strided_slice %2 {offsets = [1, 0], sizes = [1, 128], strides = [1, 1]} : vector<3x128xf32> to vector<1x128xf32>
    %10 = vector.broadcast %8 : vector<128x1xf32> to vector<128x128xf32>
    %11 = vector.broadcast %9 : vector<1x128xf32> to vector<128x128xf32>
    %12 = arith.mulf %10, %11 : vector<128x128xf32>
    %13 = arith.addf %7, %12 : vector<128x128xf32>
    %14 = vector.extract_strided_slice %1 {offsets = [0, 2], sizes = [128, 1], strides = [1, 1]} : vector<128x3xf32> to vector<128x1xf32>
    %15 = vector.extract_strided_slice %2 {offsets = [2, 0], sizes = [1, 128], strides = [1, 1]} : vector<3x128xf32> to vector<1x128xf32>
    %16 = vector.broadcast %14 : vector<128x1xf32> to vector<128x128xf32>
    %17 = vector.broadcast %15 : vector<1x128xf32> to vector<128x128xf32>
    %18 = arith.mulf %16, %17 : vector<128x128xf32>
    %19 = arith.addf %13, %18 : vector<128x128xf32>
    %c0_4 = arith.constant 0 : index
    %c0_5 = arith.constant 0 : index
    %20 = vector.load %arg3[%c0_4, %c0_5] : memref<1x128xf32, #tpu.memory_space<vmem>>, vector<1x128xf32>
    %21 = vector.broadcast %20 : vector<1x128xf32> to vector<128x128xf32>
    %22 = arith.addf %19, %21 : vector<128x128xf32>
    %cst = arith.constant 0.000000e+00 : f32
    %23 = vector.broadcast %cst : f32 to vector<128x128xf32>
    %24 = arith.maximumf %22, %23 : vector<128x128xf32>
    %c0_6 = arith.constant 0 : index
    %c0_7 = arith.constant 0 : index
    %25 = vector.load %arg4[%c0_6, %c0_7] : memref<128x128xf32, #tpu.memory_space<vmem>>, vector<128x128xf32>
    %cst_8 = arith.constant dense<0.000000e+00> : vector<128x128xf32>
    %26 = tpu.matmul %24, %25, %cst_8 {dimension_numbers = #tpu.dot_dimension_numbers<[1], [0], [0], [1], [0, 0, 1, 1], [], []>} : vector<128x128xf32>, vector<128x128xf32>, vector<128x128xf32> -> vector<128x128xf32>
    %c0_9 = arith.constant 0 : index
    %c0_10 = arith.constant 0 : index
    %27 = vector.load %arg5[%c0_9, %c0_10] : memref<1x128xf32, #tpu.memory_space<vmem>>, vector<1x128xf32>
    %28 = vector.broadcast %27 : vector<1x128xf32> to vector<128x128xf32>
    %29 = arith.addf %26, %28 : vector<128x128xf32>
    %cst_11 = arith.constant dense<0xFF800000> : vector<128xf32>
    %30 = vector.multi_reduction <maximumf>, %29, %cst_11 [0] : vector<128x128xf32> to vector<128xf32>
    %31 = vector.shape_cast %30 : vector<128xf32> to vector<1x128xf32>
    %c0_12 = arith.constant 0 : index
    %c0_13 = arith.constant 0 : index
    %32 = vector.load %arg7[%c0_12, %c0_13] : memref<128x128xf32, #tpu.memory_space<vmem>>, vector<128x128xf32>
    %cst_14 = arith.constant dense<0.000000e+00> : vector<128x128xf32>
    %33 = tpu.matmul %29, %32, %cst_14 {dimension_numbers = #tpu.dot_dimension_numbers<[1], [0], [0], [1], [0, 0, 1, 1], [], []>} : vector<128x128xf32>, vector<128x128xf32>, vector<128x128xf32> -> vector<128x128xf32>
    %c0_15 = arith.constant 0 : index
    %c0_16 = arith.constant 0 : index
    %34 = vector.load %arg6[%c0_15, %c0_16] : memref<128x128xf32, #tpu.memory_space<vmem>>, vector<128x128xf32>
    %cst_17 = arith.constant dense<0.000000e+00> : vector<1x128xf32>
    %35 = tpu.matmul %31, %34, %cst_17 {dimension_numbers = #tpu.dot_dimension_numbers<[1], [0], [0], [1], [0, 0, 1, 1], [], []>} : vector<1x128xf32>, vector<128x128xf32>, vector<1x128xf32> -> vector<1x128xf32>
    %36 = vector.broadcast %35 : vector<1x128xf32> to vector<128x128xf32>
    %37 = arith.addf %33, %36 : vector<128x128xf32>
    %c0_18 = arith.constant 0 : index
    %c0_19 = arith.constant 0 : index
    %38 = vector.load %arg8[%c0_18, %c0_19] : memref<1x128xf32, #tpu.memory_space<vmem>>, vector<1x128xf32>
    %39 = vector.broadcast %38 : vector<1x128xf32> to vector<128x128xf32>
    %40 = arith.addf %37, %39 : vector<128x128xf32>
    %cst_20 = arith.constant 0.000000e+00 : f32
    %41 = vector.broadcast %cst_20 : f32 to vector<128x128xf32>
    %42 = arith.maximumf %40, %41 : vector<128x128xf32>
    %c0_21 = arith.constant 0 : index
    %c0_22 = arith.constant 0 : index
    %43 = vector.load %arg9[%c0_21, %c0_22] : memref<128x256xf32, #tpu.memory_space<vmem>>, vector<128x256xf32>
    %cst_23 = arith.constant dense<0.000000e+00> : vector<128x256xf32>
    %44 = tpu.matmul %42, %43, %cst_23 {dimension_numbers = #tpu.dot_dimension_numbers<[1], [0], [0], [1], [0, 0, 1, 1], [], []>} : vector<128x128xf32>, vector<128x256xf32>, vector<128x256xf32> -> vector<128x256xf32>
    %c0_24 = arith.constant 0 : index
    %c0_25 = arith.constant 0 : index
    %45 = vector.load %arg10[%c0_24, %c0_25] : memref<1x256xf32, #tpu.memory_space<vmem>>, vector<1x256xf32>
    %46 = vector.broadcast %45 : vector<1x256xf32> to vector<128x256xf32>
    %47 = arith.addf %44, %46 : vector<128x256xf32>
    %cst_26 = arith.constant dense<0xFF800000> : vector<256xf32>
    %48 = vector.multi_reduction <maximumf>, %47, %cst_26 [0] : vector<128x256xf32> to vector<256xf32>
    %49 = vector.shape_cast %48 : vector<256xf32> to vector<1x256xf32>
    %c0_27 = arith.constant 0 : index
    %c0_28 = arith.constant 0 : index
    %50 = vector.load %arg11[%c0_27, %c0_28] : memref<256x256xf32, #tpu.memory_space<vmem>>, vector<256x256xf32>
    %cst_29 = arith.constant dense<0.000000e+00> : vector<1x256xf32>
    %51 = tpu.matmul %49, %50, %cst_29 {dimension_numbers = #tpu.dot_dimension_numbers<[1], [0], [0], [1], [0, 0, 1, 1], [], []>} : vector<1x256xf32>, vector<256x256xf32>, vector<1x256xf32> -> vector<1x256xf32>
    %c0_30 = arith.constant 0 : index
    %c0_31 = arith.constant 0 : index
    %52 = vector.load %arg12[%c0_30, %c0_31] : memref<1x256xf32, #tpu.memory_space<vmem>>, vector<1x256xf32>
    %53 = arith.addf %51, %52 : vector<1x256xf32>
    %cst_32 = arith.constant 0.000000e+00 : f32
    %54 = vector.broadcast %cst_32 : f32 to vector<1x256xf32>
    %55 = arith.maximumf %53, %54 : vector<1x256xf32>
    %c0_33 = arith.constant 0 : index
    %c0_34 = arith.constant 0 : index
    %56 = vector.load %arg13[%c0_33, %c0_34] : memref<256x256xf32, #tpu.memory_space<vmem>>, vector<256x256xf32>
    %cst_35 = arith.constant dense<0.000000e+00> : vector<1x256xf32>
    %57 = tpu.matmul %55, %56, %cst_35 {dimension_numbers = #tpu.dot_dimension_numbers<[1], [0], [0], [1], [0, 0, 1, 1], [], []>} : vector<1x256xf32>, vector<256x256xf32>, vector<1x256xf32> -> vector<1x256xf32>
    %c0_36 = arith.constant 0 : index
    %c0_37 = arith.constant 0 : index
    %58 = vector.load %arg14[%c0_36, %c0_37] : memref<1x256xf32, #tpu.memory_space<vmem>>, vector<1x256xf32>
    %59 = arith.addf %57, %58 : vector<1x256xf32>
    %cst_38 = arith.constant 0.000000e+00 : f32
    %60 = vector.broadcast %cst_38 : f32 to vector<1x256xf32>
    %61 = arith.maximumf %59, %60 : vector<1x256xf32>
    %c0_39 = arith.constant 0 : index
    %c0_40 = arith.constant 0 : index
    %62 = vector.load %arg15[%c0_39, %c0_40] : memref<256x64xf32, #tpu.memory_space<vmem>>, vector<256x64xf32>
    %cst_41 = arith.constant dense<0.000000e+00> : vector<1x64xf32>
    %63 = tpu.matmul %61, %62, %cst_41 {dimension_numbers = #tpu.dot_dimension_numbers<[1], [0], [0], [1], [0, 0, 1, 1], [], []>} : vector<1x256xf32>, vector<256x64xf32>, vector<1x64xf32> -> vector<1x64xf32>
    %c0_42 = arith.constant 0 : index
    %c0_43 = arith.constant 0 : index
    %64 = vector.load %arg18[%c0_42, %c0_43] : memref<1x64xf32, #tpu.memory_space<vmem>>, vector<1x64xf32>
    %65 = arith.addf %63, %64 : vector<1x64xf32>
    %c0_44 = arith.constant 0 : index
    %c0_45 = arith.constant 0 : index
    %66 = vector.load %arg16[%c0_44, %c0_45] : memref<256x64xf32, #tpu.memory_space<vmem>>, vector<256x64xf32>
    %cst_46 = arith.constant dense<0.000000e+00> : vector<1x64xf32>
    %67 = tpu.matmul %61, %66, %cst_46 {dimension_numbers = #tpu.dot_dimension_numbers<[1], [0], [0], [1], [0, 0, 1, 1], [], []>} : vector<1x256xf32>, vector<256x64xf32>, vector<1x64xf32> -> vector<1x64xf32>
    %c0_47 = arith.constant 0 : index
    %c0_48 = arith.constant 0 : index
    %68 = vector.load %arg19[%c0_47, %c0_48] : memref<1x64xf32, #tpu.memory_space<vmem>>, vector<1x64xf32>
    %69 = arith.addf %67, %68 : vector<1x64xf32>
    %c0_49 = arith.constant 0 : index
    %c0_50 = arith.constant 0 : index
    %70 = vector.load %arg17[%c0_49, %c0_50] : memref<256x64xf32, #tpu.memory_space<vmem>>, vector<256x64xf32>
    %cst_51 = arith.constant dense<0.000000e+00> : vector<1x64xf32>
    %71 = tpu.matmul %61, %70, %cst_51 {dimension_numbers = #tpu.dot_dimension_numbers<[1], [0], [0], [1], [0, 0, 1, 1], [], []>} : vector<1x256xf32>, vector<256x64xf32>, vector<1x64xf32> -> vector<1x64xf32>
    %c0_52 = arith.constant 0 : index
    %c0_53 = arith.constant 0 : index
    %72 = vector.load %arg20[%c0_52, %c0_53] : memref<1x64xf32, #tpu.memory_space<vmem>>, vector<1x64xf32>
    %73 = arith.addf %71, %72 : vector<1x64xf32>
    %74 = tpu.iota {dimensions = array<i32: 0>} : vector<64x64xi32>
    %75 = tpu.iota {dimensions = array<i32: 1>} : vector<64x64xi32>
    %76 = arith.cmpi eq, %74, %75 : vector<64x64xi32>
    %cst_54 = arith.constant 0.000000e+00 : f32
    %77 = vector.shape_cast %65 : vector<1x64xf32> to vector<1x64xf32>
    %78 = vector.broadcast %77 : vector<1x64xf32> to vector<64x64xf32>
    %79 = vector.broadcast %cst_54 : f32 to vector<64x64xf32>
    %80 = arith.select %76, %78, %79 : vector<64x64xi1>, vector<64x64xf32>
    %cst_55 = arith.constant dense<0.000000e+00> : vector<64xf32>
    %81 = vector.multi_reduction <add>, %80, %cst_55 [1] : vector<64x64xf32> to vector<64xf32>
    %82 = vector.shape_cast %81 : vector<64xf32> to vector<64x1xf32>
    %cst_56 = arith.constant 0.000000e+00 : f32
    %83 = vector.shape_cast %69 : vector<1x64xf32> to vector<1x64xf32>
    %84 = vector.broadcast %83 : vector<1x64xf32> to vector<64x64xf32>
    %85 = vector.broadcast %cst_56 : f32 to vector<64x64xf32>
    %86 = arith.select %76, %84, %85 : vector<64x64xi1>, vector<64x64xf32>
    %cst_57 = arith.constant dense<0.000000e+00> : vector<64xf32>
    %87 = vector.multi_reduction <add>, %86, %cst_57 [1] : vector<64x64xf32> to vector<64xf32>
    %88 = vector.shape_cast %87 : vector<64xf32> to vector<64x1xf32>
    %cst_58 = arith.constant 0.000000e+00 : f32
    %89 = vector.shape_cast %73 : vector<1x64xf32> to vector<1x64xf32>
    %90 = vector.broadcast %89 : vector<1x64xf32> to vector<64x64xf32>
    %91 = vector.broadcast %cst_58 : f32 to vector<64x64xf32>
    %92 = arith.select %76, %90, %91 : vector<64x64xi1>, vector<64x64xf32>
    %cst_59 = arith.constant dense<0.000000e+00> : vector<64xf32>
    %93 = vector.multi_reduction <add>, %92, %cst_59 [1] : vector<64x64xf32> to vector<64xf32>
    %94 = vector.shape_cast %93 : vector<64xf32> to vector<64x1xf32>
    %95 = tpu.iota {dimensions = array<i32: 1>} : vector<1x3xi32>
    %c0_i32 = arith.constant 0 : i32
    %96 = vector.broadcast %c0_i32 : i32 to vector<1x3xi32>
    %97 = arith.cmpi eq, %95, %96 : vector<1x3xi32>
    %98 = arith.extui %97 : vector<1x3xi1> to vector<1x3xi32>
    %99 = arith.sitofp %98 : vector<1x3xi32> to vector<1x3xf32>
    %c1_i32 = arith.constant 1 : i32
    %100 = vector.broadcast %c1_i32 : i32 to vector<1x3xi32>
    %101 = arith.cmpi eq, %95, %100 : vector<1x3xi32>
    %102 = arith.extui %101 : vector<1x3xi1> to vector<1x3xi32>
    %103 = arith.sitofp %102 : vector<1x3xi32> to vector<1x3xf32>
    %c2_i32 = arith.constant 2 : i32
    %104 = vector.broadcast %c2_i32 : i32 to vector<1x3xi32>
    %105 = arith.cmpi eq, %95, %104 : vector<1x3xi32>
    %106 = arith.extui %105 : vector<1x3xi1> to vector<1x3xi32>
    %107 = arith.sitofp %106 : vector<1x3xi32> to vector<1x3xf32>
    %108 = vector.broadcast %82 : vector<64x1xf32> to vector<64x3xf32>
    %109 = vector.broadcast %99 : vector<1x3xf32> to vector<64x3xf32>
    %110 = arith.mulf %108, %109 : vector<64x3xf32>
    %111 = vector.broadcast %88 : vector<64x1xf32> to vector<64x3xf32>
    %112 = vector.broadcast %103 : vector<1x3xf32> to vector<64x3xf32>
    %113 = arith.mulf %111, %112 : vector<64x3xf32>
    %114 = arith.addf %110, %113 : vector<64x3xf32>
    %115 = vector.broadcast %94 : vector<64x1xf32> to vector<64x3xf32>
    %116 = vector.broadcast %107 : vector<1x3xf32> to vector<64x3xf32>
    %117 = arith.mulf %115, %116 : vector<64x3xf32>
    %118 = arith.addf %114, %117 : vector<64x3xf32>
    %c0_60 = arith.constant 0 : index
    %c0_61 = arith.constant 0 : index
    %c0_62 = arith.constant 0 : index
    %119 = vector.load %arg29[%c0_60, %c0_61, %c0_62] : memref<1x64x3xf32, #tpu.memory_space<vmem>>, vector<1x64x3xf32>
    %120 = vector.shape_cast %119 : vector<1x64x3xf32> to vector<64x3xf32>
    %121 = vector.shape_cast %118 : vector<64x3xf32> to vector<1x64x3xf32>
    tpu.vector_store %arg29[%c0_60, %c0_61, %c0_62], %121 {strides = array<i32>} : memref<1x64x3xf32, #tpu.memory_space<vmem>>, vector<1x64x3xf32>,
    %c0_63 = arith.constant 0 : index
    %c0_64 = arith.constant 0 : index
    %122 = vector.load %arg23[%c0_63, %c0_64] : memref<3x128xf32, #tpu.memory_space<vmem>>, vector<3x128xf32>
    %c0_65 = arith.constant 0 : index
    %c0_66 = arith.constant 0 : index
    %123 = vector.load %arg22[%c0_65, %c0_66] : memref<2x128xf32, #tpu.memory_space<vmem>>, vector<2x128xf32>
    %124 = vector.extract_strided_slice %122 {offsets = [0, 0], sizes = [1, 128], strides = [1, 1]} : vector<3x128xf32> to vector<1x128xf32>
    %125 = vector.broadcast %82 : vector<64x1xf32> to vector<64x128xf32>
    %126 = vector.broadcast %124 : vector<1x128xf32> to vector<64x128xf32>
    %127 = arith.mulf %125, %126 : vector<64x128xf32>
    %128 = vector.extract_strided_slice %122 {offsets = [1, 0], sizes = [1, 128], strides = [1, 1]} : vector<3x128xf32> to vector<1x128xf32>
    %129 = vector.broadcast %88 : vector<64x1xf32> to vector<64x128xf32>
    %130 = vector.broadcast %128 : vector<1x128xf32> to vector<64x128xf32>
    %131 = arith.mulf %129, %130 : vector<64x128xf32>
    %132 = arith.addf %127, %131 : vector<64x128xf32>
    %133 = vector.extract_strided_slice %122 {offsets = [2, 0], sizes = [1, 128], strides = [1, 1]} : vector<3x128xf32> to vector<1x128xf32>
    %134 = vector.broadcast %94 : vector<64x1xf32> to vector<64x128xf32>
    %135 = vector.broadcast %133 : vector<1x128xf32> to vector<64x128xf32>
    %136 = arith.mulf %134, %135 : vector<64x128xf32>
    %137 = arith.addf %132, %136 : vector<64x128xf32>
    %c0_67 = arith.constant 0 : index
    %c0_68 = arith.constant 0 : index
    %138 = vector.load %arg21[%c0_67, %c0_68] : memref<256x128xf32, #tpu.memory_space<vmem>>, vector<256x128xf32>
    %cst_69 = arith.constant dense<0.000000e+00> : vector<1x128xf32>
    %139 = tpu.matmul %49, %138, %cst_69 {dimension_numbers = #tpu.dot_dimension_numbers<[1], [0], [0], [1], [0, 0, 1, 1], [], []>} : vector<1x256xf32>, vector<256x128xf32>, vector<1x128xf32> -> vector<1x128xf32>
    %c0_70 = arith.constant 0 : index
    %c0_71 = arith.constant 0 : index
    %140 = vector.load %arg24[%c0_70, %c0_71] : memref<1x128xf32, #tpu.memory_space<vmem>>, vector<1x128xf32>
    %141 = arith.addf %139, %140 : vector<1x128xf32>
    %142 = vector.extract_strided_slice %123 {offsets = [0, 0], sizes = [1, 128], strides = [1, 1]} : vector<2x128xf32> to vector<1x128xf32>
    %cst_72 = arith.constant -5.000000e-02 : f32
    %143 = vector.broadcast %cst_72 : f32 to vector<1x128xf32>
    %144 = arith.mulf %143, %142 : vector<1x128xf32>
    %145 = vector.extract_strided_slice %123 {offsets = [1, 0], sizes = [1, 128], strides = [1, 1]} : vector<2x128xf32> to vector<1x128xf32>
    %cst_73 = arith.constant -5.000000e-02 : f32
    %146 = vector.broadcast %cst_73 : f32 to vector<1x128xf32>
    %147 = arith.mulf %146, %145 : vector<1x128xf32>
    %148 = arith.addf %144, %147 : vector<1x128xf32>
    %149 = vector.broadcast %141 : vector<1x128xf32> to vector<64x128xf32>
    %150 = arith.addf %137, %149 : vector<64x128xf32>
    %151 = vector.broadcast %148 : vector<1x128xf32> to vector<64x128xf32>
    %152 = arith.addf %150, %151 : vector<64x128xf32>
    %cst_74 = arith.constant 0.000000e+00 : f32
    %153 = vector.broadcast %cst_74 : f32 to vector<64x128xf32>
    %154 = arith.maximumf %152, %153 : vector<64x128xf32>
    %c0_75 = arith.constant 0 : index
    %c0_76 = arith.constant 0 : index
    %155 = vector.load %arg25[%c0_75, %c0_76] : memref<128x128xf32, #tpu.memory_space<vmem>>, vector<128x128xf32>
    %cst_77 = arith.constant dense<0.000000e+00> : vector<64x128xf32>
    %156 = tpu.matmul %154, %155, %cst_77 {dimension_numbers = #tpu.dot_dimension_numbers<[1], [0], [0], [1], [0, 0, 1, 1], [], []>} : vector<64x128xf32>, vector<128x128xf32>, vector<64x128xf32> -> vector<64x128xf32>
    %c0_78 = arith.constant 0 : index
    %c0_79 = arith.constant 0 : index
    %157 = vector.load %arg26[%c0_78, %c0_79] : memref<1x128xf32, #tpu.memory_space<vmem>>, vector<1x128xf32>
    %158 = vector.broadcast %157 : vector<1x128xf32> to vector<64x128xf32>
    %159 = arith.addf %156, %158 : vector<64x128xf32>
    %cst_80 = arith.constant 0.000000e+00 : f32
    %160 = vector.broadcast %cst_80 : f32 to vector<64x128xf32>
    %161 = arith.maximumf %159, %160 : vector<64x128xf32>
    %c0_81 = arith.constant 0 : index
    %c0_82 = arith.constant 0 : index
    %162 = vector.load %arg27[%c0_81, %c0_82] : memref<128x3xf32, #tpu.memory_space<vmem>>, vector<128x3xf32>
    %cst_83 = arith.constant dense<0.000000e+00> : vector<64x3xf32>
    %163 = tpu.matmul %161, %162, %cst_83 {dimension_numbers = #tpu.dot_dimension_numbers<[1], [0], [0], [1], [0, 0, 1, 1], [], []>} : vector<64x128xf32>, vector<128x3xf32>, vector<64x3xf32> -> vector<64x3xf32>
    %c0_84 = arith.constant 0 : index
    %c0_85 = arith.constant 0 : index
    %164 = vector.load %arg28[%c0_84, %c0_85] : memref<1x3xf32, #tpu.memory_space<vmem>>, vector<1x3xf32>
    %165 = vector.broadcast %164 : vector<1x3xf32> to vector<64x3xf32>
    %166 = arith.addf %163, %165 : vector<64x3xf32>
    %167 = arith.addf %166, %118 : vector<64x3xf32>
    %c0_86 = arith.constant 0 : index
    %c0_87 = arith.constant 0 : index
    %c0_88 = arith.constant 0 : index
    %168 = vector.load %arg30[%c0_86, %c0_87, %c0_88] : memref<1x64x12xf32, #tpu.memory_space<vmem>>, vector<1x64x3xf32>
    %169 = vector.shape_cast %168 : vector<1x64x3xf32> to vector<64x3xf32>
    %170 = vector.shape_cast %167 : vector<64x3xf32> to vector<1x64x3xf32>
    tpu.vector_store %arg30[%c0_86, %c0_87, %c0_88], %170 {strides = array<i32>} : memref<1x64x12xf32, #tpu.memory_space<vmem>>, vector<1x64x3xf32>,
    %171 = vector.extract_strided_slice %123 {offsets = [0, 0], sizes = [1, 128], strides = [1, 1]} : vector<2x128xf32> to vector<1x128xf32>
    %cst_89 = arith.constant 5.000000e-02 : f32
    %172 = vector.broadcast %cst_89 : f32 to vector<1x128xf32>
    %173 = arith.mulf %172, %171 : vector<1x128xf32>
    %174 = vector.extract_strided_slice %123 {offsets = [1, 0], sizes = [1, 128], strides = [1, 1]} : vector<2x128xf32> to vector<1x128xf32>
    %cst_90 = arith.constant -5.000000e-02 : f32
    %175 = vector.broadcast %cst_90 : f32 to vector<1x128xf32>
    %176 = arith.mulf %175, %174 : vector<1x128xf32>
    %177 = arith.addf %173, %176 : vector<1x128xf32>
    %178 = vector.broadcast %141 : vector<1x128xf32> to vector<64x128xf32>
    %179 = arith.addf %137, %178 : vector<64x128xf32>
    %180 = vector.broadcast %177 : vector<1x128xf32> to vector<64x128xf32>
    %181 = arith.addf %179, %180 : vector<64x128xf32>
    %cst_91 = arith.constant 0.000000e+00 : f32
    %182 = vector.broadcast %cst_91 : f32 to vector<64x128xf32>
    %183 = arith.maximumf %181, %182 : vector<64x128xf32>
    %c0_92 = arith.constant 0 : index
    %c0_93 = arith.constant 0 : index
    %184 = vector.load %arg25[%c0_92, %c0_93] : memref<128x128xf32, #tpu.memory_space<vmem>>, vector<128x128xf32>
    %cst_94 = arith.constant dense<0.000000e+00> : vector<64x128xf32>
    %185 = tpu.matmul %183, %184, %cst_94 {dimension_numbers = #tpu.dot_dimension_numbers<[1], [0], [0], [1], [0, 0, 1, 1], [], []>} : vector<64x128xf32>, vector<128x128xf32>, vector<64x128xf32> -> vector<64x128xf32>
    %c0_95 = arith.constant 0 : index
    %c0_96 = arith.constant 0 : index
    %186 = vector.load %arg26[%c0_95, %c0_96] : memref<1x128xf32, #tpu.memory_space<vmem>>, vector<1x128xf32>
    %187 = vector.broadcast %186 : vector<1x128xf32> to vector<64x128xf32>
    %188 = arith.addf %185, %187 : vector<64x128xf32>
    %cst_97 = arith.constant 0.000000e+00 : f32
    %189 = vector.broadcast %cst_97 : f32 to vector<64x128xf32>
    %190 = arith.maximumf %188, %189 : vector<64x128xf32>
    %c0_98 = arith.constant 0 : index
    %c0_99 = arith.constant 0 : index
    %191 = vector.load %arg27[%c0_98, %c0_99] : memref<128x3xf32, #tpu.memory_space<vmem>>, vector<128x3xf32>
    %cst_100 = arith.constant dense<0.000000e+00> : vector<64x3xf32>
    %192 = tpu.matmul %190, %191, %cst_100 {dimension_numbers = #tpu.dot_dimension_numbers<[1], [0], [0], [1], [0, 0, 1, 1], [], []>} : vector<64x128xf32>, vector<128x3xf32>, vector<64x3xf32> -> vector<64x3xf32>
    %c0_101 = arith.constant 0 : index
    %c0_102 = arith.constant 0 : index
    %193 = vector.load %arg28[%c0_101, %c0_102] : memref<1x3xf32, #tpu.memory_space<vmem>>, vector<1x3xf32>
    %194 = vector.broadcast %193 : vector<1x3xf32> to vector<64x3xf32>
    %195 = arith.addf %192, %194 : vector<64x3xf32>
    %196 = arith.addf %195, %118 : vector<64x3xf32>
    %c0_103 = arith.constant 0 : index
    %c0_104 = arith.constant 0 : index
    %c3 = arith.constant 3 : index
    %197 = vector.load %arg30[%c0_103, %c0_104, %c3] : memref<1x64x12xf32, #tpu.memory_space<vmem>>, vector<1x64x3xf32>
    %198 = vector.shape_cast %197 : vector<1x64x3xf32> to vector<64x3xf32>
    %199 = vector.shape_cast %196 : vector<64x3xf32> to vector<1x64x3xf32>
    tpu.vector_store %arg30[%c0_103, %c0_104, %c3], %199 {strides = array<i32>} : memref<1x64x12xf32, #tpu.memory_space<vmem>>, vector<1x64x3xf32>,
    %200 = vector.extract_strided_slice %123 {offsets = [0, 0], sizes = [1, 128], strides = [1, 1]} : vector<2x128xf32> to vector<1x128xf32>
    %cst_105 = arith.constant -5.000000e-02 : f32
    %201 = vector.broadcast %cst_105 : f32 to vector<1x128xf32>
    %202 = arith.mulf %201, %200 : vector<1x128xf32>
    %203 = vector.extract_strided_slice %123 {offsets = [1, 0], sizes = [1, 128], strides = [1, 1]} : vector<2x128xf32> to vector<1x128xf32>
    %cst_106 = arith.constant 5.000000e-02 : f32
    %204 = vector.broadcast %cst_106 : f32 to vector<1x128xf32>
    %205 = arith.mulf %204, %203 : vector<1x128xf32>
    %206 = arith.addf %202, %205 : vector<1x128xf32>
    %207 = vector.broadcast %141 : vector<1x128xf32> to vector<64x128xf32>
    %208 = arith.addf %137, %207 : vector<64x128xf32>
    %209 = vector.broadcast %206 : vector<1x128xf32> to vector<64x128xf32>
    %210 = arith.addf %208, %209 : vector<64x128xf32>
    %cst_107 = arith.constant 0.000000e+00 : f32
    %211 = vector.broadcast %cst_107 : f32 to vector<64x128xf32>
    %212 = arith.maximumf %210, %211 : vector<64x128xf32>
    %c0_108 = arith.constant 0 : index
    %c0_109 = arith.constant 0 : index
    %213 = vector.load %arg25[%c0_108, %c0_109] : memref<128x128xf32, #tpu.memory_space<vmem>>, vector<128x128xf32>
    %cst_110 = arith.constant dense<0.000000e+00> : vector<64x128xf32>
    %214 = tpu.matmul %212, %213, %cst_110 {dimension_numbers = #tpu.dot_dimension_numbers<[1], [0], [0], [1], [0, 0, 1, 1], [], []>} : vector<64x128xf32>, vector<128x128xf32>, vector<64x128xf32> -> vector<64x128xf32>
    %c0_111 = arith.constant 0 : index
    %c0_112 = arith.constant 0 : index
    %215 = vector.load %arg26[%c0_111, %c0_112] : memref<1x128xf32, #tpu.memory_space<vmem>>, vector<1x128xf32>
    %216 = vector.broadcast %215 : vector<1x128xf32> to vector<64x128xf32>
    %217 = arith.addf %214, %216 : vector<64x128xf32>
    %cst_113 = arith.constant 0.000000e+00 : f32
    %218 = vector.broadcast %cst_113 : f32 to vector<64x128xf32>
    %219 = arith.maximumf %217, %218 : vector<64x128xf32>
    %c0_114 = arith.constant 0 : index
    %c0_115 = arith.constant 0 : index
    %220 = vector.load %arg27[%c0_114, %c0_115] : memref<128x3xf32, #tpu.memory_space<vmem>>, vector<128x3xf32>
    %cst_116 = arith.constant dense<0.000000e+00> : vector<64x3xf32>
    %221 = tpu.matmul %219, %220, %cst_116 {dimension_numbers = #tpu.dot_dimension_numbers<[1], [0], [0], [1], [0, 0, 1, 1], [], []>} : vector<64x128xf32>, vector<128x3xf32>, vector<64x3xf32> -> vector<64x3xf32>
    %c0_117 = arith.constant 0 : index
    %c0_118 = arith.constant 0 : index
    %222 = vector.load %arg28[%c0_117, %c0_118] : memref<1x3xf32, #tpu.memory_space<vmem>>, vector<1x3xf32>
    %223 = vector.broadcast %222 : vector<1x3xf32> to vector<64x3xf32>
    %224 = arith.addf %221, %223 : vector<64x3xf32>
    %225 = arith.addf %224, %118 : vector<64x3xf32>
    %c0_119 = arith.constant 0 : index
    %c0_120 = arith.constant 0 : index
    %c6 = arith.constant 6 : index
    %226 = vector.load %arg30[%c0_119, %c0_120, %c6] : memref<1x64x12xf32, #tpu.memory_space<vmem>>, vector<1x64x3xf32>
    %227 = vector.shape_cast %226 : vector<1x64x3xf32> to vector<64x3xf32>
    %228 = vector.shape_cast %225 : vector<64x3xf32> to vector<1x64x3xf32>
    tpu.vector_store %arg30[%c0_119, %c0_120, %c6], %228 {strides = array<i32>} : memref<1x64x12xf32, #tpu.memory_space<vmem>>, vector<1x64x3xf32>,
    %229 = vector.extract_strided_slice %123 {offsets = [0, 0], sizes = [1, 128], strides = [1, 1]} : vector<2x128xf32> to vector<1x128xf32>
    %cst_121 = arith.constant 5.000000e-02 : f32
    %230 = vector.broadcast %cst_121 : f32 to vector<1x128xf32>
    %231 = arith.mulf %230, %229 : vector<1x128xf32>
    %232 = vector.extract_strided_slice %123 {offsets = [1, 0], sizes = [1, 128], strides = [1, 1]} : vector<2x128xf32> to vector<1x128xf32>
    %cst_122 = arith.constant 5.000000e-02 : f32
    %233 = vector.broadcast %cst_122 : f32 to vector<1x128xf32>
    %234 = arith.mulf %233, %232 : vector<1x128xf32>
    %235 = arith.addf %231, %234 : vector<1x128xf32>
    %236 = vector.broadcast %141 : vector<1x128xf32> to vector<64x128xf32>
    %237 = arith.addf %137, %236 : vector<64x128xf32>
    %238 = vector.broadcast %235 : vector<1x128xf32> to vector<64x128xf32>
    %239 = arith.addf %237, %238 : vector<64x128xf32>
    %cst_123 = arith.constant 0.000000e+00 : f32
    %240 = vector.broadcast %cst_123 : f32 to vector<64x128xf32>
    %241 = arith.maximumf %239, %240 : vector<64x128xf32>
    %c0_124 = arith.constant 0 : index
    %c0_125 = arith.constant 0 : index
    %242 = vector.load %arg25[%c0_124, %c0_125] : memref<128x128xf32, #tpu.memory_space<vmem>>, vector<128x128xf32>
    %cst_126 = arith.constant dense<0.000000e+00> : vector<64x128xf32>
    %243 = tpu.matmul %241, %242, %cst_126 {dimension_numbers = #tpu.dot_dimension_numbers<[1], [0], [0], [1], [0, 0, 1, 1], [], []>} : vector<64x128xf32>, vector<128x128xf32>, vector<64x128xf32> -> vector<64x128xf32>
    %c0_127 = arith.constant 0 : index
    %c0_128 = arith.constant 0 : index
    %244 = vector.load %arg26[%c0_127, %c0_128] : memref<1x128xf32, #tpu.memory_space<vmem>>, vector<1x128xf32>
    %245 = vector.broadcast %244 : vector<1x128xf32> to vector<64x128xf32>
    %246 = arith.addf %243, %245 : vector<64x128xf32>
    %cst_129 = arith.constant 0.000000e+00 : f32
    %247 = vector.broadcast %cst_129 : f32 to vector<64x128xf32>
    %248 = arith.maximumf %246, %247 : vector<64x128xf32>
    %c0_130 = arith.constant 0 : index
    %c0_131 = arith.constant 0 : index
    %249 = vector.load %arg27[%c0_130, %c0_131] : memref<128x3xf32, #tpu.memory_space<vmem>>, vector<128x3xf32>
    %cst_132 = arith.constant dense<0.000000e+00> : vector<64x3xf32>
    %250 = tpu.matmul %248, %249, %cst_132 {dimension_numbers = #tpu.dot_dimension_numbers<[1], [0], [0], [1], [0, 0, 1, 1], [], []>} : vector<64x128xf32>, vector<128x3xf32>, vector<64x3xf32> -> vector<64x3xf32>
    %c0_133 = arith.constant 0 : index
    %c0_134 = arith.constant 0 : index
    %251 = vector.load %arg28[%c0_133, %c0_134] : memref<1x3xf32, #tpu.memory_space<vmem>>, vector<1x3xf32>
    %252 = vector.broadcast %251 : vector<1x3xf32> to vector<64x3xf32>
    %253 = arith.addf %250, %252 : vector<64x3xf32>
    %254 = arith.addf %253, %118 : vector<64x3xf32>
    %c0_135 = arith.constant 0 : index
    %c0_136 = arith.constant 0 : index
    %c9 = arith.constant 9 : index
    %255 = vector.load %arg30[%c0_135, %c0_136, %c9] : memref<1x64x12xf32, #tpu.memory_space<vmem>>, vector<1x64x3xf32>
    %256 = vector.shape_cast %255 : vector<1x64x3xf32> to vector<64x3xf32>
    %257 = vector.shape_cast %254 : vector<64x3xf32> to vector<1x64x3xf32>
    tpu.vector_store %arg30[%c0_135, %c0_136, %c9], %257 {strides = array<i32>} : memref<1x64x12xf32, #tpu.memory_space<vmem>>, vector<1x64x3xf32>,
    return
  }
  func.func @transform_0(%arg0: i32) -> (i32, i32, i32) {
    %c0_i32 = arith.constant 0 : i32
    %c0_i32_0 = arith.constant 0 : i32
    %c0_i32_1 = arith.constant 0 : i32
    return %arg0, %c0_i32, %c0_i32_0 : i32, i32, i32
  }
  func.func @transform_1(%arg0: i32) -> (i32, i32) {
    %c0_i32 = arith.constant 0 : i32
    %c0_i32_0 = arith.constant 0 : i32
    %c0_i32_1 = arith.constant 0 : i32
    return %c0_i32, %c0_i32_0 : i32, i32
  }
  func.func @transform_2(%arg0: i32) -> (i32, i32) {
    %c0_i32 = arith.constant 0 : i32
    %c0_i32_0 = arith.constant 0 : i32
    %c0_i32_1 = arith.constant 0 : i32
    return %c0_i32, %c0_i32_0 : i32, i32
  }
  func.func @transform_3(%arg0: i32) -> (i32, i32) {
    %c0_i32 = arith.constant 0 : i32
    %c0_i32_0 = arith.constant 0 : i32
    %c0_i32_1 = arith.constant 0 : i32
    return %c0_i32, %c0_i32_0 : i32, i32
  }
  func.func @transform_4(%arg0: i32) -> (i32, i32) {
    %c0_i32 = arith.constant 0 : i32
    %c0_i32_0 = arith.constant 0 : i32
    %c0_i32_1 = arith.constant 0 : i32
    return %c0_i32, %c0_i32_0 : i32, i32
  }
  func.func @transform_5(%arg0: i32) -> (i32, i32) {
    %c0_i32 = arith.constant 0 : i32
    %c0_i32_0 = arith.constant 0 : i32
    %c0_i32_1 = arith.constant 0 : i32
    return %c0_i32, %c0_i32_0 : i32, i32
  }
  func.func @transform_6(%arg0: i32) -> (i32, i32) {
    %c0_i32 = arith.constant 0 : i32
    %c0_i32_0 = arith.constant 0 : i32
    %c0_i32_1 = arith.constant 0 : i32
    return %c0_i32, %c0_i32_0 : i32, i32
  }
  func.func @transform_7(%arg0: i32) -> (i32, i32) {
    %c0_i32 = arith.constant 0 : i32
    %c0_i32_0 = arith.constant 0 : i32
    %c0_i32_1 = arith.constant 0 : i32
    return %c0_i32, %c0_i32_0 : i32, i32
  }
  func.func @transform_8(%arg0: i32) -> (i32, i32) {
    %c0_i32 = arith.constant 0 : i32
    %c0_i32_0 = arith.constant 0 : i32
    %c0_i32_1 = arith.constant 0 : i32
    return %c0_i32, %c0_i32_0 : i32, i32
  }
  func.func @transform_9(%arg0: i32) -> (i32, i32) {
    %c0_i32 = arith.constant 0 : i32
    %c0_i32_0 = arith.constant 0 : i32
    %c0_i32_1 = arith.constant 0 : i32
    return %c0_i32, %c0_i32_0 : i32, i32
  }
  func.func @transform_10(%arg0: i32) -> (i32, i32) {
    %c0_i32 = arith.constant 0 : i32
    %c0_i32_0 = arith.constant 0 : i32
    %c0_i32_1 = arith.constant 0 : i32
    return %c0_i32, %c0_i32_0 : i32, i32
  }
  func.func @transform_11(%arg0: i32) -> (i32, i32) {
    %c0_i32 = arith.constant 0 : i32
    %c0_i32_0 = arith.constant 0 : i32
    %c0_i32_1 = arith.constant 0 : i32
    return %c0_i32, %c0_i32_0 : i32, i32
  }
  func.func @transform_12(%arg0: i32) -> (i32, i32) {
    %c0_i32 = arith.constant 0 : i32
    %c0_i32_0 = arith.constant 0 : i32
    %c0_i32_1 = arith.constant 0 : i32
    return %c0_i32, %c0_i32_0 : i32, i32
  }
  func.func @transform_13(%arg0: i32) -> (i32, i32) {
    %c0_i32 = arith.constant 0 : i32
    %c0_i32_0 = arith.constant 0 : i32
    %c0_i32_1 = arith.constant 0 : i32
    return %c0_i32, %c0_i32_0 : i32, i32
  }
  func.func @transform_14(%arg0: i32) -> (i32, i32) {
    %c0_i32 = arith.constant 0 : i32
    %c0_i32_0 = arith.constant 0 : i32
    %c0_i32_1 = arith.constant 0 : i32
    return %c0_i32, %c0_i32_0 : i32, i32
  }
  func.func @transform_15(%arg0: i32) -> (i32, i32) {
    %c0_i32 = arith.constant 0 : i32
    %c0_i32_0 = arith.constant 0 : i32
    %c0_i32_1 = arith.constant 0 : i32
    return %c0_i32, %c0_i32_0 : i32, i32
  }
  func.func @transform_16(%arg0: i32) -> (i32, i32) {
    %c0_i32 = arith.constant 0 : i32
    %c0_i32_0 = arith.constant 0 : i32
    %c0_i32_1 = arith.constant 0 : i32
    return %c0_i32, %c0_i32_0 : i32, i32
  }
  func.func @transform_17(%arg0: i32) -> (i32, i32) {
    %c0_i32 = arith.constant 0 : i32
    %c0_i32_0 = arith.constant 0 : i32
    %c0_i32_1 = arith.constant 0 : i32
    return %c0_i32, %c0_i32_0 : i32, i32
  }
  func.func @transform_18(%arg0: i32) -> (i32, i32) {
    %c0_i32 = arith.constant 0 : i32
    %c0_i32_0 = arith.constant 0 : i32
    %c0_i32_1 = arith.constant 0 : i32
    return %c0_i32, %c0_i32_0 : i32, i32
  }
  func.func @transform_19(%arg0: i32) -> (i32, i32) {
    %c0_i32 = arith.constant 0 : i32
    %c0_i32_0 = arith.constant 0 : i32
    %c0_i32_1 = arith.constant 0 : i32
    return %c0_i32, %c0_i32_0 : i32, i32
  }
  func.func @transform_20(%arg0: i32) -> (i32, i32) {
    %c0_i32 = arith.constant 0 : i32
    %c0_i32_0 = arith.constant 0 : i32
    %c0_i32_1 = arith.constant 0 : i32
    return %c0_i32, %c0_i32_0 : i32, i32
  }
  func.func @transform_21(%arg0: i32) -> (i32, i32) {
    %c0_i32 = arith.constant 0 : i32
    %c0_i32_0 = arith.constant 0 : i32
    %c0_i32_1 = arith.constant 0 : i32
    return %c0_i32, %c0_i32_0 : i32, i32
  }
  func.func @transform_22(%arg0: i32) -> (i32, i32) {
    %c0_i32 = arith.constant 0 : i32
    %c0_i32_0 = arith.constant 0 : i32
    %c0_i32_1 = arith.constant 0 : i32
    return %c0_i32, %c0_i32_0 : i32, i32
  }
  func.func @transform_23(%arg0: i32) -> (i32, i32) {
    %c0_i32 = arith.constant 0 : i32
    %c0_i32_0 = arith.constant 0 : i32
    %c0_i32_1 = arith.constant 0 : i32
    return %c0_i32, %c0_i32_0 : i32, i32
  }
  func.func @transform_24(%arg0: i32) -> (i32, i32) {
    %c0_i32 = arith.constant 0 : i32
    %c0_i32_0 = arith.constant 0 : i32
    %c0_i32_1 = arith.constant 0 : i32
    return %c0_i32, %c0_i32_0 : i32, i32
  }
  func.func @transform_25(%arg0: i32) -> (i32, i32) {
    %c0_i32 = arith.constant 0 : i32
    %c0_i32_0 = arith.constant 0 : i32
    %c0_i32_1 = arith.constant 0 : i32
    return %c0_i32, %c0_i32_0 : i32, i32
  }
  func.func @transform_26(%arg0: i32) -> (i32, i32) {
    %c0_i32 = arith.constant 0 : i32
    %c0_i32_0 = arith.constant 0 : i32
    %c0_i32_1 = arith.constant 0 : i32
    return %c0_i32, %c0_i32_0 : i32, i32
  }
  func.func @transform_27(%arg0: i32) -> (i32, i32) {
    %c0_i32 = arith.constant 0 : i32
    %c0_i32_0 = arith.constant 0 : i32
    %c0_i32_1 = arith.constant 0 : i32
    return %c0_i32, %c0_i32_0 : i32, i32
  }
  func.func @transform_28(%arg0: i32) -> (i32, i32, i32) {
    %c0_i32 = arith.constant 0 : i32
    %c0_i32_0 = arith.constant 0 : i32
    %c0_i32_1 = arith.constant 0 : i32
    return %arg0, %c0_i32, %c0_i32_0 : i32, i32, i32
  }
  func.func @transform_29(%arg0: i32) -> (i32, i32, i32) {
    %c0_i32 = arith.constant 0 : i32
    %c0_i32_0 = arith.constant 0 : i32
    %c0_i32_1 = arith.constant 0 : i32
    return %arg0, %c0_i32, %c0_i32_0 : i32, i32, i32
  }
}

</mosaic_0001>

<bundles_post_ra>
// kernel: pcn_forward.1
= control target key start
LH: loop header
LB: loop body
LE: loop exit
PB: predicated region body
PF: predicated region fallthrough
CT: control target
= control target key end

     0   :  { %s3599_s6 = smov 1   ;;  %s3600_s10 = smov 2   ;;  %s5249_s0 = inlined_call_operand.smem [shape: u32[30], index: -1, kind: input, shape index: {}] }
   0x1   :  { %s3643_s5 = sld [smem:[%s5249_s0]]   ;;  %s3601_s14 = smov 3  }
   0x2   :  { %s3648_s9 = sld [smem:[%s5249_s0 + %s3599_s6]]   ;;  %s3602_s18 = smov 4  }
   0x3   :  { %s3653_s13 = sld [smem:[%s5249_s0 + %s3600_s10]]   ;;  %s3603_s22 = smov 5  }
   0x4   :  { %s3658_s17 = sld [smem:[%s5249_s0 + %s3601_s14]]   ;;  %s3604_s26 = smov 6  }
   0x5   :  { %s3663_s21 = sld [smem:[%s5249_s0 + %s3602_s18]]   ;;  %s3605_s30 = smov 7  }
   0x6   :  { %s3668_s25 = sld [smem:[%s5249_s0 + %s3603_s22]]   ;;  %s3606_s4 = smov 8  }
   0x7   :  { %s3673_s29 = sld [smem:[%s5249_s0 + %s3604_s26]]   ;;  %s3607_s10 = smov 9  }
   0x8   :  { %s3678_s3 = sld [smem:[%s5249_s0 + %s3605_s30]]   ;;  %s3608_s15 = smov 10  }
   0x9   :  { %s3683_s8 = sld [smem:[%s5249_s0 + %s3606_s4]]   ;;  %s3609_s20 = smov 11  }
   0xa   :  { %s3688_s14 = sld [smem:[%s5249_s0 + %s3607_s10]]   ;;  %s3610_s26 = smov 12  }
   0xb   :  { %s3693_s19 = sld [smem:[%s5249_s0 + %s3608_s15]]   ;;  %s3611_s1 = smov 13  }
   0xc   :  { %s3698_s24 = sld [smem:[%s5249_s0 + %s3609_s20]]   ;;  %s3612_s7 = smov 14  }
   0xd   :  { %s3703_s30 = sld [smem:[%s5249_s0 + %s3610_s26]]   ;;  %s3613_s15 = smov 15  }
   0xe   :  { %s3708_s6 = sld [smem:[%s5249_s0 + %s3611_s1]]   ;;  %s3614_s22 = smov 16  }
   0xf   :  { %s3713_s12 = sld [smem:[%s5249_s0 + %s3612_s7]]   ;;  %s3615_s28 = smov 17  }
  0x10   :  { %s3718_s20 = sld [smem:[%s5249_s0 + %s3613_s15]]   ;;  %s3616_s7 = smov 18  }
  0x11   :  { %s3723_s27 = sld [smem:[%s5249_s0 + %s3614_s22]]   ;;  %s3617_s15 = smov 19  }
  0x12   :  { %5254 = sst [smem:[#allocation2_spill]] %s3698_s24  ;;  %s3618_s22 = smov 20  }
  0x13   :  { %s3728_s4 = sld [smem:[%s5249_s0 + %s3615_s28]]   ;;  %s3619_s28 = smov 21  }
  0x14   :  { %5255 = sst [smem:[#allocation3_spill]] %s3708_s6 }
  0x15   :  { %s3733_s6 = sld [smem:[%s5249_s0 + %s3616_s7]]   ;;  %s3620_s7 = smov 22  }
  0x16   :  { %s3738_s24 = sld [smem:[%s5249_s0 + %s3617_s15]]   ;;  %s3621_s15 = smov 23  }
  0x17   :  { %5256 = sst [smem:[#allocation4_spill]] %s3723_s27 }
  0x18   :  { %s3743_s27 = sld [smem:[%s5249_s0 + %s3618_s22]]   ;;  %s3622_s22 = smov 24  }
  0x19   :  { %5257 = sst [smem:[#allocation5_spill]] %s3728_s4 }
  0x1a   :  { %s3748_s4 = sld [smem:[%s5249_s0 + %s3619_s28]]   ;;  %s3623_s28 = smov 25  }
  0x1b   :  { %5258 = sst [smem:[#allocation6_spill]] %s3733_s6 }
  0x1c   :  { %5259 = sst [smem:[#allocation7_spill]] %s3738_s24 }
  0x1d   :  { %s3753_s6 = sld [smem:[%s5249_s0 + %s3620_s7]]   ;;  %s3624_s7 = smov 26  }
  0x1e   :  { %5260 = sst [smem:[#allocation8_spill]] %s3743_s27 }
  0x1f   :  { %s3758_s24 = sld [smem:[%s5249_s0 + %s3621_s15]]   ;;  %s3625_s15 = smov 27  }
  0x20   :  { %5261 = sst [smem:[#allocation9_spill]] %s3748_s4 }
  0x21   :  { %s3763_s27 = sld [smem:[%s5249_s0 + %s3622_s22]]   ;;  %s3626_s22 = smov 28  }
  0x22   :  { %s3768_s4 = sld [smem:[%s5249_s0 + %s3623_s28]]   ;;  %s3627_s28 = smov 29  }
  0x23   :  { %5262 = sst [smem:[#allocation10_spill]] %s3753_s6 }
  0x24   :  { %s3773_s6 = sld [smem:[%s5249_s0 + %s3624_s7]]   ;;  %s3790_s7 = smov 0  }
  0x25   :  { %5263 = sst [smem:[#allocation11_spill]] %s3758_s24 }
  0x26   :  { %s3778_s24 = sld [smem:[%s5249_s0 + %s3625_s15]]  }
  0x27   :  { %5264 = sst [smem:[#allocation12_spill]] %s3763_s27 }
  0x28   :  { %5265 = sst [smem:[#allocation13_spill]] %s3768_s4 }
  0x29   :  { %s3783_s27 = sld [smem:[%s5249_s0 + %s3626_s22]]  }
  0x2a   :  { %s3788_s4 = sld [smem:[%s5249_s0 + %s3627_s28]]  }
  0x2b LB: > { %s3437_s10 = sadd.s32 4294967295, %s3597_s7   ;;  %p3441_p0 = scmp.ge.s32.totalorder %s3597_s7, 1  ;;  %s3597_s7 = sphi %s3790_s7, %s70_s7  }
  0x2c   : > { %p820_p1 = scmp.lt.s32.totalorder %s3597_s7, 3 }
  0x2e   : > { %p821_p2 = pnand %p3441_p0, %p820_p1 }
  0x2f   : > { %p901_p3 = scmp.lt.s32.totalorder (!%p821_p2), %s3437_s10, 1  ;;  %s5266_s15 = sld [smem:[#allocation2_spill]] (!%p821_p2) }
  0x30   : > { %824 = sbr.rel (%p821_p2) target bundleno = 1939 (0x793), region = 132  ;;  %s5267_s16 = sld [smem:[#allocation4_spill]] (!%p821_p2) }
  0x31   : > { %s5268_s18 = sld [smem:[#allocation8_spill]] (!%p821_p2) }
  0x32   : > { %s5269_s22 = sld [smem:[#allocation3_spill]] (!%p821_p2) }
  0x33   : > { %s5270_s23 = sld [smem:[#allocation5_spill]] (!%p821_p2) }
  0x34   : > { %s5271_s26 = sld [smem:[#allocation6_spill]] (!%p821_p2) }
  0x35   : > { %v3628_v0 = vmov 2   ;;  %v3629_v1 = vmov 0   ;;  %s5279_s10 = smov (!%p901_p3, %s3437_s10), 1  ;;  %v3630_v2 = vmov 1   ;;  %v1275_v12 = vld [vmem:[%s3658_s17 + $0x78] sm:$0xff]  ;;  %v1274_v13 = vld [vmem:[%s3658_s17 + $0x70] sm:$0xff] }
  0x36   : > { %3550 = vset.pattern.permute.xlu1 %v3628_v0  ;;  %3548 = vset.pattern.permute.xlu0 %v3629_v1  ;;  %s3453_s0 = sshll.u32 %s5279_s10, 7  ;;  %v1273_v15 = vld [vmem:[%s3658_s17 + $0x68] sm:$0xff]  ;;  %v1272_v17 = vld [vmem:[%s3658_s17 + $0x60] sm:$0xff]  ;;  %v1271_v18 = vld [vmem:[%s3658_s17 + $0x58] sm:$0xff]  ;;  %s5272_s28 = sld [smem:[#allocation7_spill]]  ;;  %vm2281_vm1 = vcmask 523264  }
  0x37   : > { %3552 = vset.pattern.permute.xlu2 %v3630_v2  ;;  %s3805_s11 = scalar_lea.vmem %s3643_s5, %s3453_s0  ;;  %1280 = vmatpush.msra.mxu0 %v1275_v12  ;;  %v1270_v19 = vld [vmem:[%s3658_s17 + $0x50] sm:$0xff]  ;;  %v1269_v20 = vld [vmem:[%s3658_s17 + $0x48] sm:$0xff]  ;;  %v1268_v21 = vld [vmem:[%s3658_s17 + $0x40] sm:$0xff]  ;;  %s5273_s1 = sld [smem:[#allocation12_spill]]  ;;  %vm2421_vm12 = vcmask 23552   ;;  %vm2914_vm13 = vcmask 48152  }
  0x38   : > { %v916_v3 = vld [vmem:[%s3805_s11] sm:$0xff]  ;;  %v917_v4 = vld [vmem:[%s3805_s11 + $0x8] sm:$0xff]  ;;  %v918_v5 = vld [vmem:[%s3805_s11 + $0x10] sm:$0xff]  ;;  %s5274_s2 = sld [smem:[#allocation9_spill]]  ;;  %vm3114_vm14 = vcmask 72752   ;;  %vm3311_vm15 = vcmask 97352  }
  0x39   : > { %1128 = vperm.xlu1 %3550, %v916_v3   ;;  %935 = vperm.xlu0 %3548, %v916_v3   ;;  %v919_v6 = vld [vmem:[%s3805_s11 + $0x18] sm:$0xff]  ;;  %v920_v7 = vld [vmem:[%s3805_s11 + $0x20] sm:$0xff]  ;;  %v922_v8 = vld [vmem:[%s3805_s11 + $0x30] sm:$0xff]  ;;  %s5275_s0 = sld [smem:[#allocation11_spill]] }
  0x3a   : > { %1035 = vperm.xlu2 %3552, %v917_v4   ;;  %v921_v9 = vld [vmem:[%s3805_s11 + $0x28] sm:$0xff]  ;;  %v923_v10 = vld [vmem:[%s3805_s11 + $0x38] sm:$0xff]  ;;  %v924_v16 = vld [vmem:[%s3805_s11 + $0x40] sm:$0xff]  ;;  %1281 = vmatpush.msra.mxu0 %v1274_v13 }
  0x3b   : > { %v925_v11 = vld [vmem:[%s3805_s11 + $0x48] sm:$0xff]  ;;  %v927_v14 = vld [vmem:[%s3805_s11 + $0x58] sm:$0xff]  ;;  %v928_v23 = vld [vmem:[%s3805_s11 + $0x60] sm:$0xff] }
  0x3c   : > { %1282 = vmatpush.msra.mxu0 %v1273_v15  ;;  %v1267_v22 = vld [vmem:[%s3658_s17 + $0x38] sm:$0xff]  ;;  %v1266_v24 = vld [vmem:[%s3658_s17 + $0x30] sm:$0xff]  ;;  %v1265_v25 = vld [vmem:[%s3658_s17 + $0x28] sm:$0xff] }
  0x3d   : > { %v1264_v27 = vld [vmem:[%s3658_s17 + $0x20] sm:$0xff]  ;;  %v1263_v28 = vld [vmem:[%s3658_s17 + $0x18] sm:$0xff]  ;;  %v926_v29 = vld [vmem:[%s3805_s11 + $0x50] sm:$0xff] }
  0x3e   : > { %1283 = vmatpush.msra.mxu0 %v1272_v17  ;;  %v1262_v30 = vld [vmem:[%s3658_s17 + $0x10] sm:$0xff]  ;;  %v1261_v31 = vld [vmem:[%s3658_s17 + $0x8] sm:$0xff]  ;;  %v1260_v32 = vld [vmem:[%s3658_s17] sm:$0xff] }
  0x3f   : > { %v930_v34 = vld [vmem:[%s3805_s11 + $0x70] sm:$0xff]  ;;  %v932_v38 = vld [vmem:[%s3648_s9] sm:$0x7]  ;;  %v929_v48 = vld [vmem:[%s3805_s11 + $0x68] sm:$0xff] }
  0x40   : > { %1284 = vmatpush.msra.mxu0 %v1271_v18  ;;  %v3861_v39 = vperm.slane %v932_v38, 0  ;;  %v3865_v41 = vperm.slane %v932_v38, 1  ;;  %v3867_v42 = vperm.slane %v932_v38, 2  ;;  %v3876_v52 = vld [vmem:[%s3653_s13] ss:$0 sm:$0xff]  ;;  %v931_v12 = vld [vmem:[%s3805_s11 + $0x78] sm:$0xff] }
  0x41   : > { %3551 = vset.pattern.permute.xlu1 %v3629_v1  ;;  %3549 = vset.pattern.permute.xlu0 %v3630_v2  ;;  %s5276_s11 = sld [smem:[#allocation10_spill]] }
  0x42   : > { %940 = vperm.xlu1 %3551, %v917_v4   ;;  %1031 = vperm.xlu0 %3549, %v916_v3  }
  0x43   : > { %3553 = vset.pattern.permute.xlu2 %v3628_v0  ;;  %1285 = vmatpush.msra.mxu0 %v1270_v19 }
  0x44   : > { %1132 = vperm.xlu2 %3553, %v917_v4  }
  0x45   : > { %1286 = vmatpush.msra.mxu0 %v1269_v20 }
  0x47   : > { %1287 = vmatpush.msra.mxu0 %v1268_v21 }
  0x49   : > { %1288 = vmatpush.msra.mxu0 %v1267_v22 }
  0x4a   : > { %945 = vperm.xlu1 %3551, %v918_v5   ;;  %3555 = vset.pattern.permute.xlu0 %v3628_v0 }
  0x4b   : > { %1136 = vperm.xlu0 %3555, %v918_v5   ;;  %1289 = vmatpush.msra.mxu0 %v1266_v24 }
  0x4c   : > { %3554 = vset.pattern.permute.xlu2 %v3630_v2 }
  0x4d   : > { %1039 = vperm.xlu2 %3554, %v918_v5   ;;  %1290 = vmatpush.msra.mxu0 %v1265_v25 }
  0x4f   : > { %1291 = vmatpush.msra.mxu0 %v1264_v27 }
  0x51   : > { %1292 = vmatpush.msra.mxu0 %v1263_v28 }
  0x52   : > { %950 = vperm.xlu1 %3551, %v919_v6  }
  0x53   : > { %3558 = vset.pattern.permute.xlu0 %v3630_v2  ;;  %1293 = vmatpush.msra.mxu0 %v1262_v30 }
  0x54   : > { %1047 = vperm.xlu0 %3558, %v920_v7  }
  0x55   : > { %1043 = vperm.xlu2 %3554, %v919_v6   ;;  %1294 = vmatpush.msra.mxu0 %v1261_v31 }
  0x57   : > { %1295 = vmatpush.msra.mxu0 %v1260_v32 }
  0x5a   : > { %3556 = vset.pattern.permute.xlu1 %v3628_v0 }
  0x5b   : > { %1140 = vperm.xlu1 %3556, %v919_v6  }
  0x5c   : > { %3561 = vset.pattern.permute.xlu0 %v3629_v1 }
  0x5d   : > { %3557 = vset.pattern.permute.xlu2 %v3629_v1  ;;  %965 = vperm.xlu0 %3561, %v922_v8  }
  0x5e   : > { %955 = vperm.xlu2 %3557, %v920_v7  }
  0x63   : > { %1144 = vperm.xlu1 %3556, %v920_v7  }
  0x65   : > { %3564 = vset.pattern.permute.xlu0 %v3628_v0 }
  0x66   : > { %960 = vperm.xlu2 %3557, %v921_v9   ;;  %1156 = vperm.xlu0 %3564, %v923_v10  }
  0x6b   : > { %3559 = vset.pattern.permute.xlu1 %v3630_v2 }
  0x6c   : > { %1051 = vperm.xlu1 %3559, %v921_v9  }
  0x6e   : > { %3560 = vset.pattern.permute.xlu2 %v3628_v0  ;;  %3567 = vset.pattern.permute.xlu0 %v3630_v2 }
  0x6f   : > { %1148 = vperm.xlu2 %3560, %v921_v9   ;;  %1067 = vperm.xlu0 %3567, %v925_v11  }
  0x74   : > { %1055 = vperm.xlu1 %3559, %v922_v8  }
  0x77   : > { %1152 = vperm.xlu2 %3560, %v922_v8   ;;  %3570 = vset.pattern.permute.xlu0 %v3629_v1 }
  0x78   : > { %990 = vperm.xlu0 %3570, %v927_v14  }
  0x7c   : > { %3562 = vset.pattern.permute.xlu1 %v3629_v1 }
  0x7d   : > { %970 = vperm.xlu1 %3562, %v923_v10  }
  0x7f   : > { %3563 = vset.pattern.permute.xlu2 %v3630_v2 }
  0x80   : > { %1059 = vperm.xlu2 %3563, %v923_v10   ;;  %3573 = vset.pattern.permute.xlu0 %v3628_v0 }
  0x81   : > { %1176 = vperm.xlu0 %3573, %v928_v23  }
  0x85   : > { %975 = vperm.xlu1 %3562, %v924_v16  }
  0x88   : > { %1063 = vperm.xlu2 %3563, %v924_v16  }
  0x89   : > { %3576 = vset.pattern.permute.xlu0 %v3630_v2 }
  0x8a   : > { %1087 = vperm.xlu0 %3576, %v930_v34  }
  0x8d   : > { %3565 = vset.pattern.permute.xlu1 %v3628_v0 }
  0x8e   : > { %1160 = vperm.xlu1 %3565, %v924_v16  }
  0x90   : > { %3566 = vset.pattern.permute.xlu2 %v3629_v1 }
  0x91   : > { %980 = vperm.xlu2 %3566, %v925_v11  }
  0x92   : > { %3579 = vset.pattern.permute.xlu0 %v3628_v0 }
  0x94   : > { %v1036_v26 = vpop.permute.xlu2 %1035 }
  0x95   : > { %v1096_v49 = vmul.f32 %v3865_v41, %v1036_v26 }
  0x96   : > { %1164 = vperm.xlu1 %3565, %v925_v11  }
  0x99   : > { %985 = vperm.xlu2 %3566, %v926_v29  }
  0x9e   : > { %3568 = vset.pattern.permute.xlu1 %v3630_v2  ;;  %v1133_v33 = vpop.permute.xlu2 %1132 }
  0x9f   : > { %1071 = vperm.xlu1 %3568, %v926_v29   ;;  %v1193_v54 = vmul.f32 %v3867_v42, %v1133_v33 }
  0xa1   : > { %3569 = vset.pattern.permute.xlu2 %v3628_v0 }
  0xa2   : > { %1168 = vperm.xlu2 %3569, %v926_v29  }
  0xa7   : > { %1075 = vperm.xlu1 %3568, %v927_v14   ;;  %v1040_v35 = vpop.permute.xlu2 %1039 }
  0xa8   : > { %v1097_v59 = vmul.f32 %v3865_v41, %v1040_v35 }
  0xaa   : > { %1172 = vperm.xlu2 %3569, %v927_v14  }
  0xab   : > { %v1129_v36 = vpop.permute.xlu1 %1128  ;;  %v936_v37 = vpop.permute.xlu0 %935 }
  0xac   : > { %v1014_v43 = vmul.f32 %v3861_v39, %v936_v37  ;;  %v1192_v50 = vmul.f32 %v3867_v42, %v1129_v36 }
  0xaf   : > { %3571 = vset.pattern.permute.xlu1 %v3629_v1  ;;  %v1044_v40 = vpop.permute.xlu2 %1043 }
  0xb0   : > { %995 = vperm.xlu1 %3571, %v928_v23   ;;  %v1098_v13 = vmul.f32 %v3865_v41, %v1044_v40 }
  0xb2   : > { %3572 = vset.pattern.permute.xlu2 %v3630_v2 }
  0xb3   : > { %1079 = vperm.xlu2 %3572, %v928_v23  }
  0xb4   : > { %v941_v44 = vpop.permute.xlu1 %940  ;;  %v1032_v45 = vpop.permute.xlu0 %1031 }
  0xb5   : > { %v1015_v46 = vmul.f32 %v3861_v39, %v941_v44  ;;  %v1095_v47 = vmul.f32 %v3865_v41, %v1032_v45 }
  0xb7   : > { %v1111_v51 = vadd.f32 %v1095_v47, %v1014_v43  ;;  %v1112_v55 = vadd.f32 %v1096_v49, %v1015_v46 }
  0xb8   : > { %1000 = vperm.xlu1 %3571, %v929_v48   ;;  %v956_v53 = vpop.permute.xlu2 %955 }
  0xb9   : > { %v1208_v56 = vadd.f32 %v1192_v50, %v1111_v51  ;;  %v1209_v62 = vadd.f32 %v1193_v54, %v1112_v55  ;;  %v1018_v20 = vmul.f32 %v3861_v39, %v956_v53 }
  0xbb   : > { %v1228_v57 = vadd.f32 %v3876_v52, %v1208_v56  ;;  %1083 = vperm.xlu2 %3572, %v929_v48   ;;  %v1229_v5 = vadd.f32 %v3876_v52, %v1209_v62 }
  0xbc   : > { %v946_v58 = vpop.permute.xlu1 %945 }
  0xbd   : > { %v1016_v60 = vmul.f32 %v3861_v39, %v946_v58  ;;  %v1244_v61 = vmax.f32 %v1228_v57, 0.0  ;;  %v1137_v63 = vpop.permute.xlu0 %1136  ;;  %v1245_v9 = vmax.f32 %v1229_v5, 0.0 }
  0xbe   : > { %v1194_v4 = vmul.f32 %v3867_v42, %v1137_v63  ;;  %v1381_v63 = vld [vmem:[%s3673_s29 + $0x78] sm:$0xff] }
  0xbf   : > { %1296 = vmatmul.f32.vlgmr.msra.gmra.mxu0 %v1244_v61  ;;  %v1113_v3 = vadd.f32 %v1097_v59, %v1016_v60  ;;  %1419 = vmatpush.msra.mxu2 %v1381_v63 }
  0xc0   : > { %3574 = vset.pattern.permute.xlu1 %v3628_v0  ;;  %v961_v6 = vpop.permute.xlu2 %960 }
  0xc1   : > { %1180 = vperm.xlu1 %3574, %v929_v48   ;;  %v1210_v8 = vadd.f32 %v1194_v4, %v1113_v3  ;;  %v1019_v31 = vmul.f32 %v3861_v39, %v961_v6  ;;  %v1380_v3 = vld [vmem:[%s3673_s29 + $0x70] sm:$0xff] }
  0xc2   : > { %1420 = vmatpush.msra.mxu2 %v1380_v3 }
  0xc3   : > { %3575 = vset.pattern.permute.xlu2 %v3629_v1  ;;  %v1230_v10 = vadd.f32 %v3876_v52, %v1210_v8 }
  0xc4   : > { %v951_v7 = vpop.permute.xlu1 %950  ;;  %1005 = vperm.xlu2 %3575, %v930_v34  }
  0xc5   : > { %v1017_v11 = vmul.f32 %v3861_v39, %v951_v7  ;;  %v1246_v16 = vmax.f32 %v1230_v10, 0.0 }
  0xc6   : > { %v1048_v18 = vpop.permute.xlu0 %1047 }
  0xc7   : > { %1299 = vmatmul.f32.gmra.mxu0 %v1245_v9  ;;  %v1114_v17 = vadd.f32 %v1098_v13, %v1017_v11  ;;  %v1099_v21 = vmul.f32 %v3865_v41, %v1048_v18  ;;  %v1376_v18 = vld [vmem:[%s3673_s29 + $0x50] sm:$0xff] }
  0xc9   : > { %1184 = vperm.xlu1 %3574, %v930_v34   ;;  %v1149_v14 = vpop.permute.xlu2 %1148  ;;  %v1115_v25 = vadd.f32 %v1099_v21, %v1018_v20 }
  0xca   : > { %v1197_v32 = vmul.f32 %v3867_v42, %v1149_v14 }
  0xcc   : > { %1010 = vperm.xlu2 %3575, %v931_v12  }
  0xcd   : > { %v1141_v15 = vpop.permute.xlu1 %1140 }
  0xce   : > { %v1195_v1 = vmul.f32 %v3867_v42, %v1141_v15 }
  0xcf   : > { %1302 = vmatmul.f32.gmra.mxu0 %v1246_v16  ;;  %v966_v35 = vpop.permute.xlu0 %965  ;;  %v1378_v16 = vld [vmem:[%s3673_s29 + $0x60] sm:$0xff] }
  0xd0   : > { %v1211_v19 = vadd.f32 %v1195_v1, %v1114_v17  ;;  %v1020_v37 = vmul.f32 %v3861_v39, %v966_v35  ;;  %v1377_v1 = vld [vmem:[%s3673_s29 + $0x58] sm:$0xff] }
  0xd1   : > { %3577 = vset.pattern.permute.xlu1 %v3630_v2  ;;  %v1153_v27 = vpop.permute.xlu2 %1152 }
  0xd2   : > { %1091 = vperm.xlu1 %3577, %v931_v12   ;;  %v1231_v22 = vadd.f32 %v3876_v52, %v1211_v19  ;;  %v1198_v45 = vmul.f32 %v3867_v42, %v1153_v27  ;;  %v1373_v27 = vld [vmem:[%s3673_s29 + $0x38] sm:$0xff] }
  0xd4   : > { %v1247_v23 = vmax.f32 %v1231_v22, 0.0  ;;  %3578 = vset.pattern.permute.xlu2 %v3628_v0 }
  0xd5   : > { %v1145_v24 = vpop.permute.xlu1 %1144  ;;  %1188 = vperm.xlu2 %3578, %v931_v12   ;;  %v1379_v12 = vld [vmem:[%s3673_s29 + $0x68] sm:$0xff] }
  0xd6   : > { %v1196_v26 = vmul.f32 %v3867_v42, %v1145_v24  ;;  %1421 = vmatpush.msra.mxu2 %v1379_v12  ;;  %v1375_v24 = vld [vmem:[%s3673_s29 + $0x48] sm:$0xff] }
  0xd7   : > { %1305 = vmatmul.f32.gmra.mxu0 %v1247_v23 }
  0xd8   : > { %v1212_v28 = vadd.f32 %v1196_v26, %v1115_v25  ;;  %v1157_v50 = vpop.permute.xlu0 %1156  ;;  %1422 = vmatpush.msra.mxu2 %v1378_v16  ;;  %v1374_v26 = vld [vmem:[%s3673_s29 + $0x40] sm:$0xff] }
  0xd9   : > { %v1199_v56 = vmul.f32 %v3867_v42, %v1157_v50 }
  0xda   : > { %v1232_v2 = vadd.f32 %v3876_v52, %v1212_v28  ;;  %v1060_v0 = vpop.permute.xlu2 %1059  ;;  %1423 = vmatpush.msra.mxu2 %v1377_v1  ;;  %v3953_v1 = vld [vmem:[%s3663_s21] ss:$0 sm:$0xff] }
  0xdb   : > { %v1102_v51 = vmul.f32 %v3865_v41, %v1060_v0  ;;  %v1371_v0 = vld [vmem:[%s3673_s29 + $0x28] sm:$0xff] }
  0xdc   : > { %v1248_v29 = vmax.f32 %v1232_v2, 0.0  ;;  %1424 = vmatpush.msra.mxu2 %v1376_v18  ;;  %v1372_v2 = vld [vmem:[%s3673_s29 + $0x30] sm:$0xff] }
  0xde   : > { %v1052_v30 = vpop.permute.xlu1 %1051  ;;  %1425 = vmatpush.msra.mxu2 %v1375_v24 }
  0xdf   : > { %v1100_v33 = vmul.f32 %v3865_v41, %v1052_v30  ;;  %1308 = vmatmul.f32.gmra.mxu0 %v1248_v29 }
  0xe0   : > { %1426 = vmatpush.msra.mxu2 %v1374_v26 }
  0xe1   : > { %v1116_v34 = vadd.f32 %v1100_v33, %v1019_v31  ;;  %v1068_v10 = vpop.permute.xlu0 %1067 }
  0xe2   : > { %v1064_v47 = vpop.permute.xlu2 %1063  ;;  %v1104_v14 = vmul.f32 %v3865_v41, %v1068_v10  ;;  %1427 = vmatpush.msra.mxu2 %v1373_v27 }
  0xe3   : > { %v1213_v36 = vadd.f32 %v1197_v32, %v1116_v34  ;;  %v1103_v6 = vmul.f32 %v3865_v41, %v1064_v47 }
  0xe4   : > { %1428 = vmatpush.msra.mxu2 %v1372_v2 }
  0xe5   : > { %v1233_v38 = vadd.f32 %v3876_v52, %v1213_v36  ;;  %v1370_v36 = vld [vmem:[%s3673_s29 + $0x20] sm:$0xff] }
  0xe6   : > { %v1056_v40 = vpop.permute.xlu1 %1055  ;;  %1429 = vmatpush.msra.mxu2 %v1371_v0 }
  0xe7   : > { %v1101_v43 = vmul.f32 %v3865_v41, %v1056_v40  ;;  %v1249_v44 = vmax.f32 %v1233_v38, 0.0  ;;  %v1369_v38 = vld [vmem:[%s3673_s29 + $0x18] sm:$0xff]  ;;  %v1368_v40 = vld [vmem:[%s3673_s29 + $0x10] sm:$0xff] }
  0xe8   : > { %1430 = vmatpush.msra.mxu2 %v1370_v36 }
  0xe9   : > { %v1117_v46 = vadd.f32 %v1101_v43, %v1020_v37  ;;  %1311 = vmatmul.f32.gmra.mxu0 %v1249_v44 }
  0xea   : > { %v991_v35 = vpop.permute.xlu0 %990  ;;  %1431 = vmatpush.msra.mxu2 %v1369_v38 }
  0xeb   : > { %v1214_v48 = vadd.f32 %v1198_v45, %v1117_v46  ;;  %v981_v59 = vpop.permute.xlu2 %980  ;;  %v1025_v43 = vmul.f32 %v3861_v39, %v991_v35 }
  0xec   : > { %v1023_v13 = vmul.f32 %v3861_v39, %v981_v59  ;;  %1432 = vmatpush.msra.mxu2 %v1368_v40 }
  0xed   : > { %v1234_v49 = vadd.f32 %v3876_v52, %v1214_v48  ;;  %v1367_v48 = vld [vmem:[%s3673_s29 + $0x8] sm:$0xff] }
  0xee   : > { %v1120_v21 = vadd.f32 %v1104_v14, %v1023_v13  ;;  %1433 = vmatpush.msra.mxu2 %v1367_v48 }
  0xef   : > { %v971_v53 = vpop.permute.xlu1 %970  ;;  %v1250_v54 = vmax.f32 %v1234_v49, 0.0 }
  0xf0   : > { %v1021_v55 = vmul.f32 %v3861_v39, %v971_v53  ;;  %v1366_v53 = vld [vmem:[%s3673_s29] sm:$0xff] }
  0xf1   : > { %1314 = vmatmul.f32.gmra.mxu0 %v1250_v54  ;;  %1434 = vmatpush.msra.mxu2 %v1366_v53 }
  0xf2   : > { %v1118_v57 = vadd.f32 %v1102_v51, %v1021_v55 }
  0xf3   : > { %v986_v5 = vpop.permute.xlu2 %985 }
  0xf4   : > { %v1215_v58 = vadd.f32 %v1199_v56, %v1118_v57  ;;  %v1024_v30 = vmul.f32 %v3861_v39, %v986_v5  ;;  %v1177_v56 = vpop.permute.xlu0 %1176 }
  0xf6   : > { %v1235_v60 = vadd.f32 %v3876_v52, %v1215_v58 }
  0xf7   : > { %v976_v61 = vpop.permute.xlu1 %975 }
  0xf8   : > { %v1251_v62 = vmax.f32 %v1235_v60, 0.0  ;;  %v1022_v4 = vmul.f32 %v3861_v39, %v976_v61  ;;  %v1204_v61 = vmul.f32 %v3867_v42, %v1177_v56 }
  0xfa   : > { %1317 = vmatmul.f32.gmra.mxu0 %v1251_v62  ;;  %v1119_v8 = vadd.f32 %v1103_v6, %v1022_v4 }
  0xfc   : > { %v1169_v20 = vpop.permute.xlu2 %1168  ;;  %v1088_v13 = vpop.permute.xlu0 %1087 }
  0xfd   : > { %v1202_v31 = vmul.f32 %v3867_v42, %v1169_v20  ;;  %v1109_v16 = vmul.f32 %v3865_v41, %v1088_v13  ;;  %v1387_v13 = vld [vmem:[%s3668_s25 + $0x28] sm:$0xff] }
 0x100   : > { %v1161_v7 = vpop.permute.xlu1 %1160 }
 0x101   : > { %v1200_v9 = vmul.f32 %v3867_v42, %v1161_v7 }
 0x103   : > { %v1216_v11 = vadd.f32 %v1200_v9, %v1119_v8 }
 0x104   : > { %v1173_v33 = vpop.permute.xlu2 %1172 }
 0x105   : > { %v1236_v15 = vadd.f32 %v3876_v52, %v1216_v11  ;;  %v1203_v49 = vmul.f32 %v3867_v42, %v1173_v33 }
 0x107   : > { %v1252_v17 = vmax.f32 %v1236_v15, 0.0 }
 0x108   : > { %v1165_v19 = vpop.permute.xlu1 %1164 }
 0x109   : > { %v1201_v22 = vmul.f32 %v3867_v42, %v1165_v19  ;;  %1320 = vmatmul.f32.gmra.mxu0 %v1252_v17 }
 0x10b   : > { %v1217_v23 = vadd.f32 %v1201_v22, %v1120_v21 }
 0x10d   : > { %v1237_v25 = vadd.f32 %v3876_v52, %v1217_v23  ;;  %v1080_v51 = vpop.permute.xlu2 %1079 }
 0x10e   : > { %v1107_v57 = vmul.f32 %v3865_v41, %v1080_v51 }
 0x10f   : > { %v1253_v28 = vmax.f32 %v1237_v25, 0.0 }
 0x111   : > { %v1072_v29 = vpop.permute.xlu1 %1071  ;;  %1323 = vmatmul.f32.gmra.mxu0 %v1253_v28 }
 0x112   : > { %v1105_v32 = vmul.f32 %v3865_v41, %v1072_v29 }
 0x114   : > { %v1121_v34 = vadd.f32 %v1105_v32, %v1024_v30 }
 0x115   : > { %v1084_v63 = vpop.permute.xlu2 %1083 }
 0x116   : > { %v1218_v37 = vadd.f32 %v1202_v31, %v1121_v34  ;;  %v1108_v9 = vmul.f32 %v3865_v41, %v1084_v63  ;;  %v1396_v63 = vld [vmem:[%s3668_s25 + $0x70] sm:$0xff] }
 0x118   : > { %v1238_v44 = vadd.f32 %v3876_v52, %v1218_v37 }
 0x119   : > { %v1076_v45 = vpop.permute.xlu1 %1075 }
 0x11a   : > { %v1106_v46 = vmul.f32 %v3865_v41, %v1076_v45  ;;  %v1254_v47 = vmax.f32 %v1238_v44, 0.0 }
 0x11c   : > { %v1122_v50 = vadd.f32 %v1106_v46, %v1025_v43  ;;  %1326 = vmatmul.f32.gmra.mxu0 %v1254_v47 }
 0x11e   : > { %v1219_v54 = vadd.f32 %v1203_v49, %v1122_v50  ;;  %v1006_v8 = vpop.permute.xlu2 %1005 }
 0x11f   : > { %v1028_v15 = vmul.f32 %v3861_v39, %v1006_v8  ;;  %v1392_v8 = vld [vmem:[%s3668_s25 + $0x50] sm:$0xff] }
 0x120   : > { %v1239_v55 = vadd.f32 %v3876_v52, %v1219_v54 }
 0x121   : > { %v1125_v21 = vadd.f32 %v1109_v16, %v1028_v15  ;;  %v1385_v15 = vld [vmem:[%s3668_s25 + $0x18] sm:$0xff] }
 0x122   : > { %v996_v58 = vpop.permute.xlu1 %995  ;;  %v1255_v59 = vmax.f32 %v1239_v55, 0.0 }
 0x123   : > { %v1026_v60 = vmul.f32 %v3861_v39, %v996_v58 }
 0x124   : > { %1329 = vmatmul.f32.gmra.mxu0 %v1255_v59 }
 0x125   : > { %v1123_v62 = vadd.f32 %v1107_v57, %v1026_v60 }
 0x126   : > { %v1011_v18 = vpop.permute.xlu2 %1010 }
 0x127   : > { %v1220_v3 = vadd.f32 %v1204_v61, %v1123_v62  ;;  %v1029_v30 = vmul.f32 %v3861_v39, %v1011_v18  ;;  %v1397_v61 = vld [vmem:[%s3668_s25 + $0x78] sm:$0xff] }
 0x128   : > { %1398 = vmatpush.msra.mxu1 %v1397_v61  ;;  %v1539_v61 = vld [vmem:[%s3683_s8 + $0x98] sm:$0xff] }
 0x129   : > { %v1240_v4 = vadd.f32 %v3876_v52, %v1220_v3  ;;  %v1395_v3 = vld [vmem:[%s3668_s25 + $0x68] sm:$0xff] }
 0x12a   : > { %v1001_v5 = vpop.permute.xlu1 %1000  ;;  %1399 = vmatpush.msra.mxu1 %v1396_v63  ;;  %v1537_v63 = vld [vmem:[%s3683_s8 + $0x88] sm:$0xff] }
 0x12b   : > { %v1256_v6 = vmax.f32 %v1240_v4, 0.0  ;;  %v1027_v7 = vmul.f32 %v3861_v39, %v1001_v5  ;;  %v1394_v4 = vld [vmem:[%s3668_s25 + $0x60] sm:$0xff]  ;;  %v1393_v5 = vld [vmem:[%s3668_s25 + $0x58] sm:$0xff] }
 0x12c   : > { %1400 = vmatpush.msra.mxu1 %v1395_v3  ;;  %v1534_v3 = vld [vmem:[%s3683_s8 + $0x70] sm:$0xff] }
 0x12d   : > { %1332 = vmatmul.f32.gmra.mxu0 %v1256_v6  ;;  %v1124_v11 = vadd.f32 %v1108_v9, %v1027_v7  ;;  %v1391_v9 = vld [vmem:[%s3668_s25 + $0x48] sm:$0xff] }
 0x12e   : > { %1401 = vmatpush.msra.mxu1 %v1394_v4  ;;  %v1535_v4 = vld [vmem:[%s3683_s8 + $0x78] sm:$0xff] }
 0x12f   : > { %v1189_v28 = vpop.permute.xlu2 %1188 }
 0x130   : > { %v1207_v32 = vmul.f32 %v3867_v42, %v1189_v28  ;;  %1402 = vmatpush.msra.mxu1 %v1393_v5  ;;  %v1532_v5 = vld [vmem:[%s3683_s8 + $0x60] sm:$0xff] }
 0x132   : > { %1403 = vmatpush.msra.mxu1 %v1392_v8  ;;  %v1531_v8 = vld [vmem:[%s3683_s8 + $0x58] sm:$0xff] }
 0x133   : > { %v1181_v10 = vpop.permute.xlu1 %1180 }
 0x134   : > { %v1205_v12 = vmul.f32 %v3867_v42, %v1181_v10  ;;  %1404 = vmatpush.msra.mxu1 %v1391_v9  ;;  %v1390_v10 = vld [vmem:[%s3668_s25 + $0x40] sm:$0xff] }
 0x136   : > { %v1221_v14 = vadd.f32 %v1205_v12, %v1124_v11  ;;  %1405 = vmatpush.msra.mxu1 %v1390_v10  ;;  %v1389_v11 = vld [vmem:[%s3668_s25 + $0x38] sm:$0xff]  ;;  %v1388_v12 = vld [vmem:[%s3668_s25 + $0x30] sm:$0xff]  ;;  %v1528_v10 = vld [vmem:[%s3683_s8 + $0x40] sm:$0xff] }
 0x138   : > { %v1241_v17 = vadd.f32 %v3876_v52, %v1221_v14  ;;  %1406 = vmatpush.msra.mxu1 %v1389_v11  ;;  %v1386_v14 = vld [vmem:[%s3668_s25 + $0x20] sm:$0xff]  ;;  %v1529_v11 = vld [vmem:[%s3683_s8 + $0x48] sm:$0xff] }
 0x13a   : > { %v1257_v19 = vmax.f32 %v1241_v17, 0.0  ;;  %1407 = vmatpush.msra.mxu1 %v1388_v12  ;;  %v1526_v12 = vld [vmem:[%s3683_s8 + $0x30] sm:$0xff] }
 0x13b   : > { %v1185_v20 = vpop.permute.xlu1 %1184 }
 0x13c   : > { %v1206_v22 = vmul.f32 %v3867_v42, %v1185_v20  ;;  %v1297_v23 = vpop.f32.mrf.mxu0  ;;  %1335 = vmatmul.f32.gmra.mxu0 %v1257_v19  ;;  %1408 = vmatpush.msra.mxu1 %v1387_v13  ;;  %v1384_v19 = vld [vmem:[%s3668_s25 + $0x10] sm:$0xff]  ;;  %v1383_v20 = vld [vmem:[%s3668_s25 + $0x8] sm:$0xff]  ;;  %v1527_v13 = vld [vmem:[%s3683_s8 + $0x38] sm:$0xff] }
 0x13d   : > { %v1298_v24 = vadd.f32 %v3953_v1, %v1297_v23  ;;  %v1382_v23 = vld [vmem:[%s3668_s25] sm:$0xff] }
 0x13e   : > { %v1222_v25 = vadd.f32 %v1206_v22, %v1125_v21  ;;  %1409 = vmatpush.msra.mxu1 %v1386_v14  ;;  %v1524_v14 = vld [vmem:[%s3683_s8 + $0x20] sm:$0xff] }
 0x13f   : > { %1435 = vmatmul.f32.vlgmr.msra.gmra.mxu2 %v1298_v24 }
 0x140   : > { %v1242_v26 = vadd.f32 %v3876_v52, %v1222_v25  ;;  %1410 = vmatpush.msra.mxu1 %v1385_v15  ;;  %v1525_v15 = vld [vmem:[%s3683_s8 + $0x28] sm:$0xff] }
 0x142   : > { %v1258_v27 = vmax.f32 %v1242_v26, 0.0  ;;  %1411 = vmatpush.msra.mxu1 %v1384_v19  ;;  %v1521_v19 = vld [vmem:[%s3683_s8 + $0x8] sm:$0xff] }
 0x144   : > { %v1092_v2 = vpop.permute.xlu1 %1091  ;;  %v1300_v29 = vpop.f32.mrf.mxu0  ;;  %1338 = vmatmul.f32.gmra.mxu0 %v1258_v27  ;;  %1412 = vmatpush.msra.mxu1 %v1383_v20 }
 0x145   : > { %v1110_v31 = vmul.f32 %v3865_v41, %v1092_v2  ;;  %v3962_v33 = vadd.f32 %v3953_v1, %v1300_v29 }
 0x146   : > { %1413 = vmatpush.msra.mxu1 %v1382_v23 }
 0x147   : > { %v1126_v0 = vadd.f32 %v1110_v31, %v1029_v30  ;;  %1438 = vmatmul.f32.gmra.mxu2 %v3962_v33 }
 0x149   : > { %v1223_v34 = vadd.f32 %v1207_v32, %v1126_v0 }
 0x14b   : > { %v1243_v35 = vadd.f32 %v3876_v52, %v1223_v34 }
 0x14c   : > { %v1303_v36 = vpop.f32.mrf.mxu0 }
 0x14d   : > { %v1259_v37 = vmax.f32 %v1243_v35, 0.0  ;;  %v3967_v38 = vadd.f32 %v3953_v1, %v1303_v36 }
 0x14f   : > { %1341 = vmatmul.f32.gmra.mxu0 %v1259_v37  ;;  %1441 = vmatmul.f32.gmra.mxu2 %v3967_v38 }
 0x154   : > { %v1306_v39 = vpop.f32.mrf.mxu0 }
 0x155   : > { %v3971_v41 = vadd.f32 %v3953_v1, %v1306_v39 }
 0x157   : > { %1444 = vmatmul.f32.gmra.mxu2 %v3971_v41 }
 0x15c   : > { %v1309_v42 = vpop.f32.mrf.mxu0 }
 0x15d   : > { %v1310_v40 = vadd.f32 %v3953_v1, %v1309_v42 }
 0x15f   : > { %v1345_v43 = vmax.f32 %v1298_v24, %v1310_v40  ;;  %1447 = vmatmul.f32.gmra.mxu2 %v1310_v40 }
 0x166   : > { %v1312_v52 = vpop.f32.mrf.mxu0 }
 0x167   : > { %v1313_v44 = vadd.f32 %v3953_v1, %v1312_v52 }
 0x169   : > { %v1346_v45 = vmax.f32 %v3962_v33, %v1313_v44  ;;  %1450 = vmatmul.f32.gmra.mxu2 %v1313_v44 }
 0x16e   : > { %v1315_v46 = vpop.f32.mrf.mxu0 }
 0x16f   : > { %v3978_v47 = vadd.f32 %v3953_v1, %v1315_v46  ;;  %v1551_v46 = vld [vmem:[%s3683_s8 + $0xf8] sm:$0xff] }
 0x170   : > { %1623 = vmatpush.msrb.mxu1 %v1551_v46 }
 0x171   : > { %v1347_v48 = vmax.f32 %v3967_v38, %v3978_v47  ;;  %1453 = vmatmul.f32.gmra.mxu2 %v3978_v47  ;;  %v1548_v47 = vld [vmem:[%s3683_s8 + $0xe0] sm:$0xff] }
 0x177   : > { %v1318_v49 = vpop.f32.mrf.mxu0 }
 0x178   : > { %v3984_v50 = vadd.f32 %v3953_v1, %v1318_v49  ;;  %v1549_v49 = vld [vmem:[%s3683_s8 + $0xe8] sm:$0xff] }
 0x179   : > { %1624 = vmatpush.msrb.mxu1 %v1549_v49 }
 0x17a   : > { %v1348_v51 = vmax.f32 %v3971_v41, %v3984_v50  ;;  %1456 = vmatmul.f32.gmra.mxu2 %v3984_v50  ;;  %v1546_v50 = vld [vmem:[%s3683_s8 + $0xd0] sm:$0xff] }
 0x186   : > { %v1321_v53 = vpop.f32.mrf.mxu0 }
 0x187   : > { %v1322_v54 = vadd.f32 %v3953_v1, %v1321_v53  ;;  %v1544_v53 = vld [vmem:[%s3683_s8 + $0xc0] sm:$0xff] }
 0x189   : > { %v1349_v55 = vmax.f32 %v1345_v43, %v1322_v54  ;;  %1459 = vmatmul.f32.gmra.mxu2 %v1322_v54  ;;  %v1545_v54 = vld [vmem:[%s3683_s8 + $0xc8] sm:$0xff] }
 0x18e   : > { %v1324_v56 = vpop.f32.mrf.mxu0 }
 0x18f   : > { %v1325_v57 = vadd.f32 %v3953_v1, %v1324_v56  ;;  %v1543_v56 = vld [vmem:[%s3683_s8 + $0xb8] sm:$0xff] }
 0x191   : > { %1462 = vmatmul.f32.gmra.mxu2 %v1325_v57  ;;  %v1350_v17 = vmax.f32 %v1346_v45, %v1325_v57  ;;  %v1550_v45 = vld [vmem:[%s3683_s8 + $0xf0] sm:$0xff]  ;;  %v1540_v57 = vld [vmem:[%s3683_s8 + $0xa0] sm:$0xff] }
 0x192   : > { %1558 = vmatpush.msra.mxu3 %v1550_v45 }
 0x194   : > { %1559 = vmatpush.msra.mxu3 %v1548_v47 }
 0x196   : > { %1560 = vmatpush.msra.mxu3 %v1546_v50 }
 0x198   : > { %1561 = vmatpush.msra.mxu3 %v1544_v53 }
 0x199   : > { %v1327_v58 = vpop.f32.mrf.mxu0 }
 0x19a   : > { %v1328_v59 = vadd.f32 %v3953_v1, %v1327_v58  ;;  %v1541_v58 = vld [vmem:[%s3683_s8 + $0xa8] sm:$0xff] }
 0x19c   : > { %1465 = vmatmul.f32.gmra.mxu2 %v1328_v59  ;;  %v1351_v28 = vmax.f32 %v1347_v48, %v1328_v59 }
 0x1a1   : > { %v1330_v60 = vpop.f32.mrf.mxu0 }
 0x1a2   : > { %v1331_v62 = vadd.f32 %v3953_v1, %v1330_v60  ;;  %v1538_v60 = vld [vmem:[%s3683_s8 + $0x90] sm:$0xff] }
 0x1a4   : > { %1468 = vmatmul.f32.gmra.mxu2 %v1331_v62  ;;  %v1352_v2 = vmax.f32 %v1348_v51, %v1331_v62  ;;  %v1547_v51 = vld [vmem:[%s3683_s8 + $0xd8] sm:$0xff]  ;;  %v1536_v62 = vld [vmem:[%s3683_s8 + $0x80] sm:$0xff] }
 0x1a5   : > { %1625 = vmatpush.msrb.mxu1 %v1547_v51 }
 0x1a7   : > { %1626 = vmatpush.msrb.mxu1 %v1545_v54 }
 0x1a9   : > { %1627 = vmatpush.msrb.mxu1 %v1543_v56 }
 0x1aa   : > { %v1333_v6 = vpop.f32.mrf.mxu0 }
 0x1ab   : > { %v1334_v7 = vadd.f32 %v3953_v1, %v1333_v6  ;;  %1628 = vmatpush.msrb.mxu1 %v1541_v58  ;;  %v1533_v6 = vld [vmem:[%s3683_s8 + $0x68] sm:$0xff] }
 0x1ad   : > { %1471 = vmatmul.f32.gmra.mxu2 %v1334_v7  ;;  %v1353_v21 = vmax.f32 %v1349_v55, %v1334_v7  ;;  %v1542_v55 = vld [vmem:[%s3683_s8 + $0xb0] sm:$0xff]  ;;  %1629 = vmatpush.msrb.mxu1 %v1539_v61 }
 0x1ae   : > { %1562 = vmatpush.msra.mxu3 %v1542_v55  ;;  %v1530_v7 = vld [vmem:[%s3683_s8 + $0x50] sm:$0xff] }
 0x1af   : > { %1630 = vmatpush.msrb.mxu1 %v1537_v63 }
 0x1b0   : > { %1563 = vmatpush.msra.mxu3 %v1540_v57 }
 0x1b1   : > { %1631 = vmatpush.msrb.mxu1 %v1535_v4 }
 0x1b2   : > { %1564 = vmatpush.msra.mxu3 %v1538_v60 }
 0x1b3   : > { %1632 = vmatpush.msrb.mxu1 %v1533_v6 }
 0x1b4   : > { %1565 = vmatpush.msra.mxu3 %v1536_v62 }
 0x1b5   : > { %1633 = vmatpush.msrb.mxu1 %v1531_v8 }
 0x1b6   : > { %1566 = vmatpush.msra.mxu3 %v1534_v3 }
 0x1b7   : > { %1634 = vmatpush.msrb.mxu1 %v1529_v11 }
 0x1b8   : > { %1567 = vmatpush.msra.mxu3 %v1532_v5 }
 0x1b9   : > { %v1336_v16 = vpop.f32.mrf.mxu0  ;;  %1635 = vmatpush.msrb.mxu1 %v1527_v13  ;;  %v1761_v13 = vld [vmem:[%s3693_s19 + $0xf8] sm:$0xff] }
 0x1ba   : > { %v1337_v18 = vadd.f32 %v3953_v1, %v1336_v16  ;;  %1568 = vmatpush.msra.mxu3 %v1530_v7  ;;  %v1522_v16 = vld [vmem:[%s3683_s8 + $0x10] sm:$0xff] }
 0x1bb   : > { %1636 = vmatpush.msrb.mxu1 %v1525_v15 }
 0x1bc   : > { %v1354_v22 = vmax.f32 %v1350_v17, %v1337_v18  ;;  %1474 = vmatmul.f32.gmra.mxu2 %v1337_v18  ;;  %1569 = vmatpush.msra.mxu3 %v1528_v10  ;;  %v1523_v17 = vld [vmem:[%s3683_s8 + $0x18] sm:$0xff]  ;;  %v1520_v18 = vld [vmem:[%s3683_s8] sm:$0xff]  ;;  %v1792_v10 = vld [vmem:[%s3693_s19 + $0x1f0] sm:$0xff] }
 0x1bd   : > { %1637 = vmatpush.msrb.mxu1 %v1523_v17  ;;  %1820 = vmatpush.msrb.mxu2 %v1792_v10  ;;  %v1759_v17 = vld [vmem:[%s3693_s19 + $0xe8] sm:$0xff] }
 0x1be   : > { %v1357_v24 = vmax.f32 %v1353_v21, %v1354_v22  ;;  %1570 = vmatpush.msra.mxu3 %v1526_v12  ;;  %v1760_v12 = vld [vmem:[%s3693_s19 + $0xf0] sm:$0xff] }
 0x1bf   : > { %1638 = vmatpush.msrb.mxu1 %v1521_v19  ;;  %1800 = vmatpush.msrb.mxu0 %v1760_v12  ;;  %v1732_v12 = vld [vmem:[%s3693_s19 + $0x10] sm:$0xff] }
 0x1c0   : > { %1571 = vmatpush.msra.mxu3 %v1524_v14  ;;  %v1790_v14 = vld [vmem:[%s3693_s19 + $0x1e0] sm:$0xff] }
 0x1c1   : > { %v1339_v25 = vpop.f32.mrf.mxu0  ;;  %1821 = vmatpush.msrb.mxu2 %v1790_v14 }
 0x1c2   : > { %v1340_v26 = vadd.f32 %v3953_v1, %v1339_v25  ;;  %v4016_v37 = vpop.f32.mrf.mxu2  ;;  %1572 = vmatpush.msra.mxu3 %v1522_v16  ;;  %v3582_v25 = vld [vmem:[%s3678_s3] ss:$0 sm:$0xff] }
 0x1c3   : > { %v1758_v16 = vld [vmem:[%s3693_s19 + $0xe0] sm:$0xff] }
 0x1c4   : > { %1477 = vmatmul.f32.gmra.mxu2 %v1340_v26  ;;  %v1355_v30 = vmax.f32 %v1351_v28, %v1340_v26  ;;  %1573 = vmatpush.msra.mxu3 %v1520_v18  ;;  %v1788_v18 = vld [vmem:[%s3693_s19 + $0x1d0] sm:$0xff] }
 0x1c5   : > { %1801 = vmatpush.msrb.mxu0 %v1758_v16  ;;  %1822 = vmatpush.msrb.mxu2 %v1788_v18  ;;  %v1735_v16 = vld [vmem:[%s3693_s19 + $0x28] sm:$0xff] }
 0x1c6   : > { %1840 = vmatpush.msrb.mxu3 %v1761_v13  ;;  %v1791_v18 = vld [vmem:[%s3693_s19 + $0x1e8] sm:$0xff] }
 0x1c8   : > { %1841 = vmatpush.msrb.mxu3 %v1759_v17  ;;  %v1793_v17 = vld [vmem:[%s3693_s19 + $0x1f8] sm:$0xff] }
 0x1cc   : > { %v1342_v27 = vpop.f32.mrf.mxu0 }
 0x1cd   : > { %v1343_v29 = vadd.f32 %v3953_v1, %v1342_v27  ;;  %v4018_v1 = vpop.f32.mrf.mxu2 }
 0x1cf   : > { %v1356_v31 = vmax.f32 %v1352_v2, %v1343_v29  ;;  %1480 = vmatmul.f32.gmra.mxu2 %v1343_v29 }
 0x1d1   : > { %v1358_v32 = vmax.f32 %v1355_v30, %v1356_v31 }
 0x1d3   : > { %v1359_v33 = vmax.f32 %v1357_v24, %v1358_v32 }
 0x1d5   : > { %v1360_v0 = vrot.slane %v1359_v33, 4  ;;  %v4020_v41 = vpop.f32.mrf.mxu2 }
 0x1d7   : > { %v1361_v34 = vmax.f32 %v1359_v33, %v1360_v0 }
 0x1d9   : > { %v1362_v35 = vrot.slane %v1361_v34, 2 }
 0x1db   : > { %v1363_v36 = vmax.f32 %v1361_v34, %v1362_v35 }
 0x1dd   : > { %v1364_v39 = vrot.slane %v1363_v36, 1  ;;  %v4022_v42 = vpop.f32.mrf.mxu2 }
 0x1df   : > { %v1365_v38 = vmax.f32 %v1363_v36, %v1364_v39 }
 0x1e1   : > { %1414 = vmatmul.f32.vlgmr.msra.gmra.mxu1 %v1365_v38 }
 0x1e5   : > { %v4024_v40 = vpop.f32.mrf.mxu2 }
 0x1ed   : > { %v4026_v43 = vpop.f32.mrf.mxu2 }
 0x1f5   : > { %v4028_v52 = vpop.f32.mrf.mxu2 }
 0x1fd   : > { %v4030_v44 = vpop.f32.mrf.mxu2 }
 0x20c   : > { %v4035_v48 = vpop.f32.mrf.mxu2 }
 0x214   : > { %v1463_v59 = vpop.f32.mrf.mxu2 }
 0x21f   : > { %v1466_v9 = vpop.f32.mrf.mxu2 }
 0x227   : > { %v1469_v20 = vpop.f32.mrf.mxu2 }
 0x230   : > { %v1472_v21 = vpop.f32.mrf.mxu2 }
 0x23f   : > { %v1475_v22 = vpop.f32.mrf.mxu2 }
 0x247   : > { %v1478_v26 = vpop.f32.mrf.mxu2 }
 0x252   : > { %v1481_v0 = vpop.f32.mrf.mxu2 }
 0x25e   : > { %v1415_v23 = vpop.f32.mrf.mxu1 }
 0x25f   : > { %v1418_v24 = vperm.slane %v1415_v23, 0 }
 0x261   : > { %v1437_v27 = vadd.f32 %v4016_v37, %v1418_v24  ;;  %v1440_v28 = vadd.f32 %v4018_v1, %v1418_v24  ;;  %v1461_v31 = vadd.f32 %v4035_v48, %v1418_v24  ;;  %v1464_v32 = vadd.f32 %v1463_v59, %v1418_v24 }
 0x262   : > { %v1467_v33 = vadd.f32 %v1466_v9, %v1418_v24  ;;  %v1470_v34 = vadd.f32 %v1469_v20, %v1418_v24  ;;  %v1473_v35 = vadd.f32 %v1472_v21, %v1418_v24  ;;  %v1476_v36 = vadd.f32 %v1475_v22, %v1418_v24  ;;  %v1756_v20 = vld [vmem:[%s3693_s19 + $0xd0] sm:$0xff]  ;;  %v1757_v21 = vld [vmem:[%s3693_s19 + $0xd8] sm:$0xff]  ;;  %v1786_v22 = vld [vmem:[%s3693_s19 + $0x1c0] sm:$0xff] }
 0x263   : > { %v1488_v2 = vadd.f32 %v3582_v25, %v1437_v27  ;;  %v1489_v30 = vadd.f32 %v3582_v25, %v1440_v28  ;;  %v1479_v39 = vadd.f32 %v1478_v26, %v1418_v24  ;;  %v1496_v38 = vadd.f32 %v3582_v25, %v1461_v31  ;;  %1802 = vmatpush.msrb.mxu0 %v1756_v20  ;;  %v1755_v26 = vld [vmem:[%s3693_s19 + $0xc8] sm:$0xff]  ;;  %v1784_v27 = vld [vmem:[%s3693_s19 + $0x1b0] sm:$0xff]  ;;  %v1782_v31 = vld [vmem:[%s3693_s19 + $0x1a0] sm:$0xff] }
 0x264   : > { %v1497_v45 = vadd.f32 %v3582_v25, %v1464_v32  ;;  %v1498_v46 = vadd.f32 %v3582_v25, %v1467_v33  ;;  %v1482_v37 = vadd.f32 %v1481_v0, %v1418_v24  ;;  %v1499_v47 = vadd.f32 %v3582_v25, %v1470_v34  ;;  %1842 = vmatpush.msrb.mxu3 %v1757_v21  ;;  %v1750_v0 = vld [vmem:[%s3693_s19 + $0xa0] sm:$0xff]  ;;  %v1751_v34 = vld [vmem:[%s3693_s19 + $0xa8] sm:$0xff]  ;;  %v1764_v20 = vld [vmem:[%s3693_s19 + $0x110] sm:$0xff] }
 0x265   : > { %v1504_v29 = vmax.f32 %v1488_v2, 0.0  ;;  %v1500_v1 = vadd.f32 %v3582_v25, %v1473_v35  ;;  %v1501_v49 = vadd.f32 %v3582_v25, %v1476_v36  ;;  %v1502_v50 = vadd.f32 %v3582_v25, %v1479_v39  ;;  %1823 = vmatpush.msrb.mxu2 %v1786_v22  ;;  %v1780_v35 = vld [vmem:[%s3693_s19 + $0x190] sm:$0xff]  ;;  %v1789_v21 = vld [vmem:[%s3693_s19 + $0x1d8] sm:$0xff]  ;;  %v1552_v22 = vld [vmem:[%s3688_s14] sm:$0x3] }
 0x266   : > { %v4070_v51 = vadd.f32 %v3582_v25, %v1482_v37  ;;  %v1505_v53 = vmax.f32 %v1489_v30, 0.0  ;;  %v1443_v48 = vadd.f32 %v4020_v41, %v1418_v24  ;;  %v1446_v56 = vadd.f32 %v4022_v42, %v1418_v24  ;;  %1843 = vmatpush.msrb.mxu3 %v1755_v26  ;;  %v1753_v30 = vld [vmem:[%s3693_s19 + $0xb8] sm:$0xff]  ;;  %v1787_v26 = vld [vmem:[%s3693_s19 + $0x1c8] sm:$0xff] }
 0x267   : > { %1574 = vmatmul.f32.vlgmr.msra.gmra.mxu3 %v1504_v29  ;;  %1639 = vmatmul.f32.vlgmr.msrb.gmra.mxu1 %v1504_v29  ;;  %v1449_v59 = vadd.f32 %v4024_v40, %v1418_v24  ;;  %v1452_v62 = vadd.f32 %v4026_v43, %v1418_v24  ;;  %v1455_v3 = vadd.f32 %v4028_v52, %v1418_v24  ;;  %v1512_v7 = vmax.f32 %v1496_v38, 0.0  ;;  %v1752_v29 = vld [vmem:[%s3693_s19 + $0xb0] sm:$0xff] }
 0x268   : > { %v1490_v54 = vadd.f32 %v3582_v25, %v1443_v48  ;;  %v1491_v57 = vadd.f32 %v3582_v25, %v1446_v56  ;;  %v1458_v5 = vadd.f32 %v4030_v44, %v1418_v24  ;;  %v1513_v43 = vmax.f32 %v1497_v45, 0.0  ;;  %1824 = vmatpush.msrb.mxu2 %v1784_v27  ;;  %1844 = vmatpush.msrb.mxu3 %v1753_v30  ;;  %v1748_v38 = vld [vmem:[%s3693_s19 + $0x90] sm:$0xff]  ;;  %v1749_v45 = vld [vmem:[%s3693_s19 + $0x98] sm:$0xff] }
 0x269   : > { %v1492_v60 = vadd.f32 %v3582_v25, %v1449_v59  ;;  %v1493_v41 = vadd.f32 %v3582_v25, %v1452_v62  ;;  %v1494_v42 = vadd.f32 %v3582_v25, %v1455_v3  ;;  %v1514_v52 = vmax.f32 %v1498_v46, 0.0  ;;  %v1778_v46 = vld [vmem:[%s3693_s19 + $0x180] sm:$0xff]  ;;  %v1744_v48 = vld [vmem:[%s3693_s19 + $0x70] sm:$0xff]  ;;  %v1743_v59 = vld [vmem:[%s3693_s19 + $0x68] sm:$0xff] }
 0x26a   : > { %v1506_v55 = vmax.f32 %v1490_v54, 0.0  ;;  %v1507_v58 = vmax.f32 %v1491_v57, 0.0  ;;  %v1495_v40 = vadd.f32 %v3582_v25, %v1458_v5  ;;  %v1515_v8 = vmax.f32 %v1499_v47, 0.0  ;;  %v1754_v25 = vld [vmem:[%s3693_s19 + $0xc0] sm:$0xff]  ;;  %1825 = vmatpush.msrb.mxu2 %v1782_v31  ;;  %1845 = vmatpush.msrb.mxu3 %v1751_v34  ;;  %v1745_v54 = vld [vmem:[%s3693_s19 + $0x78] sm:$0xff]  ;;  %v1783_v34 = vld [vmem:[%s3693_s19 + $0x1a8] sm:$0xff] }
 0x26b   : > { %v1508_v61 = vmax.f32 %v1492_v60, 0.0  ;;  %v1509_v63 = vmax.f32 %v1493_v41, 0.0  ;;  %v1510_v4 = vmax.f32 %v1494_v42, 0.0  ;;  %v1516_v44 = vmax.f32 %v1500_v1, 0.0  ;;  %1803 = vmatpush.msrb.mxu0 %v1754_v25  ;;  %v1746_v1 = vld [vmem:[%s3693_s19 + $0x80] sm:$0xff]  ;;  %v1772_v60 = vld [vmem:[%s3693_s19 + $0x150] sm:$0xff] }
 0x26c   : > { %v1511_v6 = vmax.f32 %v1495_v40, 0.0  ;;  %v1517_v9 = vmax.f32 %v1501_v49, 0.0  ;;  %v1518_v11 = vmax.f32 %v1502_v50, 0.0  ;;  %v1519_v15 = vmax.f32 %v4070_v51, 0.0  ;;  %1826 = vmatpush.msrb.mxu2 %v1780_v35  ;;  %1846 = vmatpush.msrb.mxu3 %v1749_v45  ;;  %v1747_v49 = vld [vmem:[%s3693_s19 + $0x88] sm:$0xff]  ;;  %v1776_v50 = vld [vmem:[%s3693_s19 + $0x170] sm:$0xff] }
 0x26d   : > { %1804 = vmatpush.msrb.mxu0 %v1752_v29  ;;  %v1740_v41 = vld [vmem:[%s3693_s19 + $0x50] sm:$0xff]  ;;  %v1770_v3 = vld [vmem:[%s3693_s19 + $0x140] sm:$0xff]  ;;  %v1739_v40 = vld [vmem:[%s3693_s19 + $0x48] sm:$0xff] }
 0x26e   : > { %1827 = vmatpush.msrb.mxu2 %v1778_v46  ;;  %1847 = vmatpush.msrb.mxu3 %v1747_v49  ;;  %v1738_v5 = vld [vmem:[%s3693_s19 + $0x40] sm:$0xff]  ;;  %v1733_v27 = vld [vmem:[%s3693_s19 + $0x18] sm:$0xff]  ;;  %v1731_v35 = vld [vmem:[%s3693_s19 + $0x8] sm:$0xff] }
 0x26f   : > { %1577 = vmatmul.f32.gmra.mxu3 %v1505_v53  ;;  %1642 = vmatmul.f32.gmra.mxu1 %v1505_v53  ;;  %v1785_v29 = vld [vmem:[%s3693_s19 + $0x1b8] sm:$0xff]  ;;  %v1762_v31 = vld [vmem:[%s3693_s19 + $0x100] sm:$0xff] }
 0x270   : > { %1805 = vmatpush.msrb.mxu0 %v1750_v0  ;;  %1828 = vmatpush.msrb.mxu2 %v1776_v50  ;;  %v4184_v0 = vperm.slane %v1552_v22, 1  ;;  %v1781_v46 = vld [vmem:[%s3693_s19 + $0x198] sm:$0xff] }
 0x271   : > { %1848 = vmatpush.msrb.mxu3 %v1745_v54  ;;  %v1779_v54 = vld [vmem:[%s3693_s19 + $0x188] sm:$0xff] }
 0x272   : > { %1806 = vmatpush.msrb.mxu0 %v1748_v38 }
 0x273   : > { %1849 = vmatpush.msrb.mxu3 %v1743_v59  ;;  %v1777_v59 = vld [vmem:[%s3693_s19 + $0x178] sm:$0xff] }
 0x274   : > { %1807 = vmatpush.msrb.mxu0 %v1746_v1 }
 0x276   : > { %1808 = vmatpush.msrb.mxu0 %v1744_v48 }
 0x277   : > { %1580 = vmatmul.f32.gmra.mxu3 %v1506_v55  ;;  %1645 = vmatmul.f32.gmra.mxu1 %v1506_v55  ;;  %v1774_v55 = vld [vmem:[%s3693_s19 + $0x160] sm:$0xff] }
 0x278   : > { %1829 = vmatpush.msrb.mxu2 %v1774_v55 }
 0x27a   : > { %1830 = vmatpush.msrb.mxu2 %v1772_v60 }
 0x27c   : > { %1831 = vmatpush.msrb.mxu2 %v1770_v3 }
 0x27f   : > { %1583 = vmatmul.f32.gmra.mxu3 %v1507_v58  ;;  %1648 = vmatmul.f32.gmra.mxu1 %v1507_v58  ;;  %v1742_v58 = vld [vmem:[%s3693_s19 + $0x60] sm:$0xff] }
 0x280   : > { %1809 = vmatpush.msrb.mxu0 %v1742_v58 }
 0x282   : > { %1810 = vmatpush.msrb.mxu0 %v1740_v41 }
 0x284   : > { %1811 = vmatpush.msrb.mxu0 %v1738_v5  ;;  %v1775_v5 = vld [vmem:[%s3693_s19 + $0x168] sm:$0xff] }
 0x287   : > { %1586 = vmatmul.f32.gmra.mxu3 %v1508_v61  ;;  %1651 = vmatmul.f32.gmra.mxu1 %v1508_v61 }
 0x28f   : > { %1589 = vmatmul.f32.gmra.mxu3 %v1509_v63  ;;  %1654 = vmatmul.f32.gmra.mxu1 %v1509_v63  ;;  %v1741_v63 = vld [vmem:[%s3693_s19 + $0x58] sm:$0xff] }
 0x290   : > { %1850 = vmatpush.msrb.mxu3 %v1741_v63 }
 0x292   : > { %1851 = vmatpush.msrb.mxu3 %v1739_v40 }
 0x297   : > { %1592 = vmatmul.f32.gmra.mxu3 %v1510_v4  ;;  %1657 = vmatmul.f32.gmra.mxu1 %v1510_v4 }
 0x29f   : > { %1595 = vmatmul.f32.gmra.mxu3 %v1511_v6  ;;  %1660 = vmatmul.f32.gmra.mxu1 %v1511_v6  ;;  %v1768_v6 = vld [vmem:[%s3693_s19 + $0x130] sm:$0xff] }
 0x2a0   : > { %1832 = vmatpush.msrb.mxu2 %v1768_v6 }
 0x2a7   : > { %1598 = vmatmul.f32.gmra.mxu3 %v1512_v7  ;;  %1663 = vmatmul.f32.gmra.mxu1 %v1512_v7 }
 0x2af   : > { %1601 = vmatmul.f32.gmra.mxu3 %v1513_v43  ;;  %1666 = vmatmul.f32.gmra.mxu1 %v1513_v43 }
 0x2b7   : > { %1604 = vmatmul.f32.gmra.mxu3 %v1514_v52  ;;  %1669 = vmatmul.f32.gmra.mxu1 %v1514_v52  ;;  %v1736_v52 = vld [vmem:[%s3693_s19 + $0x30] sm:$0xff] }
 0x2b8   : > { %1812 = vmatpush.msrb.mxu0 %v1736_v52 }
 0x2bf   : > { %1607 = vmatmul.f32.gmra.mxu3 %v1515_v8  ;;  %1672 = vmatmul.f32.gmra.mxu1 %v1515_v8  ;;  %v1737_v8 = vld [vmem:[%s3693_s19 + $0x38] sm:$0xff] }
 0x2c0   : > { %1852 = vmatpush.msrb.mxu3 %v1737_v8 }
 0x2c2   : > { %1853 = vmatpush.msrb.mxu3 %v1735_v16 }
 0x2c4   : > { %1854 = vmatpush.msrb.mxu3 %v1733_v27 }
 0x2c6   : > { %1855 = vmatpush.msrb.mxu3 %v1731_v35  ;;  %v1912_v35 = vld [vmem:[%s3703_s30 + $0xf0] sm:$0xff] }
 0x2c7   : > { %1610 = vmatmul.f32.gmra.mxu3 %v1516_v44  ;;  %1675 = vmatmul.f32.gmra.mxu1 %v1516_v44  ;;  %v1734_v44 = vld [vmem:[%s3693_s19 + $0x20] sm:$0xff] }
 0x2c8   : > { %1813 = vmatpush.msrb.mxu0 %v1734_v44  ;;  %1952 = vmatpush.msra.mxu1 %v1912_v35  ;;  %v1893_v35 = vld [vmem:[%s3703_s30 + $0x58] sm:$0xff] }
 0x2ca   : > { %1814 = vmatpush.msrb.mxu0 %v1732_v12 }
 0x2cf   : > { %1613 = vmatmul.f32.gmra.mxu3 %v1517_v9  ;;  %1678 = vmatmul.f32.gmra.mxu1 %v1517_v9  ;;  %v1766_v9 = vld [vmem:[%s3693_s19 + $0x120] sm:$0xff] }
 0x2d0   : > { %1833 = vmatpush.msrb.mxu2 %v1766_v9 }
 0x2d2   : > { %1834 = vmatpush.msrb.mxu2 %v1764_v20 }
 0x2d4   : > { %1835 = vmatpush.msrb.mxu2 %v1762_v31 }
 0x2d7   : > { %1616 = vmatmul.f32.gmra.mxu3 %v1518_v11  ;;  %1681 = vmatmul.f32.gmra.mxu1 %v1518_v11 }
 0x2df   : > { %1619 = vmatmul.f32.gmra.mxu3 %v1519_v15  ;;  %1684 = vmatmul.f32.gmra.mxu1 %v1519_v15  ;;  %v1730_v15 = vld [vmem:[%s3693_s19] sm:$0xff] }
 0x2e0   : > { %1815 = vmatpush.msrb.mxu0 %v1730_v15  ;;  %v1771_v15 = vld [vmem:[%s3693_s19 + $0x148] sm:$0xff] }
 0x2e2   : > { %1860 = vmatpush.msra.mxu0 %v1793_v17 }
 0x2e4   : > { %v4086_v19 = vpop.f32.mrf.mxu1  ;;  %1861 = vmatpush.msra.mxu0 %v1791_v18 }
 0x2e5   : > { %v1641_v1 = vadd.f32 %v4086_v19, %v4184_v0 }
 0x2e6   : > { %1862 = vmatpush.msra.mxu0 %v1789_v21  ;;  %v1769_v21 = vld [vmem:[%s3693_s19 + $0x138] sm:$0xff] }
 0x2e8   : > { %1863 = vmatpush.msra.mxu0 %v1787_v26 }
 0x2ea   : > { %v4091_v23 = vpop.f32.mrf.mxu3  ;;  %1864 = vmatpush.msra.mxu0 %v1785_v29 }
 0x2ec   : > { %v4093_v24 = vpop.f32.mrf.mxu1  ;;  %1865 = vmatpush.msra.mxu0 %v1783_v34  ;;  %v1767_v34 = vld [vmem:[%s3693_s19 + $0x128] sm:$0xff] }
 0x2ed   : > { %v1644_v49 = vadd.f32 %v4093_v24, %v4184_v0 }
 0x2ee   : > { %1866 = vmatpush.msra.mxu0 %v1781_v46 }
 0x2f0   : > { %1867 = vmatpush.msra.mxu0 %v1779_v54 }
 0x2f2   : > { %v4098_v28 = vpop.f32.mrf.mxu3  ;;  %1868 = vmatpush.msra.mxu0 %v1777_v59 }
 0x2f4   : > { %v4100_v2 = vpop.f32.mrf.mxu1  ;;  %1869 = vmatpush.msra.mxu0 %v1775_v5  ;;  %v1942_v5 = vld [vmem:[%s3703_s30 + $0x1e0] sm:$0xff] }
 0x2f5   : > { %v1647_v38 = vadd.f32 %v4100_v2, %v4184_v0  ;;  %v4202_v2 = vperm.slane %v1552_v22, 0 }
 0x2fa   : > { %v4105_v32 = vpop.f32.mrf.mxu3 }
 0x2fc   : > { %v4107_v33 = vpop.f32.mrf.mxu1 }
 0x2fd   : > { %v1650_v45 = vadd.f32 %v4107_v33, %v4184_v0  ;;  %v1709_v33 = vmax.f32 %v1641_v1, %v1647_v38  ;;  %v1910_v38 = vld [vmem:[%s3703_s30 + $0xe0] sm:$0xff] }
 0x2fe   : > { %1953 = vmatpush.msra.mxu1 %v1910_v38  ;;  %v1943_v38 = vld [vmem:[%s3703_s30 + $0x1e8] sm:$0xff] }
 0x2ff   : > { %v1710_v58 = vmax.f32 %v1644_v49, %v1650_v45 }
 0x302   : > { %v4112_v36 = vpop.f32.mrf.mxu3 }
 0x304   : > { %v4114_v39 = vpop.f32.mrf.mxu1 }
 0x305   : > { %v1653_v50 = vadd.f32 %v4114_v39, %v4184_v0  ;;  %v1582_v39 = vadd.f32 %v4105_v32, %v4202_v2  ;;  %v1579_v32 = vadd.f32 %v4098_v28, %v4202_v2 }
 0x307   : > { %v1711_v41 = vmax.f32 %v1709_v33, %v1653_v50  ;;  %v1908_v50 = vld [vmem:[%s3703_s30 + $0xd0] sm:$0xff] }
 0x308   : > { %1954 = vmatpush.msra.mxu1 %v1908_v50  ;;  %v1931_v50 = vld [vmem:[%s3703_s30 + $0x188] sm:$0xff] }
 0x30a   : > { %v4119_v37 = vpop.f32.mrf.mxu3 }
 0x30c   : > { %v4121_v47 = vpop.f32.mrf.mxu1 }
 0x30d   : > { %v1656_v48 = vadd.f32 %v4121_v47, %v4184_v0  ;;  %v1585_v47 = vadd.f32 %v4112_v36, %v4202_v2  ;;  %v1588_v36 = vadd.f32 %v4119_v37, %v4202_v2 }
 0x30f   : > { %v1712_v63 = vmax.f32 %v1710_v58, %v1656_v48  ;;  %v1689_v44 = vmax.f32 %v1579_v32, %v1585_v47  ;;  %v1913_v48 = vld [vmem:[%s3703_s30 + $0xf8] sm:$0xff]  ;;  %v1944_v47 = vld [vmem:[%s3703_s30 + $0x1f0] sm:$0xff] }
 0x310   : > { %1992 = vmatpush.msra.mxu3 %v1913_v48  ;;  %1972 = vmatpush.msra.mxu2 %v1944_v47  ;;  %v1940_v32 = vld [vmem:[%s3703_s30 + $0x1d0] sm:$0xff]  ;;  %v1929_v48 = vld [vmem:[%s3703_s30 + $0x178] sm:$0xff]  ;;  %v1923_v47 = vld [vmem:[%s3703_s30 + $0x148] sm:$0xff] }
 0x312   : > { %v4126_v51 = vpop.f32.mrf.mxu3  ;;  %1973 = vmatpush.msra.mxu2 %v1942_v5  ;;  %v1919_v5 = vld [vmem:[%s3703_s30 + $0x128] sm:$0xff] }
 0x313   : > { %v1591_v40 = vadd.f32 %v4126_v51, %v4202_v2 }
 0x314   : > { %v4128_v53 = vpop.f32.mrf.mxu1  ;;  %1974 = vmatpush.msra.mxu2 %v1940_v32  ;;  %v1917_v32 = vld [vmem:[%s3703_s30 + $0x118] sm:$0xff] }
 0x315   : > { %v1659_v19 = vadd.f32 %v4128_v53, %v4184_v0  ;;  %v1691_v16 = vmax.f32 %v1689_v44, %v1591_v40  ;;  %v1903_v44 = vld [vmem:[%s3703_s30 + $0xa8] sm:$0xff] }
 0x317   : > { %v1713_v6 = vmax.f32 %v1711_v41, %v1659_v19 }
 0x31a   : > { %v4133_v56 = vpop.f32.mrf.mxu3 }
 0x31b   : > { %v1594_v28 = vadd.f32 %v4133_v56, %v4202_v2 }
 0x31c   : > { %v4135_v57 = vpop.f32.mrf.mxu1 }
 0x31d   : > { %v1662_v24 = vadd.f32 %v4135_v57, %v4184_v0  ;;  %v1576_v57 = vadd.f32 %v4091_v23, %v4202_v2  ;;  %v1773_v23 = vld [vmem:[%s3693_s19 + $0x158] sm:$0xff] }
 0x31e   : > { %1870 = vmatpush.msra.mxu0 %v1773_v23 }
 0x31f   : > { %v1688_v8 = vmax.f32 %v1576_v57, %v1582_v39  ;;  %v1909_v39 = vld [vmem:[%s3703_s30 + $0xd8] sm:$0xff]  ;;  %v1907_v57 = vld [vmem:[%s3703_s30 + $0xc8] sm:$0xff] }
 0x320   : > { %1871 = vmatpush.msra.mxu0 %v1771_v15 }
 0x322   : > { %v4140_v61 = vpop.f32.mrf.mxu3  ;;  %1872 = vmatpush.msra.mxu0 %v1769_v21 }
 0x323   : > { %v1597_v37 = vadd.f32 %v4140_v61, %v4202_v2 }
 0x324   : > { %v4142_v62 = vpop.f32.mrf.mxu1  ;;  %1873 = vmatpush.msra.mxu0 %v1767_v34  ;;  %v1888_v34 = vld [vmem:[%s3703_s30 + $0x30] sm:$0xff] }
 0x325   : > { %v1665_v3 = vadd.f32 %v4142_v62, %v4184_v0  ;;  %v1714_v62 = vmax.f32 %v1712_v63, %v1662_v24  ;;  %v1693_v26 = vmax.f32 %v1691_v16, %v1597_v37  ;;  %v1906_v24 = vld [vmem:[%s3703_s30 + $0xc0] sm:$0xff]  ;;  %v1896_v16 = vld [vmem:[%s3703_s30 + $0x70] sm:$0xff] }
 0x326   : > { %1955 = vmatpush.msra.mxu1 %v1906_v24  ;;  %v1887_v24 = vld [vmem:[%s3703_s30 + $0x28] sm:$0xff] }
 0x327   : > { %v1715_v51 = vmax.f32 %v1713_v6, %v1665_v3 }
 0x32a   : > { %v4147_v42 = vpop.f32.mrf.mxu3 }
 0x32b   : > { %v1600_v17 = vadd.f32 %v4147_v42, %v4202_v2 }
 0x32c   : > { %v4149_v4 = vpop.f32.mrf.mxu1 }
 0x32d   : > { %v1668_v53 = vadd.f32 %v4149_v4, %v4184_v0 }
 0x32f   : > { %v1716_v9 = vmax.f32 %v1714_v62, %v1668_v53  ;;  %v1904_v53 = vld [vmem:[%s3703_s30 + $0xb0] sm:$0xff]  ;;  %v1902_v62 = vld [vmem:[%s3703_s30 + $0xa0] sm:$0xff] }
 0x330   : > { %1956 = vmatpush.msra.mxu1 %v1904_v53  ;;  %v1918_v53 = vld [vmem:[%s3703_s30 + $0x120] sm:$0xff] }
 0x332   : > { %v4154_v7 = vpop.f32.mrf.mxu3  ;;  %1957 = vmatpush.msra.mxu1 %v1902_v62  ;;  %v2048_v62 = vld [vmem:[%s3713_s12 + $0x70] sm:$0xff] }
 0x333   : > { %v1603_v56 = vadd.f32 %v4154_v7, %v4202_v2 }
 0x334   : > { %v4156_v43 = vpop.f32.mrf.mxu1 }
 0x335   : > { %v1671_v4 = vadd.f32 %v4156_v43, %v4184_v0  ;;  %v1695_v46 = vmax.f32 %v1693_v26, %v1603_v56  ;;  %v1930_v26 = vld [vmem:[%s3703_s30 + $0x180] sm:$0xff] }
 0x337   : > { %v1717_v18 = vmax.f32 %v1715_v51, %v1671_v4  ;;  %v1938_v4 = vld [vmem:[%s3703_s30 + $0x1c0] sm:$0xff] }
 0x338   : > { %1975 = vmatpush.msra.mxu2 %v1938_v4  ;;  %v2065_v4 = vld [vmem:[%s3713_s12 + $0xf8] sm:$0xff] }
 0x33a   : > { %v4162_v10 = vpop.f32.mrf.mxu3 }
 0x33b   : > { %v1606_v27 = vadd.f32 %v4162_v10, %v4202_v2 }
 0x33c   : > { %v4164_v11 = vpop.f32.mrf.mxu1 }
 0x33d   : > { %v1674_v52 = vadd.f32 %v4164_v11, %v4184_v0  ;;  %v1690_v11 = vmax.f32 %v1688_v8, %v1588_v36  ;;  %v1900_v8 = vld [vmem:[%s3703_s30 + $0x90] sm:$0xff] }
 0x33e   : > { %1958 = vmatpush.msra.mxu1 %v1900_v8  ;;  %v2047_v8 = vld [vmem:[%s3713_s12 + $0x68] sm:$0xff] }
 0x33f   : > { %v1718_v20 = vmax.f32 %v1716_v9, %v1674_v52  ;;  %v1692_v22 = vmax.f32 %v1690_v11, %v1594_v28  ;;  %v1936_v28 = vld [vmem:[%s3703_s30 + $0x1b0] sm:$0xff]  ;;  %v1898_v9 = vld [vmem:[%s3703_s30 + $0x80] sm:$0xff] }
 0x340   : > { %1976 = vmatpush.msra.mxu2 %v1936_v28  ;;  %1959 = vmatpush.msra.mxu1 %v1898_v9  ;;  %v2120_v28 = vld [vmem:[%s3718_s20 + $0x68] sm:$0xff] }
 0x341   : > { %v1694_v45 = vmax.f32 %v1692_v22, %v1600_v17  ;;  %v1899_v17 = vld [vmem:[%s3703_s30 + $0x88] sm:$0xff]  ;;  %v1892_v22 = vld [vmem:[%s3703_s30 + $0x50] sm:$0xff] }
 0x342   : > { %v4167_v13 = vpop.f32.mrf.mxu3  ;;  %1960 = vmatpush.msra.mxu1 %v1896_v16  ;;  %v2063_v9 = vld [vmem:[%s3713_s12 + $0xe8] sm:$0xff]  ;;  %v2118_v16 = vld [vmem:[%s3718_s20 + $0x58] sm:$0xff] }
 0x343   : > { %v1609_v42 = vadd.f32 %v4167_v13, %v4202_v2  ;;  %v1696_v54 = vmax.f32 %v1694_v45, %v1606_v27  ;;  %v1895_v27 = vld [vmem:[%s3703_s30 + $0x68] sm:$0xff]  ;;  %v1886_v45 = vld [vmem:[%s3703_s30 + $0x20] sm:$0xff] }
 0x344   : > { %v4169_v14 = vpop.f32.mrf.mxu1 }
 0x345   : > { %v1677_v12 = vadd.f32 %v4169_v14, %v4184_v0  ;;  %v1697_v33 = vmax.f32 %v1695_v46, %v1609_v42  ;;  %v1890_v42 = vld [vmem:[%s3703_s30 + $0x40] sm:$0xff]  ;;  %v1891_v46 = vld [vmem:[%s3703_s30 + $0x48] sm:$0xff] }
 0x347   : > { %v1719_v7 = vmax.f32 %v1717_v18, %v1677_v12  ;;  %v1901_v12 = vld [vmem:[%s3703_s30 + $0x98] sm:$0xff]  ;;  %v1894_v18 = vld [vmem:[%s3703_s30 + $0x60] sm:$0xff] }
 0x348   : > { %1961 = vmatpush.msra.mxu1 %v1894_v18  ;;  %v2061_v18 = vld [vmem:[%s3713_s12 + $0xd8] sm:$0xff] }
 0x34a   : > { %v4178_v25 = vpop.f32.mrf.mxu3  ;;  %1962 = vmatpush.msra.mxu1 %v1892_v22  ;;  %v1794_v22 = vld [vmem:[%s5266_s15] sm:$0x3]  ;;  %s3454_s15 = sshll.u32 %s5279_s10, 6  ;;  %s3633_s10 = smov 6  }
 0x34b   : > { %v1612_v10 = vadd.f32 %v4178_v25, %v4202_v2  ;;  %v1763_v25 = vld [vmem:[%s3693_s19 + $0x108] sm:$0xff] }
 0x34c   : > { %v1679_v30 = vpop.f32.mrf.mxu1  ;;  %1963 = vmatpush.msra.mxu1 %v1890_v42  ;;  %v2042_v42 = vld [vmem:[%s3713_s12 + $0x40] sm:$0xff] }
 0x34d   : > { %v1680_v43 = vadd.f32 %v1679_v30, %v4184_v0 }
 0x34e   : > { %1964 = vmatpush.msra.mxu1 %v1888_v34  ;;  %v1796_v34 = vperm.slane %v1794_v22, 0 }
 0x34f   : > { %v1720_v30 = vmax.f32 %v1718_v20, %v1680_v43  ;;  %v1934_v43 = vld [vmem:[%s3703_s30 + $0x1a0] sm:$0xff]  ;;  %v1932_v20 = vld [vmem:[%s3703_s30 + $0x190] sm:$0xff] }
 0x350   : > { %1977 = vmatpush.msra.mxu2 %v1934_v43  ;;  %1965 = vmatpush.msra.mxu1 %v1886_v45  ;;  %v2136_v43 = vld [vmem:[%s3718_s20 + $0xe8] sm:$0xff]  ;;  %v2058_v45 = vld [vmem:[%s3713_s12 + $0xc0] sm:$0xff] }
 0x352   : > { %v4204_v55 = vpop.f32.mrf.mxu3  ;;  %1978 = vmatpush.msra.mxu2 %v1932_v20  ;;  %v2117_v20 = vld [vmem:[%s3718_s20 + $0x50] sm:$0xff] }
 0x353   : > { %v1615_v13 = vadd.f32 %v4204_v55, %v4202_v2  ;;  %v1911_v55 = vld [vmem:[%s3703_s30 + $0xe8] sm:$0xff] }
 0x354   : > { %v1682_v60 = vpop.f32.mrf.mxu1  ;;  %1993 = vmatpush.msra.mxu3 %v1911_v55  ;;  %1979 = vmatpush.msra.mxu2 %v1930_v26  ;;  %v1925_v55 = vld [vmem:[%s3703_s30 + $0x158] sm:$0xff]  ;;  %v2060_v26 = vld [vmem:[%s3713_s12 + $0xd0] sm:$0xff] }
 0x355   : > { %v1683_v14 = vadd.f32 %v1682_v60, %v4184_v0  ;;  %v1698_v60 = vmax.f32 %v1696_v54, %v1612_v10  ;;  %v1699_v41 = vmax.f32 %v1697_v33, %v1615_v13  ;;  %v1941_v10 = vld [vmem:[%s3703_s30 + $0x1d8] sm:$0xff]  ;;  %v1939_v13 = vld [vmem:[%s3703_s30 + $0x1c8] sm:$0xff]  ;;  %v1926_v54 = vld [vmem:[%s3703_s30 + $0x160] sm:$0xff] }
 0x356   : > { %1994 = vmatpush.msra.mxu3 %v1909_v39  ;;  %v1889_v33 = vld [vmem:[%s3703_s30 + $0x38] sm:$0xff] }
 0x357   : > { %v1721_v1 = vmax.f32 %v1719_v7, %v1683_v14  ;;  %v1897_v14 = vld [vmem:[%s3703_s30 + $0x78] sm:$0xff]  ;;  %v1928_v7 = vld [vmem:[%s3703_s30 + $0x170] sm:$0xff] }
 0x358   : > { %1995 = vmatpush.msra.mxu3 %v1907_v57  ;;  %1980 = vmatpush.msra.mxu2 %v1928_v7  ;;  %v1885_v39 = vld [vmem:[%s3703_s30 + $0x18] sm:$0xff]  ;;  %v1916_v57 = vld [vmem:[%s3703_s30 + $0x110] sm:$0xff]  ;;  %v2059_v7 = vld [vmem:[%s3713_s12 + $0xc8] sm:$0xff] }
 0x35a   : > { %v1617_v61 = vpop.f32.mrf.mxu3  ;;  %1981 = vmatpush.msra.mxu2 %v1926_v54  ;;  %v2039_v54 = vld [vmem:[%s3713_s12 + $0x28] sm:$0xff] }
 0x35b   : > { %v1618_v58 = vadd.f32 %v1617_v61, %v4202_v2 }
 0x35c   : > { %v1685_v29 = vpop.f32.mrf.mxu1 }
 0x35d   : > { %v1686_v31 = vadd.f32 %v1685_v29, %v4184_v0  ;;  %v1765_v0 = vld [vmem:[%s3693_s19 + $0x118] sm:$0xff]  ;;  %v1700_v36 = vmax.f32 %v1698_v60, %v1618_v58  ;;  %v1927_v58 = vld [vmem:[%s3703_s30 + $0x168] sm:$0xff]  ;;  %v1882_v60 = vld [vmem:[%s3703_s30] sm:$0xff] }
 0x35e   : > { %1874 = vmatpush.msra.mxu0 %v1765_v0  ;;  %v1933_v0 = vld [vmem:[%s3703_s30 + $0x198] sm:$0xff] }
 0x35f   : > { %v1722_v49 = vmax.f32 %v1720_v30, %v1686_v31  ;;  %v1945_v31 = vld [vmem:[%s3703_s30 + $0x1f8] sm:$0xff] }
 0x360   : > { %1875 = vmatpush.msra.mxu0 %v1763_v25  ;;  %v1924_v25 = vld [vmem:[%s3703_s30 + $0x150] sm:$0xff] }
 0x361   : > { %v1723_v19 = vmax.f32 %v1721_v1, %v1722_v49  ;;  %v1937_v1 = vld [vmem:[%s3703_s30 + $0x1b8] sm:$0xff]  ;;  %v1935_v49 = vld [vmem:[%s3703_s30 + $0x1a8] sm:$0xff]  ;;  %1982 = vmatpush.msra.mxu2 %v1924_v25 }
 0x362   : > { %v1620_v59 = vpop.f32.mrf.mxu3 }
 0x363   : > { %v1724_v63 = vrot.slane %v1723_v19, 4  ;;  %v1621_v3 = vadd.f32 %v1620_v59, %v4202_v2  ;;  %v1905_v2 = vld [vmem:[%s3703_s30 + $0xb8] sm:$0xff]  ;;  %v1922_v59 = vld [vmem:[%s3703_s30 + $0x140] sm:$0xff] }
 0x364   : > { %1996 = vmatpush.msra.mxu3 %v1905_v2  ;;  %1983 = vmatpush.msra.mxu2 %v1922_v59  ;;  %v1915_v2 = vld [vmem:[%s3703_s30 + $0x108] sm:$0xff]  ;;  %v2038_v59 = vld [vmem:[%s3713_s12 + $0x20] sm:$0xff] }
 0x365   : > { %v1725_v40 = vmax.f32 %v1723_v19, %v1724_v63  ;;  %v1701_v6 = vmax.f32 %v1699_v41, %v1621_v3  ;;  %v1884_v19 = vld [vmem:[%s3703_s30 + $0x10] sm:$0xff]  ;;  %v1883_v63 = vld [vmem:[%s3703_s30 + $0x8] sm:$0xff]  ;;  %v1921_v3 = vld [vmem:[%s3703_s30 + $0x138] sm:$0xff] }
 0x366   : > { %1997 = vmatpush.msra.mxu3 %v1903_v44  ;;  %1966 = vmatpush.msra.mxu1 %v1884_v19  ;;  %v1920_v41 = vld [vmem:[%s3703_s30 + $0x130] sm:$0xff]  ;;  %v2112_v19 = vld [vmem:[%s3718_s20 + $0x28] sm:$0xff] }
 0x367   : > { %v1702_v52 = vmax.f32 %v1700_v36, %v1701_v6  ;;  %v1726_v23 = vrot.slane %v1725_v40, 2  ;;  %1984 = vmatpush.msra.mxu2 %v1920_v41  ;;  %v2049_v36 = vld [vmem:[%s3713_s12 + $0x78] sm:$0xff]  ;;  %v2064_v44 = vld [vmem:[%s3713_s12 + $0xf0] sm:$0xff] }
 0x368   : > { %1998 = vmatpush.msra.mxu3 %v1901_v12  ;;  %1967 = vmatpush.msra.mxu1 %v1882_v60  ;;  %v2122_v6 = vld [vmem:[%s3718_s20 + $0x78] sm:$0xff]  ;;  %v2119_v12 = vld [vmem:[%s3718_s20 + $0x60] sm:$0xff]  ;;  %v2128_v60 = vld [vmem:[%s3718_s20 + $0xa8] sm:$0xff] }
 0x369   : > { %v1703_v37 = vrot.slane %v1702_v52, 4  ;;  %v1727_v51 = vmax.f32 %v1725_v40, %v1726_v23  ;;  %1985 = vmatpush.msra.mxu2 %v1918_v53  ;;  %v1914_v40 = vld [vmem:[%s3703_s30 + $0x100] sm:$0xff]  ;;  %v2138_v23 = vld [vmem:[%s3718_s20 + $0xf8] sm:$0xff] }
 0x36a   : > { %1999 = vmatpush.msra.mxu3 %v1899_v17  ;;  %2067 = vmatpush.msrb.mxu1 %v2049_v36  ;;  %v2135_v17 = vld [vmem:[%s3718_s20 + $0xe0] sm:$0xff]  ;;  %v2110_v36 = vld [vmem:[%s3718_s20 + $0x18] sm:$0xff] }
 0x36b   : > { %v1704_v15 = vmax.f32 %v1702_v52, %v1703_v37  ;;  %v1728_v11 = vrot.slane %v1727_v51, 1  ;;  %1986 = vmatpush.msra.mxu2 %v1916_v57  ;;  %v2121_v52 = vld [vmem:[%s3718_s20 + $0x70] sm:$0xff]  ;;  %v2127_v57 = vld [vmem:[%s3718_s20 + $0xa0] sm:$0xff] }
 0x36c   : > { %2000 = vmatpush.msra.mxu3 %v1897_v14  ;;  %2068 = vmatpush.msrb.mxu1 %v2048_v62  ;;  %v2137_v37 = vld [vmem:[%s3718_s20 + $0xf0] sm:$0xff]  ;;  %v2134_v14 = vld [vmem:[%s3718_s20 + $0xd8] sm:$0xff] }
 0x36d   : > { %v4284_v56 = vmax.f32 %v1727_v51, %v1728_v11  ;;  %v1705_v61 = vrot.slane %v1704_v15, 2  ;;  %1987 = vmatpush.msra.mxu2 %v1914_v40  ;;  %v2046_v51 = vld [vmem:[%s3713_s12 + $0x60] sm:$0xff]  ;;  %v2036_v40 = vld [vmem:[%s3713_s12 + $0x10] sm:$0xff]  ;;  %v2053_v62 = vld [vmem:[%s3713_s12 + $0x98] sm:$0xff] }
 0x36e   : > { %2001 = vmatpush.msra.mxu3 %v1895_v27  ;;  %2069 = vmatpush.msrb.mxu1 %v2047_v8  ;;  %v2062_v11 = vld [vmem:[%s3713_s12 + $0xe0] sm:$0xff]  ;;  %v2116_v27 = vld [vmem:[%s3718_s20 + $0x48] sm:$0xff]  ;;  %v2109_v8 = vld [vmem:[%s3718_s20 + $0x10] sm:$0xff] }
 0x36f   : > { %1836 = vmatmul.f32.vlgmr.msrb.gmra.mxu2 %v4284_v56  ;;  %v1706_v21 = vmax.f32 %v1704_v15, %v1705_v61  ;;  %v2045_v15 = vld [vmem:[%s3713_s12 + $0x58] sm:$0xff]  ;;  %v2044_v61 = vld [vmem:[%s3713_s12 + $0x50] sm:$0xff] }
 0x370   : > { %2002 = vmatpush.msra.mxu3 %v1893_v35  ;;  %2087 = vmatpush.msrb.mxu2 %v2065_v4  ;;  %v2132_v35 = vld [vmem:[%s3718_s20 + $0xc8] sm:$0xff] }
 0x371   : > { %v1707_v29 = vrot.slane %v1706_v21, 1  ;;  %2070 = vmatpush.msrb.mxu1 %v2046_v51  ;;  %v2108_v51 = vld [vmem:[%s3718_s20 + $0x8] sm:$0xff] }
 0x372   : > { %2003 = vmatpush.msra.mxu3 %v1891_v46  ;;  %2088 = vmatpush.msrb.mxu2 %v2064_v44  ;;  %v2114_v46 = vld [vmem:[%s3718_s20 + $0x38] sm:$0xff]  ;;  %v2035_v44 = vld [vmem:[%s3713_s12 + $0x8] sm:$0xff] }
 0x373   : > { %v4295_v30 = vmax.f32 %v1706_v21, %v1707_v29  ;;  %2071 = vmatpush.msrb.mxu1 %v2045_v15  ;;  %v2043_v21 = vld [vmem:[%s3713_s12 + $0x48] sm:$0xff]  ;;  %v2133_v29 = vld [vmem:[%s3718_s20 + $0xd0] sm:$0xff]  ;;  %v2211_v15 = vld [vmem:[%s5267_s16 + $0xf8] sm:$0xff] }
 0x374   : > { %2004 = vmatpush.msra.mxu3 %v1889_v33  ;;  %2089 = vmatpush.msrb.mxu2 %v2063_v9  ;;  %v2034_v9 = vld [vmem:[%s3713_s12] sm:$0xff] }
 0x375   : > { %1816 = vmatmul.f32.vlgmr.msrb.gmra.mxu0 %v4295_v30  ;;  %1856 = vmatmul.f32.vlgmr.msrb.gmra.mxu3 %v4295_v30 }
 0x376   : > { %2012 = vmatpush.msrb.mxu0 %v1945_v31  ;;  %2005 = vmatpush.msra.mxu3 %v1887_v24  ;;  %v2115_v31 = vld [vmem:[%s3718_s20 + $0x40] sm:$0xff]  ;;  %v1797_v24 = vperm.slane %v1794_v22, 1  ;;  %v2504_v22 = vld [vmem:[%s5268_s18 + $0xe8] sm:$0xff] }
 0x377   : > { %2090 = vmatpush.msrb.mxu2 %v2062_v11  ;;  %2072 = vmatpush.msrb.mxu1 %v2044_v61  ;;  %v2506_v11 = vld [vmem:[%s5268_s18 + $0xf8] sm:$0xff]  ;;  %v2210_v61 = vld [vmem:[%s5267_s16 + $0xf0] sm:$0xff] }
 0x378   : > { %2013 = vmatpush.msrb.mxu0 %v1943_v38  ;;  %2006 = vmatpush.msra.mxu3 %v1885_v39  ;;  %v2041_v38 = vld [vmem:[%s3713_s12 + $0x38] sm:$0xff] }
 0x379   : > { %2091 = vmatpush.msrb.mxu2 %v2061_v18  ;;  %2073 = vmatpush.msrb.mxu1 %v2043_v21  ;;  %v2505_v18 = vld [vmem:[%s5268_s18 + $0xf0] sm:$0xff]  ;;  %v2209_v21 = vld [vmem:[%s5267_s16 + $0xe8] sm:$0xff] }
 0x37a   : > { %2014 = vmatpush.msrb.mxu0 %v1941_v10  ;;  %2007 = vmatpush.msra.mxu3 %v1883_v63  ;;  %v2131_v10 = vld [vmem:[%s3718_s20 + $0xc0] sm:$0xff] }
 0x37b   : > { %2092 = vmatpush.msrb.mxu2 %v2060_v26  ;;  %2074 = vmatpush.msrb.mxu1 %v2042_v42  ;;  %v2111_v63 = vld [vmem:[%s3718_s20 + $0x20] sm:$0xff]  ;;  %v2489_v26 = vld [vmem:[%s5268_s18 + $0x70] sm:$0xff] }
 0x37c   : > { %2015 = vmatpush.msrb.mxu0 %v1939_v13  ;;  %2140 = vmatpush.msrb.mxu3 %v2122_v6  ;;  %v2040_v13 = vld [vmem:[%s3713_s12 + $0x30] sm:$0xff]  ;;  %v2503_v42 = vld [vmem:[%s5268_s18 + $0xe0] sm:$0xff] }
 0x37d   : > { %1876 = vmatmul.f32.vlgmr.msra.gmra.mxu0 %v4284_v56  ;;  %2093 = vmatpush.msrb.mxu2 %v2059_v7  ;;  %v2488_v7 = vld [vmem:[%s5268_s18 + $0x68] sm:$0xff] }
 0x37e   : > { %2016 = vmatpush.msrb.mxu0 %v1937_v1  ;;  %2141 = vmatpush.msrb.mxu3 %v2121_v52  ;;  %v2052_v52 = vld [vmem:[%s3713_s12 + $0x90] sm:$0xff] }
 0x37f   : > { %2075 = vmatpush.msrb.mxu1 %v2041_v38  ;;  %2094 = vmatpush.msrb.mxu2 %v2058_v45  ;;  %v2206_v38 = vld [vmem:[%s5267_s16 + $0xd0] sm:$0xff]  ;;  %v2487_v45 = vld [vmem:[%s5268_s18 + $0x60] sm:$0xff] }
 0x380   : > { %2017 = vmatpush.msrb.mxu0 %v1935_v49  ;;  %2142 = vmatpush.msrb.mxu3 %v2120_v28  ;;  %v2057_v49 = vld [vmem:[%s3713_s12 + $0xb8] sm:$0xff]  ;;  %v2051_v28 = vld [vmem:[%s3713_s12 + $0x88] sm:$0xff] }
 0x381   : > { %2076 = vmatpush.msrb.mxu1 %v2040_v13  ;;  %2095 = vmatpush.msrb.mxu2 %v2057_v49  ;;  %v2205_v13 = vld [vmem:[%s5267_s16 + $0xc8] sm:$0xff] }
 0x382   : > { %2018 = vmatpush.msrb.mxu0 %v1933_v0  ;;  %2143 = vmatpush.msrb.mxu3 %v2119_v12  ;;  %v2113_v0 = vld [vmem:[%s3718_s20 + $0x30] sm:$0xff]  ;;  %v2050_v12 = vld [vmem:[%s3713_s12 + $0x80] sm:$0xff]  ;;  %v2500_v49 = vld [vmem:[%s5268_s18 + $0xc8] sm:$0xff] }
 0x383   : > { %2077 = vmatpush.msrb.mxu1 %v2039_v54  ;;  %v2499_v54 = vld [vmem:[%s5268_s18 + $0xc0] sm:$0xff] }
 0x384   : > { %2019 = vmatpush.msrb.mxu0 %v1931_v50  ;;  %2144 = vmatpush.msrb.mxu3 %v2118_v16  ;;  %v2107_v16 = vld [vmem:[%s3718_s20] sm:$0xff] }
 0x385   : > { %2078 = vmatpush.msrb.mxu1 %v2038_v59  ;;  %v2483_v59 = vld [vmem:[%s5268_s18 + $0x40] sm:$0xff] }
 0x386   : > { %2020 = vmatpush.msrb.mxu0 %v1929_v48  ;;  %2145 = vmatpush.msrb.mxu3 %v2117_v20  ;;  %v2130_v48 = vld [vmem:[%s3718_s20 + $0xb8] sm:$0xff] }
 0x387   : > { %v2490_v20 = vld [vmem:[%s5268_s18 + $0x78] sm:$0xff] }
 0x388   : > { %2021 = vmatpush.msrb.mxu0 %v1927_v58  ;;  %2146 = vmatpush.msrb.mxu3 %v2116_v27  ;;  %v2056_v58 = vld [vmem:[%s3713_s12 + $0xb0] sm:$0xff]  ;;  %v2193_v27 = vld [vmem:[%s5267_s16 + $0x68] sm:$0xff] }
 0x389   : > { %2096 = vmatpush.msrb.mxu2 %v2056_v58  ;;  %v2203_v58 = vld [vmem:[%s5267_s16 + $0xb8] sm:$0xff] }
 0x38a   : > { %2022 = vmatpush.msrb.mxu0 %v1925_v55  ;;  %2147 = vmatpush.msrb.mxu3 %v2115_v31  ;;  %v2129_v55 = vld [vmem:[%s3718_s20 + $0xb0] sm:$0xff]  ;;  %v2207_v31 = vld [vmem:[%s5267_s16 + $0xd8] sm:$0xff] }
 0x38c   : > { %2023 = vmatpush.msrb.mxu0 %v1923_v47  ;;  %2148 = vmatpush.msrb.mxu3 %v2114_v46  ;;  %v2055_v47 = vld [vmem:[%s3713_s12 + $0xa8] sm:$0xff]  ;;  %v2501_v46 = vld [vmem:[%s5268_s18 + $0xd0] sm:$0xff] }
 0x38d   : > { %2097 = vmatpush.msrb.mxu2 %v2055_v47  ;;  %v2187_v47 = vld [vmem:[%s5267_s16 + $0x38] sm:$0xff] }
 0x38e   : > { %2024 = vmatpush.msrb.mxu0 %v1921_v3  ;;  %2149 = vmatpush.msrb.mxu3 %v2113_v0  ;;  %v2037_v3 = vld [vmem:[%s3713_s12 + $0x18] sm:$0xff]  ;;  %v2190_v0 = vld [vmem:[%s5267_s16 + $0x50] sm:$0xff] }
 0x38f   : > { %2079 = vmatpush.msrb.mxu1 %v2037_v3  ;;  %v2186_v3 = vld [vmem:[%s5267_s16 + $0x30] sm:$0xff] }
 0x390   : > { %2025 = vmatpush.msrb.mxu0 %v1919_v5  ;;  %2150 = vmatpush.msrb.mxu3 %v2112_v19  ;;  %v2054_v5 = vld [vmem:[%s3713_s12 + $0xa0] sm:$0xff]  ;;  %v2484_v19 = vld [vmem:[%s5268_s18 + $0x48] sm:$0xff] }
 0x391   : > { %2098 = vmatpush.msrb.mxu2 %v2054_v5  ;;  %2080 = vmatpush.msrb.mxu1 %v2036_v40  ;;  %v2481_v5 = vld [vmem:[%s5268_s18 + $0x30] sm:$0xff]  ;;  %v2480_v40 = vld [vmem:[%s5268_s18 + $0x28] sm:$0xff] }
 0x392   : > { %2026 = vmatpush.msrb.mxu0 %v1917_v32  ;;  %2151 = vmatpush.msrb.mxu3 %v2111_v63  ;;  %v2496_v63 = vld [vmem:[%s5268_s18 + $0xa8] sm:$0xff] }
 0x393   : > { %2099 = vmatpush.msrb.mxu2 %v2053_v62  ;;  %2081 = vmatpush.msrb.mxu1 %v2035_v44  ;;  %v2184_v62 = vld [vmem:[%s5267_s16 + $0x20] sm:$0xff]  ;;  %v2478_v44 = vld [vmem:[%s5268_s18 + $0x18] sm:$0xff] }
 0x394   : > { %2027 = vmatpush.msrb.mxu0 %v1915_v2  ;;  %v2126_v2 = vld [vmem:[%s3718_s20 + $0x98] sm:$0xff]  ;;  %2152 = vmatpush.msrb.mxu3 %v2110_v36 }
 0x395   : > { %2100 = vmatpush.msrb.mxu2 %v2052_v52  ;;  %2082 = vmatpush.msrb.mxu1 %v2034_v9  ;;  %v2199_v36 = vld [vmem:[%s5267_s16 + $0x98] sm:$0xff]  ;;  %v2493_v52 = vld [vmem:[%s5268_s18 + $0x90] sm:$0xff] }
 0x396   : > { %2160 = vmatpush.msra.mxu0 %v2138_v23  ;;  %v2125_v23 = vld [vmem:[%s3718_s20 + $0x90] sm:$0xff]  ;;  %2153 = vmatpush.msrb.mxu3 %v2109_v8  ;;  %v2197_v8 = vld [vmem:[%s5267_s16 + $0x88] sm:$0xff] }
 0x397   : > { %2101 = vmatpush.msrb.mxu2 %v2051_v28  ;;  %v2492_v28 = vld [vmem:[%s5268_s18 + $0x88] sm:$0xff]  ;;  %v2477_v9 = vld [vmem:[%s5268_s18 + $0x10] sm:$0xff] }
 0x398   : > { %2161 = vmatpush.msra.mxu0 %v2137_v37  ;;  %v2124_v37 = vld [vmem:[%s3718_s20 + $0x88] sm:$0xff]  ;;  %2154 = vmatpush.msrb.mxu3 %v2108_v51  ;;  %v2196_v51 = vld [vmem:[%s5267_s16 + $0x80] sm:$0xff] }
 0x399   : > { %2102 = vmatpush.msrb.mxu2 %v2050_v12  ;;  %v2491_v12 = vld [vmem:[%s5268_s18 + $0x80] sm:$0xff] }
 0x39a   : > { %2162 = vmatpush.msra.mxu0 %v2136_v43  ;;  %v2123_v43 = vld [vmem:[%s3718_s20 + $0x80] sm:$0xff]  ;;  %2155 = vmatpush.msrb.mxu3 %v2107_v16 }
 0x39b   : > { %v2475_v16 = vld [vmem:[%s5268_s18] sm:$0xff] }
 0x39c   : > { %2163 = vmatpush.msra.mxu0 %v2135_v17  ;;  %v2195_v17 = vld [vmem:[%s5267_s16 + $0x78] sm:$0xff] }
 0x39e   : > { %2164 = vmatpush.msra.mxu0 %v2134_v14  ;;  %v2194_v14 = vld [vmem:[%s5267_s16 + $0x70] sm:$0xff] }
 0x3a0   : > { %2165 = vmatpush.msra.mxu0 %v2133_v29  ;;  %v2208_v29 = vld [vmem:[%s5267_s16 + $0xe0] sm:$0xff] }
 0x3a2   : > { %2166 = vmatpush.msra.mxu0 %v2132_v35  ;;  %v2192_v35 = vld [vmem:[%s5267_s16 + $0x60] sm:$0xff] }
 0x3a4   : > { %2167 = vmatpush.msra.mxu0 %v2131_v10  ;;  %v2191_v10 = vld [vmem:[%s5267_s16 + $0x58] sm:$0xff] }
 0x3a6   : > { %2168 = vmatpush.msra.mxu0 %v2130_v48  ;;  %v2485_v48 = vld [vmem:[%s5268_s18 + $0x50] sm:$0xff] }
 0x3a8   : > { %2169 = vmatpush.msra.mxu0 %v2129_v55  ;;  %v2202_v55 = vld [vmem:[%s5267_s16 + $0xb0] sm:$0xff] }
 0x3aa   : > { %2170 = vmatpush.msra.mxu0 %v2128_v60  ;;  %v2201_v60 = vld [vmem:[%s5267_s16 + $0xa8] sm:$0xff] }
 0x3ac   : > { %2171 = vmatpush.msra.mxu0 %v2127_v57  ;;  %v2495_v57 = vld [vmem:[%s5268_s18 + $0xa0] sm:$0xff] }
 0x3ae   : > { %2172 = vmatpush.msra.mxu0 %v2126_v2  ;;  %v2198_v2 = vld [vmem:[%s5267_s16 + $0x90] sm:$0xff] }
 0x3b0   : > { %2173 = vmatpush.msra.mxu0 %v2125_v23  ;;  %v2183_v23 = vld [vmem:[%s5267_s16 + $0x18] sm:$0xff] }
 0x3b2   : > { %2174 = vmatpush.msra.mxu0 %v2124_v37  ;;  %v2182_v37 = vld [vmem:[%s5267_s16 + $0x10] sm:$0xff] }
 0x3b4   : > { %2175 = vmatpush.msra.mxu0 %v2123_v43  ;;  %v2181_v43 = vld [vmem:[%s5267_s16 + $0x8] sm:$0xff] }
 0x3f2   : > { %v1817_v1 = vpop.f32.mrf.mxu0  ;;  %v1837_v33 = vpop.f32.mrf.mxu2 }
 0x3f3   : > { %v1818_v50 = vadd.f32 %v1817_v1, %v1796_v34  ;;  %v2502_v34 = vld [vmem:[%s5268_s18 + $0xd8] sm:$0xff] }
 0x3f4   : > { %v2486_v1 = vld [vmem:[%s5268_s18 + $0x58] sm:$0xff] }
 0x3f5   : > { %v1838_v25 = vadd.f32 %v1837_v33, %v1818_v50  ;;  %v2204_v50 = vld [vmem:[%s5267_s16 + $0xc0] sm:$0xff]  ;;  %v2189_v33 = vld [vmem:[%s5267_s16 + $0x48] sm:$0xff] }
 0x3f7   : > { %v1880_v39 = vmax.f32 %v1838_v25, 0.0  ;;  %v2498_v25 = vld [vmem:[%s5268_s18 + $0xb8] sm:$0xff] }
 0x3f8   : > { %v1857_v41 = vpop.f32.mrf.mxu3 }
 0x3f9   : > { %v1858_v53 = vadd.f32 %v1857_v41, %v1797_v24  ;;  %1968 = vmatmul.f32.vlgmr.msra.gmra.mxu1 %v1880_v39  ;;  %2008 = vmatmul.f32.vlgmr.msra.gmra.mxu3 %v1880_v39  ;;  %v2188_v24 = vld [vmem:[%s5267_s16 + $0x40] sm:$0xff]  ;;  %v2497_v39 = vld [vmem:[%s5268_s18 + $0xb0] sm:$0xff]  ;;  %v2482_v41 = vld [vmem:[%s5268_s18 + $0x38] sm:$0xff] }
 0x3fa   : > { %v1877_v32 = vpop.f32.mrf.mxu0  ;;  %2213 = vmatpush.msra.mxu1 %v2195_v17  ;;  %2508 = vmatpush.msra.mxu3 %v2490_v20  ;;  %v1946_v17 = vld [vmem:[%s5269_s22] sm:$0x3]  ;;  %s4707_s22 = scalar_lea.vmem %s3783_s27, %s3454_s15 }
 0x3fb   : > { %v1878_v6 = vadd.f32 %v1877_v32, %v1858_v53  ;;  %v2200_v53 = vld [vmem:[%s5267_s16 + $0xa0] sm:$0xff]  ;;  %v2185_v32 = vld [vmem:[%s5267_s16 + $0x28] sm:$0xff]  ;;  %v1948_v20 = vperm.slane %v1946_v17, 0 }
 0x3fc   : > { %2214 = vmatpush.msra.mxu1 %v2194_v14  ;;  %2509 = vmatpush.msra.mxu3 %v2489_v26 }
 0x3fd   : > { %v1881_v4 = vmax.f32 %v1878_v6, 0.0  ;;  %v2494_v6 = vld [vmem:[%s5268_s18 + $0x98] sm:$0xff] }
 0x3fe   : > { %2215 = vmatpush.msra.mxu1 %v2193_v27  ;;  %2510 = vmatpush.msra.mxu3 %v2488_v7 }
 0x3ff   : > { %1988 = vmatmul.f32.vlgmr.msra.gmra.mxu2 %v1881_v4  ;;  %2028 = vmatmul.f32.vlgmr.msrb.gmra.mxu0 %v1881_v4  ;;  %v2479_v4 = vld [vmem:[%s5268_s18 + $0x20] sm:$0xff] }
 0x400   : > { %2233 = vmatpush.msra.mxu2 %v2211_v15  ;;  %2528 = vmatpush.msrb.mxu0 %v2506_v11  ;;  %v2476_v15 = vld [vmem:[%s5268_s18 + $0x8] sm:$0xff]  ;;  %v2180_v11 = vld [vmem:[%s5267_s16] sm:$0xff] }
 0x401   : > { %2216 = vmatpush.msra.mxu1 %v2192_v35  ;;  %2511 = vmatpush.msra.mxu3 %v2487_v45  ;;  %v2066_v35 = vld [vmem:[%s5270_s23] sm:$0x1]  ;;  %s5277_s23 = sld [smem:[#allocation13_spill]] }
 0x402   : > { %2234 = vmatpush.msra.mxu2 %v2210_v61  ;;  %2529 = vmatpush.msrb.mxu0 %v2505_v18  ;;  %v1949_v61 = vperm.slane %v1946_v17, 1 }
 0x403   : > { %2217 = vmatpush.msra.mxu1 %v2191_v10  ;;  %2512 = vmatpush.msra.mxu3 %v2486_v1 }
 0x404   : > { %2235 = vmatpush.msra.mxu2 %v2209_v21  ;;  %2530 = vmatpush.msrb.mxu0 %v2504_v22 }
 0x405   : > { %2218 = vmatpush.msra.mxu1 %v2190_v0  ;;  %2513 = vmatpush.msra.mxu3 %v2485_v48  ;;  %v2139_v0 = vld [vmem:[%s5271_s26] sm:$0x1]  ;;  %s5098_s26 = scalar_lea.vmem %s3788_s4, %s3454_s15 }
 0x406   : > { %2236 = vmatpush.msra.mxu2 %v2208_v29  ;;  %2531 = vmatpush.msrb.mxu0 %v2503_v42 }
 0x407   : > { %2219 = vmatpush.msra.mxu1 %v2189_v33  ;;  %2514 = vmatpush.msra.mxu3 %v2484_v19 }
 0x408   : > { %2237 = vmatpush.msra.mxu2 %v2207_v31  ;;  %2532 = vmatpush.msrb.mxu0 %v2502_v34  ;;  %v2253_v34 = vlaneseq }
 0x409   : > { %2220 = vmatpush.msra.mxu1 %v2188_v24  ;;  %2515 = vmatpush.msra.mxu3 %v2483_v59 }
 0x40a   : > { %2238 = vmatpush.msra.mxu2 %v2206_v38  ;;  %2533 = vmatpush.msrb.mxu0 %v2501_v46  ;;  %v4466_v38 = vshrl.u32 %v2253_v34, 7  ;;  %v4468_v46 = vand.u32 127, %v2253_v34 }
 0x40b   : > { %2221 = vmatpush.msra.mxu1 %v2187_v47  ;;  %2516 = vmatpush.msra.mxu3 %v2482_v41 }
 0x40c   : > { %2239 = vmatpush.msra.mxu2 %v2205_v13  ;;  %2534 = vmatpush.msrb.mxu0 %v2500_v49  ;;  %v4471_v49 = vadd.s32 56, %v4466_v38  ;;  %vm2264_vm0 = vcmp.eq.s32.totalorder %v4466_v38, %v4468_v46  ;;  %vm2372_vm9 = vcmp.eq.s32.totalorder %v4468_v46, 0  ;;  %vm2375_vm10 = vcmp.eq.s32.totalorder %v4468_v46, 1 }
 0x40d   : > { %2222 = vmatpush.msra.mxu1 %v2186_v3  ;;  %2517 = vmatpush.msra.mxu3 %v2481_v5  ;;  %vm2378_vm11 = vcmp.eq.s32.totalorder %v4468_v46, 2 }
 0x40e   : > { %2240 = vmatpush.msra.mxu2 %v2204_v50  ;;  %2535 = vmatpush.msrb.mxu0 %v2499_v54  ;;  %v2212_v50 = vld [vmem:[%s5272_s28] sm:$0x1]  ;;  %vm2271_vm2 = vcmp.eq.s32.totalorder %v4471_v49, %v4468_v46  ;;  %v4629_v49 = vld [vmem:[%s5273_s1 + $0x28] sm:$0xff]  ;;  %s3632_s28 = smov 3  }
 0x40f   : > { %2223 = vmatpush.msra.mxu1 %v2185_v32  ;;  %2518 = vmatpush.msra.mxu3 %v2480_v40  ;;  %v2256_v40 = vadd.s32 16, %v4466_v38 }
 0x410   : > { %2241 = vmatpush.msra.mxu2 %v2203_v58  ;;  %2536 = vmatpush.msrb.mxu0 %v2498_v25  ;;  %v2255_v25 = vadd.s32 8, %v4466_v38 }
 0x411   : > { %2224 = vmatpush.msra.mxu1 %v2184_v62  ;;  %2519 = vmatpush.msra.mxu3 %v2479_v4  ;;  %vm2266_vm4 = vcmp.eq.s32.totalorder %v2256_v40, %v4468_v46  ;;  %v4657_v40 = vld [vmem:[%s5273_s1] sm:$0xff] }
 0x412   : > { %2242 = vmatpush.msra.mxu2 %v2202_v55  ;;  %2537 = vmatpush.msrb.mxu0 %v2497_v39  ;;  %vm2265_vm3 = vcmp.eq.s32.totalorder %v2255_v25, %v4468_v46 }
 0x413   : > { %2225 = vmatpush.msra.mxu1 %v2183_v23  ;;  %2520 = vmatpush.msra.mxu3 %v2478_v44 }
 0x414   : > { %2243 = vmatpush.msra.mxu2 %v2201_v60  ;;  %2538 = vmatpush.msrb.mxu0 %v2496_v63 }
 0x415   : > { %2226 = vmatpush.msra.mxu1 %v2182_v37  ;;  %2521 = vmatpush.msra.mxu3 %v2477_v9 }
 0x416   : > { %2244 = vmatpush.msra.mxu2 %v2200_v53  ;;  %2539 = vmatpush.msrb.mxu0 %v2495_v57 }
 0x417   : > { %2227 = vmatpush.msra.mxu1 %v2181_v43  ;;  %2522 = vmatpush.msra.mxu3 %v2476_v15  ;;  %v2258_v43 = vadd.s32 32, %v4466_v38 }
 0x418   : > { %2245 = vmatpush.msra.mxu2 %v2199_v36  ;;  %2540 = vmatpush.msrb.mxu0 %v2494_v6 }
 0x419   : > { %2228 = vmatpush.msra.mxu1 %v2180_v11  ;;  %2523 = vmatpush.msra.mxu3 %v2475_v16  ;;  %vm2268_vm6 = vcmp.eq.s32.totalorder %v2258_v43, %v4468_v46 }
 0x41a   : > { %2246 = vmatpush.msra.mxu2 %v2198_v2  ;;  %2541 = vmatpush.msrb.mxu0 %v2493_v52 }
 0x41c   : > { %2247 = vmatpush.msra.mxu2 %v2197_v8  ;;  %2542 = vmatpush.msrb.mxu0 %v2492_v28  ;;  %v2257_v8 = vadd.s32 24, %v4466_v38 }
 0x41e   : > { %2248 = vmatpush.msra.mxu2 %v2196_v51  ;;  %2543 = vmatpush.msrb.mxu0 %v2491_v12  ;;  %vm2267_vm5 = vcmp.eq.s32.totalorder %v2257_v8, %v4468_v46  ;;  %v3631_v8 = vmov 0.0  }
 0x476   : > { %v1969_v21 = vpop.f32.mrf.mxu1 }
 0x477   : > { %v1970_v27 = vadd.f32 %v1969_v21, %v1948_v20  ;;  %v2259_v20 = vadd.s32 40, %v4466_v38  ;;  %v4542_v21 = vld [vmem:[%s5273_s1 + $0x70] sm:$0xff] }
 0x479   : > { %vm2269_vm7 = vcmp.eq.s32.totalorder %v2259_v20, %v4468_v46 }
 0x47c   : > { %v2009_v18 = vpop.f32.mrf.mxu3  ;;  %v2029_v22 = vpop.f32.mrf.mxu0 }
 0x47d   : > { %v2010_v14 = vadd.f32 %v2009_v18, %v1949_v61 }
 0x47f   : > { %v2030_v26 = vadd.f32 %v2029_v22, %v2010_v14  ;;  %v4539_v14 = vld [vmem:[%s5273_s1 + $0x78] sm:$0xff] }
 0x481   : > { %v2033_v29 = vmax.f32 %v2030_v26, 0.0  ;;  %v4550_v26 = vld [vmem:[%s5273_s1 + $0x68] sm:$0xff] }
 0x482   : > { %v1989_v42 = vpop.f32.mrf.mxu2 }
 0x483   : > { %v1990_v7 = vadd.f32 %v1989_v42, %v1970_v27  ;;  %2103 = vmatmul.f32.vlgmr.msrb.gmra.mxu2 %v2033_v29  ;;  %2176 = vmatmul.f32.vlgmr.msra.gmra.mxu0 %v2033_v29  ;;  %v4562_v42 = vld [vmem:[%s5273_s1 + $0x60] sm:$0xff] }
 0x485   : > { %v2032_v31 = vmax.f32 %v1990_v7, 0.0 }
 0x487   : > { %2083 = vmatmul.f32.vlgmr.msrb.gmra.mxu1 %v2032_v31  ;;  %2156 = vmatmul.f32.vlgmr.msrb.gmra.mxu3 %v2032_v31 }
 0x488   : > { %2599 = vmatpush.msrb.mxu1 %v4539_v14  ;;  %2764 = vmatpush.msrb.mxu3 %v4539_v14 }
 0x48a   : > { %2600 = vmatpush.msrb.mxu1 %v4542_v21  ;;  %2765 = vmatpush.msrb.mxu3 %v4542_v21 }
 0x48b   : > { %2249 = vmatmul.f32.vlgmr.msra.gmra.mxu2 %v2033_v29  ;;  %2544 = vmatmul.f32.vlgmr.msrb.gmra.mxu0 %v4284_v56 }
 0x48c   : > { %2601 = vmatpush.msrb.mxu1 %v4550_v26  ;;  %2766 = vmatpush.msrb.mxu3 %v4550_v26 }
 0x48e   : > { %2602 = vmatpush.msrb.mxu1 %v4562_v42  ;;  %2767 = vmatpush.msrb.mxu3 %v4562_v42 }
 0x48f   : > { %2229 = vmatmul.f32.vlgmr.msra.gmra.mxu1 %v2032_v31  ;;  %2524 = vmatmul.f32.vlgmr.msra.gmra.mxu3 %v4295_v30  ;;  %v4568_v31 = vld [vmem:[%s5273_s1 + $0x58] sm:$0xff] }
 0x490   : > { %2603 = vmatpush.msrb.mxu1 %v4568_v31  ;;  %2768 = vmatpush.msrb.mxu3 %v4568_v31 }
 0x500   : > { %v2177_v33 = vpop.f32.mrf.mxu0 }
 0x504   : > { %v2084_v45 = vpop.f32.mrf.mxu1 }
 0x505   : > { %v2085_v10 = vadd.f32 %v2084_v45, %v2066_v35  ;;  %v2260_v45 = vadd.s32 48, %v4466_v38 }
 0x506   : > { %v2104_v13 = vpop.f32.mrf.mxu2 }
 0x507   : > { %v2105_v1 = vadd.f32 %v2104_v13, %v2085_v10  ;;  %v4576_v10 = vld [vmem:[%s5273_s1 + $0x50] sm:$0xff]  ;;  %vm2270_vm8 = vcmp.eq.s32.totalorder %v2260_v45, %v4468_v46 }
 0x508   : > { %2604 = vmatpush.msrb.mxu1 %v4576_v10  ;;  %2769 = vmatpush.msrb.mxu3 %v4576_v10 }
 0x509   : > { %v4476_v56 = vperm.slane %v2105_v1, 0  ;;  %v4584_v1 = vld [vmem:[%s5273_s1 + $0x48] sm:$0xff] }
 0x50a   : > { %v2157_v30 = vpop.f32.mrf.mxu3  ;;  %2605 = vmatpush.msrb.mxu1 %v4584_v1  ;;  %2770 = vmatpush.msrb.mxu3 %v4584_v1 }
 0x50b   : > { %v2158_v48 = vadd.f32 %v2157_v30, %v2139_v0  ;;  %v2273_v54 = vsel %vm2264_vm0, %v4476_v56, 0.0  ;;  %v2280_v39 = vsel %vm2271_vm2, %v4476_v56, 0.0  ;;  %v2274_v62 = vsel %vm2265_vm3, %v4476_v56, 0.0 }
 0x50c   : > { %v2230_v58 = vpop.f32.mrf.mxu1  ;;  %v2282_v19 = vsel %vm2281_vm1, %v2273_v54, 0.0  ;;  %v4495_v41 = vsel %vm2281_vm1, %v2280_v39, 0.0  ;;  %v2285_v52 = vsel %vm2281_vm1, %v2274_v62, 0.0  ;;  %v2275_v28 = vsel %vm2266_vm4, %v4476_v56, 0.0  ;;  %v4617_v39 = vld [vmem:[%s5273_s1 + $0x38] sm:$0xff] }
 0x50d   : > { %v2178_v24 = vadd.f32 %v2177_v33, %v2158_v48  ;;  %v2231_v55 = vadd.f32 %v2230_v58, %v2212_v50  ;;  %2283 = vadd.xlane.f32.xlu0 %v2282_v19  ;;  %v2288_v9 = vsel %vm2281_vm1, %v2275_v28, 0.0  ;;  %v2276_v11 = vsel %vm2267_vm5, %v4476_v56, 0.0 }
 0x50e   : > { %v2250_v59 = vpop.f32.mrf.mxu2  ;;  %v2291_v61 = vsel %vm2281_vm1, %v2276_v11, 0.0  ;;  %v2277_v27 = vsel %vm2268_vm6, %v4476_v56, 0.0  ;;  %v2278_v38 = vsel %vm2269_vm7, %v4476_v56, 0.0  ;;  %v2279_v33 = vsel %vm2270_vm8, %v4476_v56, 0.0 }
 0x50f   : > { %v4491_v47 = vperm.slane %v2178_v24, 0  ;;  %v2251_v60 = vadd.f32 %v2250_v59, %v2231_v55  ;;  %v2294_v34 = vsel %vm2281_vm1, %v2277_v27, 0.0  ;;  %v2297_v50 = vsel %vm2281_vm1, %v2278_v38, 0.0  ;;  %v4614_v59 = vld [vmem:[%s5273_s1 + $0x40] sm:$0xff] }
 0x510   : > { %v2300_v25 = vsel %vm2281_vm1, %v2279_v33, 0.0  ;;  %2606 = vmatpush.msrb.mxu1 %v4614_v59  ;;  %2771 = vmatpush.msrb.mxu3 %v4614_v59 }
 0x511   : > { %v4497_v63 = vperm.slane %v2251_v60, 0  ;;  %v2307_v3 = vsel %vm2264_vm0, %v4491_v47, 0.0  ;;  %v2308_v53 = vsel %vm2265_vm3, %v4491_v47, 0.0  ;;  %v2309_v2 = vsel %vm2266_vm4, %v4491_v47, 0.0  ;;  %v4634_v60 = vld [vmem:[%s5273_s1 + $0x20] sm:$0xff] }
 0x512   : > { %v2315_v5 = vsel %vm2281_vm1, %v2307_v3, 0.0  ;;  %v2318_v36 = vsel %vm2281_vm1, %v2308_v53, 0.0  ;;  %v2321_v23 = vsel %vm2281_vm1, %v2309_v2, 0.0  ;;  %v2310_v37 = vsel %vm2267_vm5, %v4491_v47, 0.0  ;;  %2607 = vmatpush.msrb.mxu1 %v4617_v39  ;;  %2772 = vmatpush.msrb.mxu3 %v4617_v39  ;;  %v4643_v3 = vld [vmem:[%s5273_s1 + $0x10] sm:$0xff]  ;;  %v2525_v62 = vpop.f32.mrf.mxu3 }
 0x513   : > { %2316 = vadd.xlane.f32.xlu1 %v2315_v5  ;;  %v2340_v57 = vsel %vm2264_vm0, %v4497_v63, 0.0  ;;  %v2341_v6 = vsel %vm2265_vm3, %v4497_v63, 0.0  ;;  %v2342_v44 = vsel %vm2266_vm4, %v4497_v63, 0.0  ;;  %v2324_v12 = vsel %vm2281_vm1, %v2310_v37, 0.0  ;;  %v4648_v5 = vld [vmem:[%s5273_s1 + $0x8] sm:$0xff] }
 0x514   : > { %v2348_v32 = vsel %vm2281_vm1, %v2340_v57, 0.0  ;;  %v2351_v4 = vsel %vm2281_vm1, %v2341_v6, 0.0  ;;  %v2354_v51 = vsel %vm2281_vm1, %v2342_v44, 0.0  ;;  %v2343_v15 = vsel %vm2267_vm5, %v4497_v63, 0.0  ;;  %v2507_v6 = vld [vmem:[%s5275_s0] sm:$0x1] }
 0x515   : > { %2349 = vadd.xlane.f32.xlu2 %v2348_v32  ;;  %2319 = vadd.xlane.f32.xlu0 %v2318_v36  ;;  %v2311_v16 = vsel %vm2268_vm6, %v4491_v47, 0.0  ;;  %v2357_v17 = vsel %vm2281_vm1, %v2343_v15, 0.0  ;;  %v2344_v22 = vsel %vm2268_vm6, %v4497_v63, 0.0  ;;  %v2312_v29 = vsel %vm2269_vm7, %v4491_v47, 0.0  ;;  %v2430_v2 = vld [vmem:[%s5276_s11] sm:$0x7] }
 0x516   : > { %v2327_v18 = vsel %vm2281_vm1, %v2311_v16, 0.0  ;;  %v2360_v7 = vsel %vm2281_vm1, %v2344_v22, 0.0  ;;  %v2330_v35 = vsel %vm2281_vm1, %v2312_v29, 0.0  ;;  %v2345_v13 = vsel %vm2269_vm7, %v4497_v63, 0.0 }
 0x517   : > { %v2313_v0 = vsel %vm2270_vm8, %v4491_v47, 0.0  ;;  %v2363_v30 = vsel %vm2281_vm1, %v2345_v13, 0.0  ;;  %v2346_v54 = vsel %vm2270_vm8, %v4497_v63, 0.0  ;;  %v2314_v58 = vsel %vm2271_vm2, %v4491_v47, 0.0  ;;  %v4622_v47 = vld [vmem:[%s5273_s1 + $0x30] sm:$0xff] }
 0x518   : > { %v2333_v48 = vsel %vm2281_vm1, %v2313_v0, 0.0  ;;  %v2366_v19 = vsel %vm2281_vm1, %v2346_v54, 0.0  ;;  %v2336_v24 = vsel %vm2281_vm1, %v2314_v58, 0.0  ;;  %v2347_v56 = vsel %vm2271_vm2, %v4497_v63, 0.0  ;;  %2773 = vmatpush.msrb.mxu3 %v4622_v47  ;;  %2608 = vmatpush.msrb.mxu1 %v4622_v47  ;;  %v2431_v63 = vld [vmem:[%s5274_s2] sm:$0x3] }
 0x519   : > { %v2369_v55 = vsel %vm2281_vm1, %v2347_v56, 0.0  ;;  %v2725_v53 = vmul.f32 0.05, %v2431_v63  ;;  %v2548_v57 = vmul.f32 -0.05, %v2431_v63  ;;  %v4675_v44 = vsel %vm2372_vm9, 1.0, %v3631_v8 }
 0x51a   : > { %2609 = vmatpush.msrb.mxu1 %v4629_v49  ;;  %2774 = vmatpush.msrb.mxu3 %v4629_v49  ;;  %v4677_v28 = vperm.slane %v2430_v2, 0  ;;  %v4679_v37 = vperm.slane %v2430_v2, 1  ;;  %v4686_v43 = vperm.slane %v2430_v2, 2  ;;  %v4691_v16 = vsel %vm2378_vm11, 1.0, %v3631_v8  ;;  %s3634_s2 = smov 9  }
 0x51b   : > { %2352 = vadd.xlane.f32.xlu1 %v2351_v4  ;;  %v2924_v32 = vrot.slane %v2725_v53, 1 }
 0x51c   : > { %2610 = vmatpush.msrb.mxu1 %v4634_v60  ;;  %2775 = vmatpush.msrb.mxu3 %v4634_v60 }
 0x51d   : > { %2286 = vadd.xlane.f32.xlu2 %v2285_v52  ;;  %2322 = vadd.xlane.f32.xlu0 %v2321_v23  ;;  %v4652_v36 = vadd.f32 %v2924_v32, %v2548_v57  ;;  %v2526_v52 = vadd.f32 %v2525_v62, %v2507_v6  ;;  %v2550_v23 = vrot.slane %v2548_v57, 1  ;;  %v3123_v22 = vadd.f32 %v2924_v32, %v2725_v53 }
 0x51f   : > { %v2552_v46 = vadd.f32 %v2550_v23, %v2548_v57  ;;  %v4721_v13 = vperm.slane %v3123_v22, 0 }
 0x523   : > { %2355 = vadd.xlane.f32.xlu1 %v2354_v51  ;;  %v2545_v51 = vpop.f32.mrf.mxu0 }
 0x525   : > { %2289 = vadd.xlane.f32.xlu2 %v2288_v9  ;;  %2325 = vadd.xlane.f32.xlu0 %v2324_v12  ;;  %v4684_v9 = vsel %vm2375_vm10, 1.0, %v3631_v8  ;;  %v2546_v12 = vadd.f32 %v2545_v51, %v2526_v52 }
 0x52b   : > { %2358 = vadd.xlane.f32.xlu1 %v2357_v17  ;;  %v2726_v17 = vadd.f32 %v2725_v53, %v2550_v23 }
 0x52d   : > { %2292 = vadd.xlane.f32.xlu2 %v2291_v61  ;;  %2328 = vadd.xlane.f32.xlu0 %v2327_v18  ;;  %v4714_v45 = vperm.slane %v2726_v17, 0 }
 0x533   : > { %2361 = vadd.xlane.f32.xlu1 %v2360_v7  ;;  %v4702_v7 = vperm.slane %v2546_v12, 0 }
 0x535   : > { %2295 = vadd.xlane.f32.xlu2 %v2294_v34  ;;  %2331 = vadd.xlane.f32.xlu0 %v2330_v35  ;;  %v4712_v35 = vperm.slane %v2552_v46, 0 }
 0x53b   : > { %2364 = vadd.xlane.f32.xlu1 %v2363_v30 }
 0x53d   : > { %2298 = vadd.xlane.f32.xlu2 %v2297_v50  ;;  %2334 = vadd.xlane.f32.xlu0 %v2333_v48 }
 0x543   : > { %2367 = vadd.xlane.f32.xlu1 %v2366_v19 }
 0x545   : > { %2301 = vadd.xlane.f32.xlu2 %v2300_v25  ;;  %2337 = vadd.xlane.f32.xlu0 %v2336_v24 }
 0x54b   : > { %2370 = vadd.xlane.f32.xlu1 %v2369_v55 }
 0x54d   : > { %2304 = vadd.xlane.f32.xlu2 %v4495_v41  ;;  %v4637_v41 = vld [vmem:[%s5273_s1 + $0x18] sm:$0xff] }
 0x54e   : > { %2611 = vmatpush.msrb.mxu1 %v4637_v41  ;;  %2776 = vmatpush.msrb.mxu3 %v4637_v41 }
 0x550   : > { %2612 = vmatpush.msrb.mxu1 %v4643_v3  ;;  %2777 = vmatpush.msrb.mxu3 %v4643_v3 }
 0x552   : > { %2613 = vmatpush.msrb.mxu1 %v4648_v5  ;;  %2778 = vmatpush.msrb.mxu3 %v4648_v5 }
 0x554   : > { %2614 = vmatpush.msrb.mxu1 %v4657_v40  ;;  %2779 = vmatpush.msrb.mxu3 %v4657_v40 }
 0x556   : > { %2964 = vmatpush.msra.mxu1 %v4539_v14  ;;  %3161 = vmatpush.msra.mxu3 %v4539_v14 }
 0x558   : > { %2965 = vmatpush.msra.mxu1 %v4542_v21  ;;  %3162 = vmatpush.msra.mxu3 %v4542_v21 }
 0x55a   : > { %2966 = vmatpush.msra.mxu1 %v4550_v26  ;;  %3163 = vmatpush.msra.mxu3 %v4550_v26 }
 0x55c   : > { %2967 = vmatpush.msra.mxu1 %v4562_v42  ;;  %3164 = vmatpush.msra.mxu3 %v4562_v42 }
 0x55e   : > { %2968 = vmatpush.msra.mxu1 %v4568_v31  ;;  %3165 = vmatpush.msra.mxu3 %v4568_v31 }
 0x560   : > { %2969 = vmatpush.msra.mxu1 %v4576_v10  ;;  %3166 = vmatpush.msra.mxu3 %v4576_v10  ;;  %v4719_v10 = vperm.slane %v4652_v36, 0 }
 0x562   : > { %2970 = vmatpush.msra.mxu1 %v4584_v1  ;;  %3167 = vmatpush.msra.mxu3 %v4584_v1 }
 0x564   : > { %2971 = vmatpush.msra.mxu1 %v4614_v59  ;;  %3168 = vmatpush.msra.mxu3 %v4614_v59 }
 0x566   : > { %2972 = vmatpush.msra.mxu1 %v4617_v39  ;;  %3169 = vmatpush.msra.mxu3 %v4617_v39 }
 0x568   : > { %2973 = vmatpush.msra.mxu1 %v4622_v47  ;;  %3170 = vmatpush.msra.mxu3 %v4622_v47 }
 0x56a   : > { %2974 = vmatpush.msra.mxu1 %v4629_v49  ;;  %3171 = vmatpush.msra.mxu3 %v4629_v49 }
 0x56c   : > { %2975 = vmatpush.msra.mxu1 %v4634_v60  ;;  %3172 = vmatpush.msra.mxu3 %v4634_v60 }
 0x56e   : > { %2976 = vmatpush.msra.mxu1 %v4637_v41  ;;  %3173 = vmatpush.msra.mxu3 %v4637_v41 }
 0x570   : > { %2977 = vmatpush.msra.mxu1 %v4643_v3  ;;  %3174 = vmatpush.msra.mxu3 %v4643_v3 }
 0x572   : > { %2978 = vmatpush.msra.mxu1 %v4648_v5  ;;  %3175 = vmatpush.msra.mxu3 %v4648_v5 }
 0x574   : > { %2979 = vmatpush.msra.mxu1 %v4657_v40  ;;  %3176 = vmatpush.msra.mxu3 %v4657_v40 }
 0x580   : > { %v2284_v4 = vpop.xlane.xlu0 %2283 }
 0x581   : > { %v2381_v15 = vmul.f32 %v4675_v44, %v2284_v4  ;;  %v2433_v61 = vmul.f32 %v4677_v28, %v2284_v4 }
 0x586   : > { %v2317_v11 = vpop.xlane.xlu1 %2316 }
 0x587   : > { %v2389_v18 = vmul.f32 %v4684_v9, %v2317_v11  ;;  %v2442_v20 = vmul.f32 %v4679_v37, %v2317_v11 }
 0x588   : > { %v2350_v14 = vpop.xlane.xlu2 %2349  ;;  %v2320_v21 = vpop.xlane.xlu0 %2319 }
 0x589   : > { %v2397_v26 = vadd.f32 %v2389_v18, %v2381_v15  ;;  %v2450_v27 = vadd.f32 %v2442_v20, %v2433_v61  ;;  %v2405_v29 = vmul.f32 %v4691_v16, %v2350_v14  ;;  %v2459_v42 = vmul.f32 %v4686_v43, %v2350_v14 }
 0x58a   : > { %v2390_v58 = vmul.f32 %v4684_v9, %v2320_v21  ;;  %v2443_v19 = vmul.f32 %v4679_v37, %v2320_v21 }
 0x58b   : > { %v4710_v31 = vadd.f32 %v2405_v29, %v2397_v26  ;;  %v2467_v34 = vadd.f32 %v2459_v42, %v2450_v27 }
 0x58d   : > { %2422 = vst.msk [vmem:[%s4707_s22] sm:$0xff] %vm2421_vm12, %v4710_v31  ;;  %v2554_v1 = vadd.f32 %v4702_v7, %v2467_v34 }
 0x58e   : > { %v2353_v38 = vpop.xlane.xlu1 %2352 }
 0x58f   : > { %v2563_v0 = vadd.f32 %v4712_v35, %v2554_v1  ;;  %v2728_v30 = vadd.f32 %v4714_v45, %v2554_v1  ;;  %v4734_v54 = vadd.f32 %v4719_v10, %v2554_v1  ;;  %v4737_v33 = vadd.f32 %v4721_v13, %v2554_v1 }
 0x590   : > { %v2287_v50 = vpop.xlane.xlu2 %2286  ;;  %v2323_v48 = vpop.xlane.xlu0 %2322  ;;  %v2406_v59 = vmul.f32 %v4691_v16, %v2353_v38  ;;  %v2460_v39 = vmul.f32 %v4686_v43, %v2353_v38 }
 0x591   : > { %v2382_v25 = vmul.f32 %v4675_v44, %v2287_v50  ;;  %v2434_v24 = vmul.f32 %v4677_v28, %v2287_v50  ;;  %v2571_v56 = vmax.f32 %v2563_v0, 0.0  ;;  %v2736_v55 = vmax.f32 %v2728_v30, 0.0 }
 0x592   : > { %v2391_v36 = vmul.f32 %v4684_v9, %v2323_v48  ;;  %v2444_v6 = vmul.f32 %v4679_v37, %v2323_v48 }
 0x593   : > { %v2398_v47 = vadd.f32 %v2390_v58, %v2382_v25  ;;  %v2451_v49 = vadd.f32 %v2443_v19, %v2434_v24  ;;  %2615 = vmatmul.f32.vlgmr.msrb.gmra.mxu1 %v2571_v56  ;;  %2780 = vmatmul.f32.vlgmr.msrb.gmra.mxu3 %v2736_v55 }
 0x595   : > { %v4748_v60 = vadd.f32 %v2406_v59, %v2398_v47  ;;  %v2468_v63 = vadd.f32 %v2460_v39, %v2451_v49 }
 0x596   : > { %v2356_v53 = vpop.xlane.xlu1 %2355 }
 0x597   : > { %2423 = vst.msk [vmem:[%s4707_s22 + $0x8] sm:$0xff] %vm2421_vm12, %v4748_v60  ;;  %v2555_v41 = vadd.f32 %v4702_v7, %v2468_v63  ;;  %v2407_v23 = vmul.f32 %v4691_v16, %v2356_v53  ;;  %v2461_v8 = vmul.f32 %v4686_v43, %v2356_v53 }
 0x598   : > { %v2290_v57 = vpop.xlane.xlu2 %2289  ;;  %v2326_v32 = vpop.xlane.xlu0 %2325 }
 0x599   : > { %v2383_v3 = vmul.f32 %v4675_v44, %v2290_v57  ;;  %v2435_v62 = vmul.f32 %v4677_v28, %v2290_v57  ;;  %v2564_v2 = vadd.f32 %v4712_v35, %v2555_v41  ;;  %v2729_v4 = vadd.f32 %v4714_v45, %v2555_v41 }
 0x59a   : > { %v4766_v5 = vadd.f32 %v4719_v10, %v2555_v41  ;;  %v4769_v52 = vadd.f32 %v4721_v13, %v2555_v41  ;;  %v2392_v14 = vmul.f32 %v4684_v9, %v2326_v32  ;;  %v2445_v21 = vmul.f32 %v4679_v37, %v2326_v32 }
 0x59b   : > { %v2399_v51 = vadd.f32 %v2391_v36, %v2383_v3  ;;  %v2452_v12 = vadd.f32 %v2444_v6, %v2435_v62  ;;  %v2572_v15 = vmax.f32 %v2564_v2, 0.0  ;;  %v2737_v11 = vmax.f32 %v2729_v4, 0.0 }
 0x59d   : > { %v4773_v40 = vadd.f32 %v2407_v23, %v2399_v51  ;;  %v2469_v46 = vadd.f32 %v2461_v8, %v2452_v12  ;;  %2618 = vmatmul.f32.gmra.mxu1 %v2572_v15  ;;  %2783 = vmatmul.f32.gmra.mxu3 %v2737_v11 }
 0x59e   : > { %v2359_v17 = vpop.xlane.xlu1 %2358 }
 0x59f   : > { %2424 = vst.msk [vmem:[%s4707_s22 + $0x10] sm:$0xff] %vm2421_vm12, %v4773_v40  ;;  %v2556_v61 = vadd.f32 %v4702_v7, %v2469_v46  ;;  %v2408_v1 = vmul.f32 %v4691_v16, %v2359_v17  ;;  %v2462_v38 = vmul.f32 %v4686_v43, %v2359_v17 }
 0x5a0   : > { %v2293_v18 = vpop.xlane.xlu2 %2292  ;;  %v2329_v20 = vpop.xlane.xlu0 %2328 }
 0x5a1   : > { %v2384_v22 = vmul.f32 %v4675_v44, %v2293_v18  ;;  %v2436_v26 = vmul.f32 %v4677_v28, %v2293_v18  ;;  %v2565_v27 = vadd.f32 %v4712_v35, %v2556_v61  ;;  %v2730_v29 = vadd.f32 %v4714_v45, %v2556_v61 }
 0x5a2   : > { %v4786_v42 = vadd.f32 %v4719_v10, %v2556_v61  ;;  %v4789_v34 = vadd.f32 %v4721_v13, %v2556_v61  ;;  %v2393_v55 = vmul.f32 %v4684_v9, %v2329_v20  ;;  %v2446_v59 = vmul.f32 %v4679_v37, %v2329_v20 }
 0x5a3   : > { %v2400_v0 = vadd.f32 %v2392_v14, %v2384_v22  ;;  %v2453_v30 = vadd.f32 %v2445_v21, %v2436_v26  ;;  %v2573_v50 = vmax.f32 %v2565_v27, 0.0  ;;  %v2738_v48 = vmax.f32 %v2730_v29, 0.0 }
 0x5a5   : > { %v4793_v58 = vadd.f32 %v2408_v1, %v2400_v0  ;;  %v2470_v19 = vadd.f32 %v2462_v38, %v2453_v30  ;;  %2621 = vmatmul.f32.gmra.mxu1 %v2573_v50  ;;  %2786 = vmatmul.f32.gmra.mxu3 %v2738_v48 }
 0x5a6   : > { %v2362_v25 = vpop.xlane.xlu1 %2361 }
 0x5a7   : > { %2425 = vst.msk [vmem:[%s4707_s22 + $0x18] sm:$0xff] %vm2421_vm12, %v4793_v58  ;;  %v2557_v24 = vadd.f32 %v4702_v7, %v2470_v19  ;;  %v2409_v32 = vmul.f32 %v4691_v16, %v2362_v25  ;;  %v2463_v36 = vmul.f32 %v4686_v43, %v2362_v25 }
 0x5a8   : > { %v2296_v56 = vpop.xlane.xlu2 %2295  ;;  %v2332_v49 = vpop.xlane.xlu0 %2331 }
 0x5a9   : > { %v2385_v39 = vmul.f32 %v4675_v44, %v2296_v56  ;;  %v2437_v47 = vmul.f32 %v4677_v28, %v2296_v56  ;;  %v2566_v63 = vadd.f32 %v4712_v35, %v2557_v24  ;;  %v2731_v53 = vadd.f32 %v4714_v45, %v2557_v24 }
 0x5aa   : > { %v4806_v41 = vadd.f32 %v4719_v10, %v2557_v24  ;;  %v4809_v57 = vadd.f32 %v4721_v13, %v2557_v24  ;;  %v2394_v15 = vmul.f32 %v4684_v9, %v2332_v49  ;;  %v2447_v11 = vmul.f32 %v4679_v37, %v2332_v49 }
 0x5ab   : > { %v2401_v6 = vadd.f32 %v2393_v55, %v2385_v39  ;;  %v2454_v3 = vadd.f32 %v2446_v59, %v2437_v47  ;;  %v2574_v62 = vmax.f32 %v2566_v63, 0.0  ;;  %v2739_v2 = vmax.f32 %v2731_v53, 0.0 }
 0x5ad   : > { %v4813_v4 = vadd.f32 %v2409_v32, %v2401_v6  ;;  %v2471_v23 = vadd.f32 %v2463_v36, %v2454_v3  ;;  %2624 = vmatmul.f32.gmra.mxu1 %v2574_v62  ;;  %2789 = vmatmul.f32.gmra.mxu3 %v2739_v2 }
 0x5ae   : > { %v2365_v8 = vpop.xlane.xlu1 %2364 }
 0x5af   : > { %2426 = vst.msk [vmem:[%s4707_s22 + $0x20] sm:$0xff] %vm2421_vm12, %v4813_v4  ;;  %v2558_v51 = vadd.f32 %v4702_v7, %v2471_v23  ;;  %v2410_v21 = vmul.f32 %v4691_v16, %v2365_v8  ;;  %v2464_v22 = vmul.f32 %v4686_v43, %v2365_v8 }
 0x5b0   : > { %v2299_v12 = vpop.xlane.xlu2 %2298  ;;  %v2335_v29 = vpop.xlane.xlu0 %2334 }
 0x5b1   : > { %v2386_v46 = vmul.f32 %v4675_v44, %v2299_v12  ;;  %v2438_v17 = vmul.f32 %v4677_v28, %v2299_v12  ;;  %v2567_v61 = vadd.f32 %v4712_v35, %v2558_v51  ;;  %v2732_v18 = vadd.f32 %v4714_v45, %v2558_v51 }
 0x5b2   : > { %v4826_v20 = vadd.f32 %v4719_v10, %v2558_v51  ;;  %v4829_v14 = vadd.f32 %v4721_v13, %v2558_v51  ;;  %v2395_v25 = vmul.f32 %v4684_v9, %v2335_v29  ;;  %v2448_v24 = vmul.f32 %v4679_v37, %v2335_v29 }
 0x5b3   : > { %v2402_v26 = vadd.f32 %v2394_v15, %v2386_v46  ;;  %v2455_v27 = vadd.f32 %v2447_v11, %v2438_v17  ;;  %v2575_v1 = vmax.f32 %v2567_v61, 0.0  ;;  %v2740_v38 = vmax.f32 %v2732_v18, 0.0 }
 0x5b5   : > { %v4833_v0 = vadd.f32 %v2410_v21, %v2402_v26  ;;  %v2472_v30 = vadd.f32 %v2464_v22, %v2455_v27  ;;  %2627 = vmatmul.f32.gmra.mxu1 %v2575_v1  ;;  %2792 = vmatmul.f32.gmra.mxu3 %v2740_v38 }
 0x5b6   : > { %v2368_v50 = vpop.xlane.xlu1 %2367 }
 0x5b7   : > { %2427 = vst.msk [vmem:[%s4707_s22 + $0x28] sm:$0xff] %vm2421_vm12, %v4833_v0  ;;  %v2559_v48 = vadd.f32 %v4702_v7, %v2472_v30  ;;  %v2411_v63 = vmul.f32 %v4691_v16, %v2368_v50  ;;  %v2465_v53 = vmul.f32 %v4686_v43, %v2368_v50 }
 0x5b8   : > { %v2302_v19 = vpop.xlane.xlu2 %2301  ;;  %v2338_v23 = vpop.xlane.xlu0 %2337 }
 0x5b9   : > { %v2387_v56 = vmul.f32 %v4675_v44, %v2302_v19  ;;  %v2439_v55 = vmul.f32 %v4677_v28, %v2302_v19  ;;  %v2568_v59 = vadd.f32 %v4712_v35, %v2559_v48  ;;  %v2733_v39 = vadd.f32 %v4714_v45, %v2559_v48 }
 0x5ba   : > { %v4846_v47 = vadd.f32 %v4719_v10, %v2559_v48  ;;  %v4849_v49 = vadd.f32 %v4721_v13, %v2559_v48  ;;  %v2396_v12 = vmul.f32 %v4684_v9, %v2338_v23  ;;  %v2449_v15 = vmul.f32 %v4679_v37, %v2338_v23 }
 0x5bb   : > { %v2403_v32 = vadd.f32 %v2395_v25, %v2387_v56  ;;  %v2456_v36 = vadd.f32 %v2448_v24, %v2439_v55  ;;  %v2576_v6 = vmax.f32 %v2568_v59, 0.0  ;;  %v2741_v3 = vmax.f32 %v2733_v39, 0.0  ;;  %v4918_v24 = vld [vmem:[%s3773_s6 + $0x58] sm:$0xff]  ;;  %v4921_v56 = vld [vmem:[%s3773_s6 + $0x50] sm:$0xff] }
 0x5bc   : > { %v2936_v25 = vmax.f32 %v4734_v54, 0.0  ;;  %v2937_v54 = vmax.f32 %v4766_v5, 0.0  ;;  %v4926_v5 = vld [vmem:[%s3773_s6 + $0x48] sm:$0xff]  ;;  %v2938_v55 = vmax.f32 %v4786_v42, 0.0  ;;  %v3135_v59 = vmax.f32 %v4789_v34, 0.0  ;;  %v4946_v39 = vld [vmem:[%s3773_s6 + $0x38] sm:$0xff] }
 0x5bd   : > { %v4853_v62 = vadd.f32 %v2411_v63, %v2403_v32  ;;  %v2473_v2 = vadd.f32 %v2465_v53, %v2456_v36  ;;  %2630 = vmatmul.f32.gmra.mxu1 %v2576_v6  ;;  %2795 = vmatmul.f32.gmra.mxu3 %v2741_v3  ;;  %v4949_v63 = vld [vmem:[%s3773_s6 + $0x30] sm:$0xff]  ;;  %v4954_v42 = vld [vmem:[%s3773_s6 + $0x28] sm:$0xff]  ;;  %v4961_v34 = vld [vmem:[%s3773_s6 + $0x20] sm:$0xff]  ;;  %v2939_v53 = vmax.f32 %v4806_v41, 0.0  ;;  %v3136_v32 = vmax.f32 %v4809_v57, 0.0 }
 0x5be   : > { %v2371_v51 = vpop.xlane.xlu1 %2370  ;;  %v4974_v36 = vld [vmem:[%s3773_s6 + $0x18] sm:$0xff]  ;;  %v2940_v41 = vmax.f32 %v4826_v20, 0.0  ;;  %v3137_v57 = vmax.f32 %v4829_v14, 0.0  ;;  %v4985_v6 = vld [vmem:[%s3773_s6 + $0x10] sm:$0xff]  ;;  %v4988_v3 = vld [vmem:[%s3773_s6 + $0x8] sm:$0xff]  ;;  %v2941_v20 = vmax.f32 %v4846_v47, 0.0 }
 0x5bf   : > { %2428 = vst.msk [vmem:[%s4707_s22 + $0x30] sm:$0xff] %vm2421_vm12, %v4853_v62  ;;  %v2560_v8 = vadd.f32 %v4702_v7, %v2473_v2  ;;  %v2412_v21 = vmul.f32 %v4691_v16, %v2371_v51  ;;  %v2466_v22 = vmul.f32 %v4686_v43, %v2371_v51  ;;  %v4995_v2 = vld [vmem:[%s3773_s6] sm:$0xff]  ;;  %v3138_v14 = vmax.f32 %v4849_v49, 0.0 }
 0x5c0   : > { %v2305_v11 = vpop.xlane.xlu2 %2304  ;;  %v5036_v51 = vld [vmem:[%s5277_s23] ss:$0 sm:$0xff] }
 0x5c1   : > { %v2388_v46 = vmul.f32 %v4675_v44, %v2305_v11  ;;  %v2440_v17 = vmul.f32 %v4677_v28, %v2305_v11  ;;  %v2569_v61 = vadd.f32 %v4712_v35, %v2560_v8  ;;  %v2734_v18 = vadd.f32 %v4714_v45, %v2560_v8 }
 0x5c2   : > { %v4868_v26 = vadd.f32 %v4719_v10, %v2560_v8  ;;  %v4871_v9 = vadd.f32 %v4721_v13, %v2560_v8 }
 0x5c3   : > { %v2404_v37 = vadd.f32 %v2396_v12, %v2388_v46  ;;  %v2457_v27 = vadd.f32 %v2449_v15, %v2440_v17  ;;  %v2577_v44 = vmax.f32 %v2569_v61, 0.0  ;;  %v2742_v29 = vmax.f32 %v2734_v18, 0.0  ;;  %v5046_v46 = vld [vmem:[%s5277_s23] ss:$0 sm:$0xff] }
 0x5c4   : > { %v2942_v47 = vmax.f32 %v4868_v26, 0.0  ;;  %v3139_v49 = vmax.f32 %v4871_v9, 0.0 }
 0x5c5   : > { %v4873_v1 = vadd.f32 %v2412_v21, %v2404_v37  ;;  %v2474_v28 = vadd.f32 %v2466_v22, %v2457_v27  ;;  %2633 = vmatmul.f32.gmra.mxu1 %v2577_v44  ;;  %2798 = vmatmul.f32.gmra.mxu3 %v2742_v29 }
 0x5c7   : > { %2429 = vst.msk [vmem:[%s4707_s22 + $0x38] sm:$0xff] %vm2421_vm12, %v4873_v1  ;;  %v2561_v43 = vadd.f32 %v4702_v7, %v2474_v28  ;;  %v3133_v7 = vmax.f32 %v4737_v33, 0.0  ;;  %v3134_v33 = vmax.f32 %v4769_v52, 0.0  ;;  %v4933_v52 = vld [vmem:[%s3773_s6 + $0x40] sm:$0xff] }
 0x5c9   : > { %v2570_v16 = vadd.f32 %v4712_v35, %v2561_v43  ;;  %v2735_v38 = vadd.f32 %v4714_v45, %v2561_v43  ;;  %v4882_v30 = vadd.f32 %v4719_v10, %v2561_v43  ;;  %v4885_v50 = vadd.f32 %v4721_v13, %v2561_v43  ;;  %v4890_v35 = vld [vmem:[%s3773_s6 + $0x78] sm:$0xff]  ;;  %v4893_v45 = vld [vmem:[%s3773_s6 + $0x70] sm:$0xff]  ;;  %v4898_v10 = vld [vmem:[%s3773_s6 + $0x68] sm:$0xff] }
 0x5ca   : > { %2668 = vmatpush.msrb.mxu2 %v4890_v35  ;;  %2833 = vmatpush.msra.mxu0 %v4890_v35  ;;  %v4905_v13 = vld [vmem:[%s3773_s6 + $0x60] sm:$0xff] }
 0x5cb   : > { %v2578_v48 = vmax.f32 %v2570_v16, 0.0  ;;  %v2743_v19 = vmax.f32 %v2735_v38, 0.0  ;;  %3458 = vmatpush.msrb.mxu3 %v4890_v35  ;;  %3456 = vmatpush.msrb.mxu1 %v4890_v35  ;;  %v2943_v23 = vmax.f32 %v4882_v30, 0.0  ;;  %v3140_v8 = vmax.f32 %v4885_v50, 0.0 }
 0x5cc   : > { %2669 = vmatpush.msrb.mxu2 %v4893_v45  ;;  %2834 = vmatpush.msra.mxu0 %v4893_v45 }
 0x5cd   : > { %2636 = vmatmul.f32.gmra.mxu1 %v2578_v48  ;;  %2801 = vmatmul.f32.gmra.mxu3 %v2743_v19 }
 0x5ce   : > { %3461 = vmatpush.msrb.mxu3 %v4893_v45  ;;  %3459 = vmatpush.msrb.mxu1 %v4893_v45 }
 0x5cf   : > { %2670 = vmatpush.msrb.mxu2 %v4898_v10  ;;  %2835 = vmatpush.msra.mxu0 %v4898_v10 }
 0x5d0   : > { %3464 = vmatpush.msrb.mxu3 %v4898_v10  ;;  %3462 = vmatpush.msrb.mxu1 %v4898_v10 }
 0x5d1   : > { %2671 = vmatpush.msrb.mxu2 %v4905_v13  ;;  %2836 = vmatpush.msra.mxu0 %v4905_v13 }
 0x5d2   : > { %3467 = vmatpush.msrb.mxu3 %v4905_v13  ;;  %3465 = vmatpush.msrb.mxu1 %v4905_v13 }
 0x5d3   : > { %2672 = vmatpush.msrb.mxu2 %v4918_v24  ;;  %2837 = vmatpush.msra.mxu0 %v4918_v24 }
 0x5d4   : > { %3470 = vmatpush.msrb.mxu3 %v4918_v24  ;;  %3468 = vmatpush.msrb.mxu1 %v4918_v24 }
 0x5d5   : > { %2980 = vmatmul.f32.vlgmr.msra.gmra.mxu1 %v2936_v25  ;;  %3177 = vmatmul.f32.vlgmr.msra.gmra.mxu3 %v3133_v7 }
 0x5d6   : > { %2673 = vmatpush.msrb.mxu2 %v4921_v56  ;;  %2838 = vmatpush.msra.mxu0 %v4921_v56 }
 0x5d7   : > { %3473 = vmatpush.msrb.mxu3 %v4921_v56  ;;  %3471 = vmatpush.msrb.mxu1 %v4921_v56 }
 0x5d8   : > { %2674 = vmatpush.msrb.mxu2 %v4926_v5  ;;  %2839 = vmatpush.msra.mxu0 %v4926_v5 }
 0x5d9   : > { %3476 = vmatpush.msrb.mxu3 %v4926_v5  ;;  %3474 = vmatpush.msrb.mxu1 %v4926_v5 }
 0x5da   : > { %2675 = vmatpush.msrb.mxu2 %v4933_v52  ;;  %2840 = vmatpush.msra.mxu0 %v4933_v52 }
 0x5db   : > { %3479 = vmatpush.msrb.mxu3 %v4933_v52  ;;  %3477 = vmatpush.msrb.mxu1 %v4933_v52 }
 0x5dc   : > { %2676 = vmatpush.msrb.mxu2 %v4946_v39  ;;  %2841 = vmatpush.msra.mxu0 %v4946_v39 }
 0x5dd   : > { %2983 = vmatmul.f32.gmra.mxu1 %v2937_v54  ;;  %3180 = vmatmul.f32.gmra.mxu3 %v3134_v33 }
 0x5de   : > { %2677 = vmatpush.msrb.mxu2 %v4949_v63  ;;  %2842 = vmatpush.msra.mxu0 %v4949_v63 }
 0x5df   : > { %3480 = vmatpush.msrb.mxu1 %v4946_v39  ;;  %3482 = vmatpush.msrb.mxu3 %v4946_v39 }
 0x5e0   : > { %2678 = vmatpush.msrb.mxu2 %v4954_v42  ;;  %2843 = vmatpush.msra.mxu0 %v4954_v42 }
 0x5e1   : > { %3483 = vmatpush.msrb.mxu1 %v4949_v63  ;;  %3485 = vmatpush.msrb.mxu3 %v4949_v63 }
 0x5e2   : > { %2679 = vmatpush.msrb.mxu2 %v4961_v34  ;;  %2844 = vmatpush.msra.mxu0 %v4961_v34 }
 0x5e3   : > { %3486 = vmatpush.msrb.mxu1 %v4954_v42  ;;  %3488 = vmatpush.msrb.mxu3 %v4954_v42 }
 0x5e4   : > { %2680 = vmatpush.msrb.mxu2 %v4974_v36  ;;  %2845 = vmatpush.msra.mxu0 %v4974_v36 }
 0x5e5   : > { %2986 = vmatmul.f32.gmra.mxu1 %v2938_v55  ;;  %3183 = vmatmul.f32.gmra.mxu3 %v3135_v59 }
 0x5e6   : > { %3489 = vmatpush.msrb.mxu1 %v4961_v34  ;;  %3491 = vmatpush.msrb.mxu3 %v4961_v34 }
 0x5e7   : > { %2681 = vmatpush.msrb.mxu2 %v4985_v6  ;;  %2846 = vmatpush.msra.mxu0 %v4985_v6 }
 0x5e8   : > { %3492 = vmatpush.msrb.mxu1 %v4974_v36  ;;  %3494 = vmatpush.msrb.mxu3 %v4974_v36 }
 0x5e9   : > { %2682 = vmatpush.msrb.mxu2 %v4988_v3  ;;  %2847 = vmatpush.msra.mxu0 %v4988_v3 }
 0x5ea   : > { %3495 = vmatpush.msrb.mxu1 %v4985_v6  ;;  %3497 = vmatpush.msrb.mxu3 %v4985_v6 }
 0x5eb   : > { %2683 = vmatpush.msrb.mxu2 %v4995_v2  ;;  %2848 = vmatpush.msra.mxu0 %v4995_v2 }
 0x5ec   : > { %3498 = vmatpush.msrb.mxu1 %v4988_v3  ;;  %3500 = vmatpush.msrb.mxu3 %v4988_v3 }
 0x5ed   : > { %2989 = vmatmul.f32.gmra.mxu1 %v2939_v53  ;;  %3186 = vmatmul.f32.gmra.mxu3 %v3136_v32 }
 0x5ee   : > { %3033 = vmatpush.msra.mxu2 %v4890_v35  ;;  %3230 = vmatpush.msrb.mxu0 %v4890_v35 }
 0x5ef   : > { %3501 = vmatpush.msrb.mxu1 %v4995_v2  ;;  %3503 = vmatpush.msrb.mxu3 %v4995_v2 }
 0x5f0   : > { %3034 = vmatpush.msra.mxu2 %v4893_v45  ;;  %3231 = vmatpush.msrb.mxu0 %v4893_v45 }
 0x5f2   : > { %3035 = vmatpush.msra.mxu2 %v4898_v10  ;;  %3232 = vmatpush.msrb.mxu0 %v4898_v10 }
 0x5f4   : > { %3036 = vmatpush.msra.mxu2 %v4905_v13  ;;  %3233 = vmatpush.msrb.mxu0 %v4905_v13 }
 0x5f5   : > { %2992 = vmatmul.f32.gmra.mxu1 %v2940_v41  ;;  %3189 = vmatmul.f32.gmra.mxu3 %v3137_v57 }
 0x5f6   : > { %3037 = vmatpush.msra.mxu2 %v4918_v24  ;;  %3234 = vmatpush.msrb.mxu0 %v4918_v24 }
 0x5f8   : > { %3038 = vmatpush.msra.mxu2 %v4921_v56  ;;  %3235 = vmatpush.msrb.mxu0 %v4921_v56 }
 0x5fa   : > { %3039 = vmatpush.msra.mxu2 %v4926_v5  ;;  %3236 = vmatpush.msrb.mxu0 %v4926_v5 }
 0x5fc   : > { %3040 = vmatpush.msra.mxu2 %v4933_v52  ;;  %3237 = vmatpush.msrb.mxu0 %v4933_v52 }
 0x5fd   : > { %2995 = vmatmul.f32.gmra.mxu1 %v2941_v20  ;;  %3192 = vmatmul.f32.gmra.mxu3 %v3138_v14 }
 0x5fe   : > { %3041 = vmatpush.msra.mxu2 %v4946_v39  ;;  %3238 = vmatpush.msrb.mxu0 %v4946_v39 }
 0x600   : > { %3042 = vmatpush.msra.mxu2 %v4949_v63  ;;  %3239 = vmatpush.msrb.mxu0 %v4949_v63 }
 0x602   : > { %3043 = vmatpush.msra.mxu2 %v4954_v42  ;;  %3240 = vmatpush.msrb.mxu0 %v4954_v42 }
 0x604   : > { %3044 = vmatpush.msra.mxu2 %v4961_v34  ;;  %3241 = vmatpush.msrb.mxu0 %v4961_v34 }
 0x605   : > { %2998 = vmatmul.f32.gmra.mxu1 %v2942_v47  ;;  %3195 = vmatmul.f32.gmra.mxu3 %v3139_v49 }
 0x606   : > { %3045 = vmatpush.msra.mxu2 %v4974_v36  ;;  %3242 = vmatpush.msrb.mxu0 %v4974_v36 }
 0x608   : > { %3046 = vmatpush.msra.mxu2 %v4985_v6  ;;  %3243 = vmatpush.msrb.mxu0 %v4985_v6 }
 0x60a   : > { %3047 = vmatpush.msra.mxu2 %v4988_v3  ;;  %3244 = vmatpush.msrb.mxu0 %v4988_v3 }
 0x60c   : > { %3048 = vmatpush.msra.mxu2 %v4995_v2  ;;  %3245 = vmatpush.msrb.mxu0 %v4995_v2 }
 0x60d   : > { %3001 = vmatmul.f32.gmra.mxu1 %v2943_v23  ;;  %3198 = vmatmul.f32.gmra.mxu3 %v3140_v8  ;;  %v3586_v23 = vld [vmem:[%s5277_s23] ss:$0 sm:$0xff] }
 0x610   : > { %v2616_v12 = vpop.f32.mrf.mxu1 }
 0x611   : > { %v2617_v15 = vadd.f32 %v5036_v51, %v2616_v12 }
 0x613   : > { %v2640_v11 = vmax.f32 %v2617_v15, 0.0 }
 0x615   : > { %2684 = vmatmul.f32.vlgmr.msrb.gmra.mxu2 %v2640_v11 }
 0x616   : > { %v2781_v17 = vpop.f32.mrf.mxu3  ;;  %3457 = vmatpush.msrb.mxu2 %v4890_v35 }
 0x617   : > { %v2782_v61 = vadd.f32 %v5046_v46, %v2781_v17 }
 0x618   : > { %3460 = vmatpush.msrb.mxu2 %v4893_v45 }
 0x619   : > { %v2805_v18 = vmax.f32 %v2782_v61, 0.0 }
 0x61a   : > { %v2619_v21 = vpop.f32.mrf.mxu1  ;;  %3463 = vmatpush.msrb.mxu2 %v4898_v10 }
 0x61b   : > { %v2620_v22 = vadd.f32 %v5036_v51, %v2619_v21  ;;  %2849 = vmatmul.f32.vlgmr.msra.gmra.mxu0 %v2805_v18 }
 0x61c   : > { %3466 = vmatpush.msrb.mxu2 %v4905_v13 }
 0x61d   : > { %v2641_v26 = vmax.f32 %v2620_v22, 0.0 }
 0x61e   : > { %3469 = vmatpush.msrb.mxu2 %v4918_v24 }
 0x61f   : > { %2687 = vmatmul.f32.gmra.mxu2 %v2641_v26 }
 0x620   : > { %v2784_v9 = vpop.f32.mrf.mxu3  ;;  %3472 = vmatpush.msrb.mxu2 %v4921_v56 }
 0x621   : > { %v2785_v37 = vadd.f32 %v5046_v46, %v2784_v9 }
 0x622   : > { %v2622_v27 = vpop.f32.mrf.mxu1  ;;  %3475 = vmatpush.msrb.mxu2 %v4926_v5 }
 0x623   : > { %v2806_v44 = vmax.f32 %v2785_v37, 0.0  ;;  %v2623_v29 = vadd.f32 %v5036_v51, %v2622_v27 }
 0x624   : > { %3478 = vmatpush.msrb.mxu2 %v4933_v52 }
 0x625   : > { %v2642_v28 = vmax.f32 %v2623_v29, 0.0  ;;  %2852 = vmatmul.f32.gmra.mxu0 %v2806_v44 }
 0x626   : > { %3481 = vmatpush.msrb.mxu2 %v4946_v39 }
 0x627   : > { %2690 = vmatmul.f32.gmra.mxu2 %v2642_v28 }
 0x628   : > { %v2787_v43 = vpop.f32.mrf.mxu3  ;;  %3484 = vmatpush.msrb.mxu2 %v4949_v63 }
 0x629   : > { %v2788_v16 = vadd.f32 %v5046_v46, %v2787_v43 }
 0x62a   : > { %v2625_v38 = vpop.f32.mrf.mxu1  ;;  %3487 = vmatpush.msrb.mxu2 %v4954_v42 }
 0x62b   : > { %v2807_v30 = vmax.f32 %v2788_v16, 0.0  ;;  %v2626_v50 = vadd.f32 %v5036_v51, %v2625_v38 }
 0x62c   : > { %3490 = vmatpush.msrb.mxu2 %v4961_v34 }
 0x62d   : > { %v2643_v48 = vmax.f32 %v2626_v50, 0.0  ;;  %2855 = vmatmul.f32.gmra.mxu0 %v2807_v30 }
 0x62e   : > { %3493 = vmatpush.msrb.mxu2 %v4974_v36 }
 0x62f   : > { %2693 = vmatmul.f32.gmra.mxu2 %v2643_v48 }
 0x630   : > { %v2790_v19 = vpop.f32.mrf.mxu3  ;;  %3496 = vmatpush.msrb.mxu2 %v4985_v6  ;;  %v3585_v6 = vld [vmem:[%s5277_s23] ss:$0 sm:$0xff] }
 0x631   : > { %v2791_v25 = vadd.f32 %v5046_v46, %v2790_v19 }
 0x632   : > { %v2628_v7 = vpop.f32.mrf.mxu1  ;;  %3499 = vmatpush.msrb.mxu2 %v4988_v3 }
 0x633   : > { %v2808_v35 = vmax.f32 %v2791_v25, 0.0  ;;  %v2629_v45 = vadd.f32 %v5036_v51, %v2628_v7 }
 0x634   : > { %3502 = vmatpush.msrb.mxu2 %v4995_v2 }
 0x635   : > { %v2644_v10 = vmax.f32 %v2629_v45, 0.0  ;;  %2858 = vmatmul.f32.gmra.mxu0 %v2808_v35 }
 0x637   : > { %2696 = vmatmul.f32.gmra.mxu2 %v2644_v10 }
 0x638   : > { %v2793_v13 = vpop.f32.mrf.mxu3 }
 0x639   : > { %v2794_v54 = vadd.f32 %v5046_v46, %v2793_v13 }
 0x63a   : > { %v2631_v33 = vpop.f32.mrf.mxu1 }
 0x63b   : > { %v2809_v24 = vmax.f32 %v2794_v54, 0.0  ;;  %v2632_v56 = vadd.f32 %v5036_v51, %v2631_v33 }
 0x63d   : > { %v2645_v5 = vmax.f32 %v2632_v56, 0.0  ;;  %2861 = vmatmul.f32.gmra.mxu0 %v2809_v24 }
 0x63f   : > { %2699 = vmatmul.f32.gmra.mxu2 %v2645_v5 }
 0x640   : > { %v2796_v52 = vpop.f32.mrf.mxu3 }
 0x641   : > { %v2797_v55 = vadd.f32 %v5046_v46, %v2796_v52 }
 0x642   : > { %v2634_v59 = vpop.f32.mrf.mxu1 }
 0x643   : > { %v2810_v39 = vmax.f32 %v2797_v55, 0.0  ;;  %v2635_v63 = vadd.f32 %v5036_v51, %v2634_v59 }
 0x645   : > { %v2646_v42 = vmax.f32 %v2635_v63, 0.0  ;;  %2864 = vmatmul.f32.gmra.mxu0 %v2810_v39 }
 0x647   : > { %2702 = vmatmul.f32.gmra.mxu2 %v2646_v42 }
 0x648   : > { %v2799_v34 = vpop.f32.mrf.mxu3 }
 0x649   : > { %v2800_v53 = vadd.f32 %v5046_v46, %v2799_v34 }
 0x64a   : > { %v2637_v32 = vpop.f32.mrf.mxu1 }
 0x64b   : > { %v2811_v36 = vmax.f32 %v2800_v53, 0.0  ;;  %v2638_v41 = vadd.f32 %v5036_v51, %v2637_v32 }
 0x64d   : > { %v2647_v57 = vmax.f32 %v2638_v41, 0.0  ;;  %2867 = vmatmul.f32.gmra.mxu0 %v2811_v36  ;;  %v5088_v36 = vld [vmem:[%s3778_s24] ss:$0 sm:$0xff] }
 0x64e   : > { %v5091_v41 = vld [vmem:[%s3778_s24] ss:$0 sm:$0xff] }
 0x64f   : > { %2705 = vmatmul.f32.gmra.mxu2 %v2647_v57 }
 0x650   : > { %v2802_v3 = vpop.f32.mrf.mxu3 }
 0x651   : > { %v2803_v2 = vadd.f32 %v5046_v46, %v2802_v3 }
 0x652   : > { %v2981_v20 = vpop.f32.mrf.mxu1 }
 0x653   : > { %v2812_v14 = vmax.f32 %v2803_v2, 0.0  ;;  %v2982_v47 = vadd.f32 %v3585_v6, %v2981_v20 }
 0x655   : > { %v3005_v49 = vmax.f32 %v2982_v47, 0.0  ;;  %2870 = vmatmul.f32.gmra.mxu0 %v2812_v14 }
 0x657   : > { %3049 = vmatmul.f32.vlgmr.msra.gmra.mxu2 %v3005_v49 }
 0x658   : > { %v3178_v8 = vpop.f32.mrf.mxu3 }
 0x659   : > { %v3179_v12 = vadd.f32 %v3586_v23, %v3178_v8 }
 0x65a   : > { %v2984_v15 = vpop.f32.mrf.mxu1 }
 0x65b   : > { %v3202_v11 = vmax.f32 %v3179_v12, 0.0  ;;  %v2985_v17 = vadd.f32 %v3585_v6, %v2984_v15 }
 0x65d   : > { %v3006_v51 = vmax.f32 %v2985_v17, 0.0  ;;  %3246 = vmatmul.f32.vlgmr.msrb.gmra.mxu0 %v3202_v11 }
 0x65f   : > { %3052 = vmatmul.f32.gmra.mxu2 %v3006_v51 }
 0x660   : > { %v3181_v61 = vpop.f32.mrf.mxu3 }
 0x661   : > { %v3182_v18 = vadd.f32 %v3586_v23, %v3181_v61 }
 0x662   : > { %v2987_v21 = vpop.f32.mrf.mxu1 }
 0x663   : > { %v3203_v22 = vmax.f32 %v3182_v18, 0.0  ;;  %v2988_v46 = vadd.f32 %v3585_v6, %v2987_v21 }
 0x665   : > { %v3007_v26 = vmax.f32 %v2988_v46, 0.0  ;;  %3249 = vmatmul.f32.gmra.mxu0 %v3203_v22 }
 0x667   : > { %3055 = vmatmul.f32.gmra.mxu2 %v3007_v26 }
 0x668   : > { %v3184_v9 = vpop.f32.mrf.mxu3 }
 0x669   : > { %v3185_v37 = vadd.f32 %v3586_v23, %v3184_v9 }
 0x66a   : > { %v2990_v27 = vpop.f32.mrf.mxu1 }
 0x66b   : > { %v3204_v44 = vmax.f32 %v3185_v37, 0.0  ;;  %v2991_v29 = vadd.f32 %v3585_v6, %v2990_v27 }
 0x66d   : > { %v3008_v28 = vmax.f32 %v2991_v29, 0.0  ;;  %3252 = vmatmul.f32.gmra.mxu0 %v3204_v44 }
 0x66f   : > { %3058 = vmatmul.f32.gmra.mxu2 %v3008_v28 }
 0x670   : > { %v3187_v43 = vpop.f32.mrf.mxu3 }
 0x671   : > { %v3188_v16 = vadd.f32 %v3586_v23, %v3187_v43 }
 0x672   : > { %v2993_v38 = vpop.f32.mrf.mxu1 }
 0x673   : > { %v3205_v30 = vmax.f32 %v3188_v16, 0.0  ;;  %v2994_v50 = vadd.f32 %v3585_v6, %v2993_v38 }
 0x675   : > { %v3009_v48 = vmax.f32 %v2994_v50, 0.0  ;;  %3255 = vmatmul.f32.gmra.mxu0 %v3205_v30 }
 0x677   : > { %3061 = vmatmul.f32.gmra.mxu2 %v3009_v48 }
 0x678   : > { %v3190_v19 = vpop.f32.mrf.mxu3 }
 0x679   : > { %v3191_v25 = vadd.f32 %v3586_v23, %v3190_v19 }
 0x67a   : > { %v2996_v7 = vpop.f32.mrf.mxu1 }
 0x67b   : > { %v3206_v35 = vmax.f32 %v3191_v25, 0.0  ;;  %v2997_v45 = vadd.f32 %v3585_v6, %v2996_v7 }
 0x67d   : > { %v3010_v10 = vmax.f32 %v2997_v45, 0.0  ;;  %3258 = vmatmul.f32.gmra.mxu0 %v3206_v35 }
 0x67f   : > { %3064 = vmatmul.f32.gmra.mxu2 %v3010_v10 }
 0x680   : > { %v3193_v13 = vpop.f32.mrf.mxu3 }
 0x681   : > { %v3194_v54 = vadd.f32 %v3586_v23, %v3193_v13 }
 0x682   : > { %v2999_v33 = vpop.f32.mrf.mxu1 }
 0x683   : > { %v3207_v24 = vmax.f32 %v3194_v54, 0.0  ;;  %v3000_v56 = vadd.f32 %v3585_v6, %v2999_v33 }
 0x685   : > { %v3011_v5 = vmax.f32 %v3000_v56, 0.0  ;;  %3261 = vmatmul.f32.vlgmr.msrb.gmra.mxu1 %v3207_v24 }
 0x687   : > { %3067 = vmatmul.f32.gmra.mxu2 %v3011_v5 }
 0x688   : > { %v3196_v52 = vpop.f32.mrf.mxu3 }
 0x689   : > { %v3197_v42 = vadd.f32 %v3586_v23, %v3196_v52 }
 0x68a   : > { %v3002_v55 = vpop.f32.mrf.mxu1 }
 0x68b   : > { %v3003_v59 = vadd.f32 %v3585_v6, %v3002_v55  ;;  %v3208_v32 = vmax.f32 %v3197_v42, 0.0 }
 0x68d   : > { %v3012_v39 = vmax.f32 %v3003_v59, 0.0 }
 0x68f   : > { %3070 = vmatmul.f32.gmra.mxu2 %v3012_v39  ;;  %v3589_v39 = vld [vmem:[%s3778_s24] ss:$0 sm:$0xff] }
 0x690   : > { %v3199_v63 = vpop.f32.mrf.mxu3 }
 0x691   : > { %v3200_v34 = vadd.f32 %v3586_v23, %v3199_v63  ;;  %v5156_v63 = vld [vmem:[%s3778_s24] ss:$0 sm:$0xff] }
 0x693   : > { %v3209_v53 = vmax.f32 %v3200_v34, 0.0 }
 0x695   : > { %3267 = vmatmul.f32.vlgmr.msrb.gmra.mxu3 %v3209_v53 }
 0x697   : > { %3264 = vmatmul.f32.vlgmr.msrb.gmra.mxu2 %v3208_v32 }
 0x698   : > { %v2685_v57 = vpop.f32.mrf.mxu2  ;;  %v2850_v3 = vpop.f32.mrf.mxu0 }
 0x699   : > { %v2686_v2 = vadd.f32 %v5088_v36, %v2685_v57  ;;  %v2851_v6 = vadd.f32 %v5091_v41, %v2850_v3 }
 0x69b   : > { %v2709_v20 = vadd.f32 %v2686_v2, %v4710_v31  ;;  %v2874_v14 = vadd.f32 %v2851_v6, %v4710_v31 }
 0x69d   : > { %2717 = vst.msk [vmem:[%s5098_s26] sm:$0xff] %vm2421_vm12, %v2709_v20  ;;  %2890 = vrot.lane.b32.xlu2 %v2874_v14, %s3632_s28 }
 0x6a2   : > { %v2688_v47 = vpop.f32.mrf.mxu2  ;;  %v2853_v49 = vpop.f32.mrf.mxu0 }
 0x6a3   : > { %v2689_v23 = vadd.f32 %v5088_v36, %v2688_v47  ;;  %v2854_v8 = vadd.f32 %v5091_v41, %v2853_v49 }
 0x6a5   : > { %v2710_v12 = vadd.f32 %v2689_v23, %v4748_v60  ;;  %v2875_v15 = vadd.f32 %v2854_v8, %v4748_v60 }
 0x6a7   : > { %2718 = vst.msk [vmem:[%s5098_s26 + $0x8] sm:$0xff] %vm2421_vm12, %v2710_v12  ;;  %2892 = vrot.lane.b32.xlu0 %v2875_v15, %s3632_s28 }
 0x6aa   : > { %v2691_v11 = vpop.f32.mrf.mxu2  ;;  %v2856_v17 = vpop.f32.mrf.mxu0 }
 0x6ab   : > { %v2692_v51 = vadd.f32 %v5088_v36, %v2691_v11  ;;  %v2857_v61 = vadd.f32 %v5091_v41, %v2856_v17 }
 0x6ad   : > { %v2711_v18 = vadd.f32 %v2692_v51, %v4773_v40  ;;  %v2876_v21 = vadd.f32 %v2857_v61, %v4773_v40 }
 0x6af   : > { %2719 = vst.msk [vmem:[%s5098_s26 + $0x10] sm:$0xff] %vm2421_vm12, %v2711_v18  ;;  %2894 = vrot.lane.b32.xlu1 %v2876_v21, %s3632_s28 }
 0x6b2   : > { %v2694_v22 = vpop.f32.mrf.mxu2  ;;  %v2859_v46 = vpop.f32.mrf.mxu0 }
 0x6b3   : > { %v2695_v26 = vadd.f32 %v5088_v36, %v2694_v22  ;;  %v2860_v9 = vadd.f32 %v5091_v41, %v2859_v46 }
 0x6b5   : > { %v2712_v37 = vadd.f32 %v2695_v26, %v4793_v58  ;;  %v2877_v27 = vadd.f32 %v2860_v9, %v4793_v58 }
 0x6b7   : > { %2720 = vst.msk [vmem:[%s5098_s26 + $0x18] sm:$0xff] %vm2421_vm12, %v2712_v37  ;;  %2896 = vrot.lane.b32.xlu0 %v2877_v27, %s3632_s28 }
 0x6ba   : > { %v2697_v44 = vpop.f32.mrf.mxu2  ;;  %v2862_v29 = vpop.f32.mrf.mxu0 }
 0x6bb   : > { %v2698_v28 = vadd.f32 %v5088_v36, %v2697_v44  ;;  %v2863_v43 = vadd.f32 %v5091_v41, %v2862_v29 }
 0x6bd   : > { %v2713_v16 = vadd.f32 %v2698_v28, %v4813_v4  ;;  %v2878_v38 = vadd.f32 %v2863_v43, %v4813_v4 }
 0x6bf   : > { %2721 = vst.msk [vmem:[%s5098_s26 + $0x20] sm:$0xff] %vm2421_vm12, %v2713_v16  ;;  %2898 = vrot.lane.b32.xlu2 %v2878_v38, %s3632_s28 }
 0x6c2   : > { %v2700_v30 = vpop.f32.mrf.mxu2  ;;  %v2865_v50 = vpop.f32.mrf.mxu0 }
 0x6c3   : > { %v2701_v48 = vadd.f32 %v5088_v36, %v2700_v30  ;;  %v2866_v19 = vadd.f32 %v5091_v41, %v2865_v50 }
 0x6c5   : > { %v2714_v25 = vadd.f32 %v2701_v48, %v4833_v0  ;;  %v2879_v7 = vadd.f32 %v2866_v19, %v4833_v0 }
 0x6c7   : > { %2722 = vst.msk [vmem:[%s5098_s26 + $0x28] sm:$0xff] %vm2421_vm12, %v2714_v25  ;;  %2900 = vrot.lane.b32.xlu1 %v2879_v7, %s3632_s28 }
 0x6ca   : > { %v2703_v35 = vpop.f32.mrf.mxu2  ;;  %v2868_v45 = vpop.f32.mrf.mxu0 }
 0x6cb   : > { %v2704_v10 = vadd.f32 %v5088_v36, %v2703_v35  ;;  %v2869_v13 = vadd.f32 %v5091_v41, %v2868_v45 }
 0x6cd   : > { %v2715_v54 = vadd.f32 %v2704_v10, %v4853_v62  ;;  %v2880_v33 = vadd.f32 %v2869_v13, %v4853_v62 }
 0x6cf   : > { %2723 = vst.msk [vmem:[%s5098_s26 + $0x30] sm:$0xff] %vm2421_vm12, %v2715_v54  ;;  %2902 = vrot.lane.b32.xlu0 %v2880_v33, %s3632_s28 }
 0x6d2   : > { %v2706_v24 = vpop.f32.mrf.mxu2  ;;  %v2871_v56 = vpop.f32.mrf.mxu0 }
 0x6d3   : > { %v2707_v5 = vadd.f32 %v5088_v36, %v2706_v24  ;;  %v2872_v52 = vadd.f32 %v5091_v41, %v2871_v56 }
 0x6d5   : > { %v2716_v55 = vadd.f32 %v2707_v5, %v4873_v1  ;;  %v2881_v59 = vadd.f32 %v2872_v52, %v4873_v1 }
 0x6d7   : > { %2724 = vst.msk [vmem:[%s5098_s26 + $0x38] sm:$0xff] %vm2421_vm12, %v2716_v55  ;;  %2904 = vrot.lane.b32.xlu2 %v2881_v59, %s3632_s28 }
 0x6da   : > { %v3050_v42 = vpop.f32.mrf.mxu2  ;;  %v3247_v34 = vpop.f32.mrf.mxu0 }
 0x6db   : > { %v3051_v53 = vadd.f32 %v3589_v39, %v3050_v42  ;;  %v3248_v32 = vadd.f32 %v5156_v63, %v3247_v34 }
 0x6dd   : > { %v3074_v36 = vadd.f32 %v3051_v53, %v4710_v31  ;;  %v3271_v41 = vadd.f32 %v3248_v32, %v4710_v31 }
 0x6df   : > { %3090 = vrot.lane.b32.xlu1 %v3074_v36, %s3633_s10  ;;  %3287 = vrot.lane.b32.xlu2 %v3271_v41, %s3634_s2 }
 0x6e2   : > { %v3053_v57 = vpop.f32.mrf.mxu2  ;;  %v3250_v3 = vpop.f32.mrf.mxu0 }
 0x6e3   : > { %v3054_v2 = vadd.f32 %v3589_v39, %v3053_v57  ;;  %v3251_v6 = vadd.f32 %v5156_v63, %v3250_v3 }
 0x6e5   : > { %v3075_v20 = vadd.f32 %v3054_v2, %v4748_v60  ;;  %v3272_v14 = vadd.f32 %v3251_v6, %v4748_v60 }
 0x6e7   : > { %3092 = vrot.lane.b32.xlu0 %v3075_v20, %s3633_s10  ;;  %3289 = vrot.lane.b32.xlu1 %v3272_v14, %s3634_s2 }
 0x6ea   : > { %v3056_v31 = vpop.f32.mrf.mxu2  ;;  %v3253_v47 = vpop.f32.mrf.mxu0 }
 0x6eb   : > { %v3057_v49 = vadd.f32 %v3589_v39, %v3056_v31  ;;  %v3254_v23 = vadd.f32 %v5156_v63, %v3253_v47 }
 0x6ed   : > { %v3076_v8 = vadd.f32 %v3057_v49, %v4773_v40  ;;  %v3273_v12 = vadd.f32 %v3254_v23, %v4773_v40 }
 0x6ef   : > { %3291 = vrot.lane.b32.xlu0 %v3273_v12, %s3634_s2  ;;  %3094 = vrot.lane.b32.xlu2 %v3076_v8, %s3633_s10 }
 0x6f2   : > { %v3059_v15 = vpop.f32.mrf.mxu2  ;;  %v3256_v60 = vpop.f32.mrf.mxu0 }
 0x6f3   : > { %v3060_v11 = vadd.f32 %v3589_v39, %v3059_v15  ;;  %v3257_v17 = vadd.f32 %v5156_v63, %v3256_v60 }
 0x6f5   : > { %v3077_v51 = vadd.f32 %v3060_v11, %v4793_v58  ;;  %v3274_v61 = vadd.f32 %v3257_v17, %v4793_v58 }
 0x6f7   : > { %v2891_v18 = vpop.permute.xlu2 %2890  ;;  %3096 = vrot.lane.b32.xlu1 %v3077_v51, %s3633_s10  ;;  %3293 = vrot.lane.b32.xlu2 %v3274_v61, %s3634_s2 }
 0x6f8   : > { %2915 = vst.msk [vmem:[%s5098_s26] sm:$0xff] %vm2914_vm13, %v2891_v18 }
 0x6fa   : > { %v3062_v40 = vpop.f32.mrf.mxu2  ;;  %v3259_v21 = vpop.f32.mrf.mxu0 }
 0x6fb   : > { %v3063_v22 = vadd.f32 %v3589_v39, %v3062_v40  ;;  %v3260_v46 = vadd.f32 %v5156_v63, %v3259_v21 }
 0x6fd   : > { %v3078_v26 = vadd.f32 %v3063_v22, %v4813_v4  ;;  %v3275_v9 = vadd.f32 %v3260_v46, %v4813_v4 }
 0x6ff   : > { %3098 = vrot.lane.b32.xlu0 %v3078_v26, %s3633_s10  ;;  %3295 = vrot.lane.b32.xlu1 %v3275_v9, %s3634_s2 }
 0x702   : > { %v3065_v58 = vpop.f32.mrf.mxu2  ;;  %v3262_v38 = vpop.f32.mrf.mxu1 }
 0x703   : > { %v3066_v37 = vadd.f32 %v3589_v39, %v3065_v58  ;;  %v3263_v50 = vadd.f32 %v5156_v63, %v3262_v38 }
 0x705   : > { %v3079_v27 = vadd.f32 %v3066_v37, %v4833_v0  ;;  %v3276_v10 = vadd.f32 %v3263_v50, %v4833_v0 }
 0x707   : > { %3100 = vrot.lane.b32.xlu2 %v3079_v27, %s3633_s10 }
 0x70a   : > { %v3068_v44 = vpop.f32.mrf.mxu2 }
 0x70b   : > { %v3069_v29 = vadd.f32 %v3589_v39, %v3068_v44 }
 0x70d   : > { %v3080_v28 = vadd.f32 %v3069_v29, %v4853_v62 }
 0x70f   : > { %3102 = vrot.lane.b32.xlu1 %v3080_v28, %s3633_s10 }
 0x712   : > { %v3071_v43 = vpop.f32.mrf.mxu2 }
 0x713   : > { %v3072_v4 = vadd.f32 %v3589_v39, %v3071_v43 }
 0x715   : > { %v3081_v16 = vadd.f32 %v3072_v4, %v4873_v1 }
 0x717   : > { %3104 = vrot.lane.b32.xlu0 %v3081_v16, %s3633_s10 }
 0x718   : > { %v3268_v30 = vpop.f32.mrf.mxu3 }
 0x719   : > { %v3269_v48 = vadd.f32 %v5156_v63, %v3268_v30  ;;  %v2899_v19 = vpop.permute.xlu2 %2898  ;;  %v2893_v25 = vpop.permute.xlu0 %2892 }
 0x71a   : > { %2919 = vst.msk [vmem:[%s5098_s26 + $0x20] sm:$0xff] %vm2914_vm13, %v2899_v19  ;;  %v3265_v7 = vpop.f32.mrf.mxu2 }
 0x71b   : > { %v3278_v35 = vadd.f32 %v3269_v48, %v4873_v1  ;;  %2916 = vst.msk [vmem:[%s5098_s26 + $0x8] sm:$0xff] %vm2914_vm13, %v2893_v25  ;;  %v3266_v45 = vadd.f32 %v5156_v63, %v3265_v7 }
 0x71d   : > { %v3277_v13 = vadd.f32 %v3266_v45, %v4853_v62  ;;  %3301 = vrot.lane.b32.xlu1 %v3278_v35, %s3634_s2 }
 0x71f   : > { %3297 = vrot.lane.b32.xlu0 %v3276_v10, %s3634_s2  ;;  %3299 = vrot.lane.b32.xlu2 %v3277_v13, %s3634_s2 }
 0x721   : > { %v2895_v54 = vpop.permute.xlu1 %2894 }
 0x722   : > { %2917 = vst.msk [vmem:[%s5098_s26 + $0x10] sm:$0xff] %vm2914_vm13, %v2895_v54 }
 0x729   : > { %v2897_v1 = vpop.permute.xlu0 %2896 }
 0x72a   : > { %2918 = vst.msk [vmem:[%s5098_s26 + $0x18] sm:$0xff] %vm2914_vm13, %v2897_v1 }
 0x731   : > { %v2905_v33 = vpop.permute.xlu2 %2904 }
 0x732   : > { %2922 = vst.msk [vmem:[%s5098_s26 + $0x38] sm:$0xff] %vm2914_vm13, %v2905_v33 }
 0x739   : > { %v2901_v0 = vpop.permute.xlu1 %2900  ;;  %v3288_v62 = vpop.permute.xlu2 %3287 }
 0x73a   : > { %2920 = vst.msk [vmem:[%s5098_s26 + $0x28] sm:$0xff] %vm2914_vm13, %v2901_v0 }
 0x741   : > { %v2903_v24 = vpop.permute.xlu0 %2902 }
 0x742   : > { %2921 = vst.msk [vmem:[%s5098_s26 + $0x30] sm:$0xff] %vm2914_vm13, %v2903_v24 }
 0x749   : > { %v3095_v56 = vpop.permute.xlu2 %3094 }
 0x74a   : > { %3117 = vst.msk [vmem:[%s5098_s26 + $0x10] sm:$0xff] %vm3114_vm14, %v3095_v56 }
 0x751   : > { %v3091_v5 = vpop.permute.xlu1 %3090  ;;  %v3294_v52 = vpop.permute.xlu2 %3293 }
 0x752   : > { %3115 = vst.msk [vmem:[%s5098_s26] sm:$0xff] %vm3114_vm14, %v3091_v5 }
 0x753   : > { %3312 = vst.msk [vmem:[%s5098_s26] sm:$0xff] %vm3311_vm15, %v3288_v62 }
 0x759   : > { %v3290_v55 = vpop.permute.xlu1 %3289  ;;  %v3093_v59 = vpop.permute.xlu0 %3092 }
 0x75a   : > { %3116 = vst.msk [vmem:[%s5098_s26 + $0x8] sm:$0xff] %vm3114_vm14, %v3093_v59 }
 0x75b   : > { %3313 = vst.msk [vmem:[%s5098_s26 + $0x8] sm:$0xff] %vm3311_vm15, %v3290_v55 }
 0x761   : > { %v3101_v39 = vpop.permute.xlu2 %3100  ;;  %v3292_v63 = vpop.permute.xlu0 %3291 }
 0x762   : > { %3120 = vst.msk [vmem:[%s5098_s26 + $0x28] sm:$0xff] %vm3114_vm14, %v3101_v39 }
 0x763   : > { %3314 = vst.msk [vmem:[%s5098_s26 + $0x10] sm:$0xff] %vm3311_vm15, %v3292_v63 }
 0x769   : > { %v3097_v42 = vpop.permute.xlu1 %3096 }
 0x76a   : > { %3118 = vst.msk [vmem:[%s5098_s26 + $0x18] sm:$0xff] %vm3114_vm14, %v3097_v42 }
 0x76b   : > { %3315 = vst.msk [vmem:[%s5098_s26 + $0x18] sm:$0xff] %vm3311_vm15, %v3294_v52 }
 0x771   : > { %v3296_v34 = vpop.permute.xlu1 %3295  ;;  %v3099_v53 = vpop.permute.xlu0 %3098 }
 0x772   : > { %3119 = vst.msk [vmem:[%s5098_s26 + $0x20] sm:$0xff] %vm3114_vm14, %v3099_v53 }
 0x773   : > { %3316 = vst.msk [vmem:[%s5098_s26 + $0x20] sm:$0xff] %vm3311_vm15, %v3296_v34 }
 0x779   : > { %v3300_v36 = vpop.permute.xlu2 %3299 }
 0x781   : > { %v3103_v32 = vpop.permute.xlu1 %3102 }
 0x782   : > { %3121 = vst.msk [vmem:[%s5098_s26 + $0x30] sm:$0xff] %vm3114_vm14, %v3103_v32 }
 0x783   : > { %3318 = vst.msk [vmem:[%s5098_s26 + $0x30] sm:$0xff] %vm3311_vm15, %v3300_v36 }
 0x789   : > { %v3105_v41 = vpop.permute.xlu0 %3104 }
 0x78a   : > { %3122 = vst.msk [vmem:[%s5098_s26 + $0x38] sm:$0xff] %vm3114_vm14, %v3105_v41 }
 0x78f   : > { %v3302_v57 = vpop.permute.xlu1 %3301 }
 0x790   : > { %3319 = vst.msk [vmem:[%s5098_s26 + $0x38] sm:$0xff] %vm3311_vm15, %v3302_v57 }
 0x791   : > { %v3298_v3 = vpop.permute.xlu0 %3297 }
 0x792   : > { %3317 = vst.msk [vmem:[%s5098_s26 + $0x28] sm:$0xff] %vm3311_vm15, %v3298_v3 }
 0x793 PF: > { %s70_s7 = sadd.s32 1, %s3597_s7  }
 0x794   : > { %p67_p4 = scmp.ge.s32.totalorder %s70_s7, 4  }
 0x796   :  { %69 = sbr.rel (!%p67_p4) target bundleno = 43 (0x2b), region = 203 }

</bundles_post_ra>
